<compile_context>
chip_gen: v7x
topology: tpu7x:2x2x1
jax: 0.10.0
libtpu: 0.0.40
codegen_flags: <defaults>
</compile_context>

<pallas_src>
import math
import functools

import jax
import jax.numpy as jnp
from jax import lax
from jax.experimental import pallas as pl
from jax.experimental.pallas import tpu as pltpu

_LOG2 = math.log(2.0)
_LANE = 128
_SUBLANE = 8
_E_TILE = 1024   # edge rows per grid step (multiple of 128 -> lane-aligned)
_N_BLOCK = 512   # node rows per inner gather/scatter block (multiple of 8)


def _round_up(x, m):
    return (x + m - 1) // m * m


def _shifted_softplus(x):
    # numerically stable softplus(x) - log(2); f32 on the VPU/EUP path
    return jnp.maximum(x, 0.0) + jnp.log1p(jnp.exp(-jnp.abs(x))) - _LOG2


def _schnet_update_kernel(cutoff_val, n_block, num_n_blocks, dot_dtype,
                          node_ref, node_lin_ref, is_ref, js_ref,
                          eemb_ref, ew_ref,
                          w_e1_ref, b_e1_ref, w_e2_ref, b_e2_ref,
                          w_n1_ref, b_n1_ref, w_n2_ref, b_n2_ref,
                          node_out_ref, edge_out_ref,
                          node_agg_scr, gath_scr):
    f32 = jnp.float32
    dd = dot_dtype
    e = pl.program_id(0)

    # ---- first edge-tile: zero the scatter accumulator -----------------------
    @pl.when(e == 0)
    def _():
        node_agg_scr[...] = jnp.zeros_like(node_agg_scr)

    # ---- edge update (edge MLP * cosine cutoff) for this E-tile --------------
    w = ew_ref[...]                                             # (E_tile, 1) f32
    cutoff = 0.5 * (jnp.cos(w * (math.pi / cutoff_val)) + 1.0)
    cutoff = cutoff * (w < cutoff_val).astype(f32)

    h = jnp.dot(eemb_ref[...], w_e1_ref[...],
                preferred_element_type=f32) + b_e1_ref[...]
    h = _shifted_softplus(h)
    h = jnp.dot(h.astype(dd), w_e2_ref[...],
                preferred_element_type=f32) + b_e2_ref[...]
    W = h * cutoff                                              # (E_tile, F) f32

    # One-hot selection built from a (n_block, 1) iota column broadcast against
    # the (1, e_tile) index block: node index on sublanes, edge index on dense
    # lanes -> no transpose, no (Np, E_tile) int32 intermediate.
    col = lax.broadcasted_iota(jnp.int32, (n_block, 1), 0)
    gather_dnums = (((0,), (0,)), ((), ()))

    if num_n_blocks == 1:
        # Direct path: whole node range fits in one block.
        oh_i = (is_ref[...] == col).astype(dd)                  # (Np, E_tile)
        gathered = lax.dot_general(oh_i, node_lin_ref[...],
                                   dimension_numbers=gather_dnums,
                                   preferred_element_type=f32)  # (E_tile, F)
        edge_new = gathered * W
        edge_out_ref[...] = edge_new

        oh_j = (js_ref[...] == col).astype(dd)                  # (Np, E_tile)
        node_agg_scr[...] += jnp.dot(oh_j, edge_new.astype(dd),
                                     preferred_element_type=f32)
    else:
        # Blocked path: bound one-hot intermediates to (n_block, E_tile).
        gath_scr[...] = jnp.zeros_like(gath_scr)

        def gather_body(nb, carry):
            start = pl.multiple_of(nb * n_block, n_block)
            oh_i = (is_ref[...] == (col + start)).astype(dd)
            gath_scr[...] += lax.dot_general(
                oh_i, node_lin_ref[pl.ds(start, n_block), :],
                dimension_numbers=gather_dnums,
                preferred_element_type=f32)
            return carry

        lax.fori_loop(0, num_n_blocks, gather_body, 0)

        edge_new = gath_scr[...] * W
        edge_out_ref[...] = edge_new
        edge_new_dd = edge_new.astype(dd)

        def scatter_body(nb, carry):
            start = pl.multiple_of(nb * n_block, n_block)
            oh_j = (js_ref[...] == (col + start)).astype(dd)
            node_agg_scr[pl.ds(start, n_block), :] += jnp.dot(
                oh_j, edge_new_dd, preferred_element_type=f32)
            return carry

        lax.fori_loop(0, num_n_blocks, scatter_body, 0)

    # ---- last edge-tile: node MLP + residual ---------------------------------
    @pl.when(e == pl.num_programs(0) - 1)
    def _():
        g = jnp.dot(node_agg_scr[...].astype(dd), w_n1_ref[...],
                    preferred_element_type=f32) + b_n1_ref[...]
        g = _shifted_softplus(g)
        g = jnp.dot(g.astype(dd), w_n2_ref[...],
                    preferred_element_type=f32) + b_n2_ref[...]
        node_out_ref[...] = node_ref[...] + g


def schnet_update(node_embs, edge_index, edge_embs, edge_weights, params,
                  cutoff_val, dot_dtype=jnp.float32):
    """SchNetUpdate forward.  dot_dtype=jnp.bfloat16 enables the fast MXU path
    (2-4x on v6e/v7x, ~1e-3 relative error); default f32 is bit-faithful."""
    f32 = jnp.float32
    N, h_nf = node_embs.shape
    E, n_gaussians = edge_embs.shape
    n_filters = params["w_node_lin"].shape[1]

    # Lane-dense padded feature sizes.
    Hp = _round_up(h_nf, _LANE)
    Fp = _round_up(n_filters, _LANE)
    Gp = _round_up(n_gaussians, _LANE)

    # Edge tiling: always lane-dense (multiple of 128), big tiles for large E.
    Ep_small = _round_up(max(E, 1), _LANE)
    if Ep_small <= _E_TILE:
        e_tile, Ep = Ep_small, Ep_small
    else:
        e_tile, Ep = _E_TILE, _round_up(E, _E_TILE)
    num_e_tiles = Ep // e_tile

    # Node blocking for the one-hot gather/scatter matmuls.
    Np_small = _round_up(max(N, 1), _SUBLANE)
    if Np_small <= _N_BLOCK:
        n_block, Np, num_n_blocks = Np_small, Np_small, 1
    else:
        n_block = _N_BLOCK
        Np = _round_up(N, _N_BLOCK)
        num_n_blocks = Np // _N_BLOCK

    def pad2(x, r, c, dt=f32):
        x = jnp.asarray(x, f32)
        return jnp.pad(x, ((0, r - x.shape[0]), (0, c - x.shape[1]))).astype(dt)

    node_p = pad2(node_embs, Np, Hp)                       # f32 (residual path)
    # node_lin precomputed in the wrapper: plain XLA GEMM, removes the in-kernel
    # prologue and one resident weight.
    node_lin = jnp.asarray(node_embs, f32) @ jnp.asarray(params["w_node_lin"], f32)
    node_lin_p = pad2(node_lin, Np, Fp, dot_dtype)
    eemb_p = pad2(edge_embs, Ep, Gp, dot_dtype)

    # Padded edges: weight >= cutoff -> cosine cutoff zeros them out;
    # index -1 -> never matches any node row in the one-hot iota.
    ew_p = jnp.full((Ep, 1), 2.0 * float(cutoff_val), f32)
    ew_p = ew_p.at[:E, 0].set(edge_weights.astype(f32))
    idx_base = jnp.full((1, Ep), -1, jnp.int32)
    is_p = idx_base.at[0, :E].set(edge_index[0].astype(jnp.int32))
    js_p = idx_base.at[0, :E].set(edge_index[1].astype(jnp.int32))

    w_e1 = pad2(params["w_e1"], Gp, Fp, dot_dtype)
    b_e1 = pad2(params["b_e1"], 1, Fp)
    w_e2 = pad2(params["w_e2"], Fp, Fp, dot_dtype)
    b_e2 = pad2(params["b_e2"], 1, Fp)
    w_n1 = pad2(params["w_n1"], Fp, Hp, dot_dtype)
    b_n1 = pad2(params["b_n1"], 1, Hp)
    w_n2 = pad2(params["w_n2"], Hp, Hp, dot_dtype)
    b_n2 = pad2(params["b_n2"], 1, Hp)

    def full_spec(shape):
        return pl.BlockSpec(shape, lambda e: (0, 0))

    in_specs = [
        full_spec((Np, Hp)),                                    # node_embs (resident)
        full_spec((Np, Fp)),                                    # node_lin  (resident)
        pl.BlockSpec((1, e_tile), lambda e: (0, e)),            # node_is  (lane-dense)
        pl.BlockSpec((1, e_tile), lambda e: (0, e)),            # node_js  (lane-dense)
        pl.BlockSpec((e_tile, Gp), lambda e: (e, 0)),           # edge_embs tile
        pl.BlockSpec((e_tile, 1), lambda e: (e, 0)),            # edge_weights tile
        full_spec((Gp, Fp)), full_spec((1, Fp)),                # edge MLP layer 1
        full_spec((Fp, Fp)), full_spec((1, Fp)),                # edge MLP layer 2
        full_spec((Fp, Hp)), full_spec((1, Hp)),                # node MLP layer 1
        full_spec((Hp, Hp)), full_spec((1, Hp)),                # node MLP layer 2
    ]
    out_specs = (
        pl.BlockSpec((Np, Hp), lambda e: (0, 0)),               # node out (accumulator-resident)
        pl.BlockSpec((e_tile, Fp), lambda e: (e, 0)),           # edge out tile (lane-dense store)
    )

    # ---- VMEM budget: actual working set + 25% headroom, clamped so we never
    # claim all of v7x's 64 MiB physical VMEM.  (Re-derive tile sizes if this
    # ever approaches the cap.)
    isz = jnp.dtype(dot_dtype).itemsize
    resident = (4 * Np * Hp + isz * Np * Fp
                + isz * (Gp * Fp + Fp * Fp + Fp * Hp + Hp * Hp)
                + 4 * _SUBLANE * (2 * Fp + 2 * Hp))
    streamed = (isz * e_tile * Gp + 4 * e_tile * _LANE
                + 2 * 4 * _SUBLANE * e_tile + 4 * e_tile * Fp)
    out_resident = 4 * Np * Hp
    scratch = 4 * (Np * Fp + e_tile * Fp)
    interm = isz * 2 * n_block * e_tile + 4 * 3 * e_tile * Fp
    est = 2 * (resident + streamed + out_resident) + scratch + interm
    vmem_limit = int(min(max(est * 1.25, 16 << 20), 48 << 20))

    flops = (2 * Ep * Gp * Fp + 2 * Ep * Fp * Fp      # edge MLP
             + 4 * Ep * Np * Fp                        # one-hot gather + scatter
             + 2 * Np * Fp * Hp + 2 * Np * Hp * Hp)    # node MLP
    transcendentals = 2 * (Ep * Fp + Np * Hp) + Ep
    bytes_accessed = (4 * (2 * Np * Hp + Ep * Fp + 3 * Ep + 2 * Fp + 2 * Hp)
                      + isz * (Np * Fp + Ep * Gp
                               + Gp * Fp + Fp * Fp + Fp * Hp + Hp * Hp))

    out = pl.pallas_call(
        functools.partial(_schnet_update_kernel, float(cutoff_val),
                          n_block, num_n_blocks, dot_dtype),
        out_shape=(
            jax.ShapeDtypeStruct((Np, Hp), f32),     # updated node embs (padded)
            jax.ShapeDtypeStruct((Ep, Fp), f32),     # updated edge embs (padded)
        ),
        grid_spec=pltpu.PrefetchScalarGridSpec(
            num_scalar_prefetch=0,
            grid=(num_e_tiles,),
            in_specs=in_specs,
            out_specs=out_specs,
            scratch_shapes=[
                pltpu.VMEM((Np, Fp), f32),       # scatter-add accumulator
                pltpu.VMEM((e_tile, Fp), f32),   # gather accumulator (N-blocked path)
            ],
        ),
        compiler_params=pltpu.CompilerParams(
            # E axis carries the scatter accumulator -> must be "arbitrary".
            dimension_semantics=("arbitrary",),
            vmem_limit_bytes=vmem_limit,
        ),
        cost_estimate=pl.CostEstimate(flops=flops,
                                      transcendentals=transcendentals,
                                      bytes_accessed=bytes_accessed),
    )(node_p, node_lin_p, is_p, js_p, eemb_p, ew_p,
      w_e1, b_e1, w_e2, b_e2, w_n1, b_n1, w_n2, b_n2)

    node_out, edge_out = out
    return node_out[:N, :h_nf], edge_out[:E, :n_filters]


def _reference(node_embs, edge_index, edge_embs, edge_weights, params, cutoff_val):
    """Plain-JAX reference mirroring the PyTorch forward."""
    node_is, node_js = edge_index[0], edge_index[1]
    N = node_embs.shape[0]
    node_lin = node_embs @ params["w_node_lin"]
    cutoff = 0.5 * (jnp.cos(edge_weights * math.pi / cutoff_val) + 1.0)
    cutoff = cutoff * (edge_weights < cutoff_val).astype(jnp.float32)
    h = edge_embs @ params["w_e1"] + params["b_e1"]
    h = jax.nn.softplus(h) - math.log(2.0)
    h = h @ params["w_e2"] + params["b_e2"]
    W = h * cutoff[:, None]
    edge_new = node_lin[node_is] * W
    node_agg = jnp.zeros((N, W.shape[1]), jnp.float32).at[node_js].add(edge_new)
    g = node_agg @ params["w_n1"] + params["b_n1"]
    g = jax.nn.softplus(g) - math.log(2.0)
    g = g @ params["w_n2"] + params["b_n2"]
    return node_embs + g, edge_new


if __name__ == "__main__":
    # Small shapes consistent with the module.
    N, E = 32, 64
    h_nf, n_filters, n_gaussians = 32, 32, 16
    cutoff_val = 0.5

    key = jax.random.PRNGKey(0)
    keys = jax.random.split(key, 16)

    node_embs = jax.random.normal(keys[0], (N, h_nf), jnp.float32)
    edge_index = jax.random.randint(keys[1], (2, E), 0, N, jnp.int32)
    edge_embs = jax.random.normal(keys[2], (E, n_gaussians), jnp.float32)
    edge_weights = jax.random.uniform(keys[3], (E,), jnp.float32, 0.0, 1.0)

    def lin_w(k, fan_in, fan_out):
        bound = 1.0 / math.sqrt(fan_in)
        return jax.random.uniform(k, (fan_in, fan_out), jnp.float32, -bound, bound)

    def lin_b(k, fan_in, fan_out):
        bound = 1.0 / math.sqrt(fan_in)
        return jax.random.uniform(k, (1, fan_out), jnp.float32, -bound, bound)

    params = {
        "w_node_lin": lin_w(keys[4], h_nf, n_filters),
        "w_e1": lin_w(keys[5], n_gaussians, n_filters),
        "b_e1": lin_b(keys[6], n_gaussians, n_filters),
        "w_e2": lin_w(keys[7], n_filters, n_filters),
        "b_e2": lin_b(keys[8], n_filters, n_filters),
        "w_n1": lin_w(keys[9], n_filters, h_nf),
        "b_n1": lin_b(keys[10], n_filters, h_nf),
        "w_n2": lin_w(keys[11], h_nf, h_nf),
        "b_n2": lin_b(keys[12], h_nf, h_nf),
    }

    node_out, edge_out = schnet_update(node_embs, edge_index, edge_embs,
                                       edge_weights, params, cutoff_val)
    jax.block_until_ready((node_out, edge_out))

    ref_node, ref_edge = _reference(node_embs, edge_index, edge_embs,
                                    edge_weights, params, cutoff_val)
    assert jnp.allclose(node_out, ref_node, atol=1e-4, rtol=1e-4)
    assert jnp.allclose(edge_out, ref_edge, atol=1e-4, rtol=1e-4)

    print("KERNEL_OK")
</pallas_src>

<mosaic_0001>
module attributes {stable_mosaic.version = 11 : i64} {
  func.func @_schnet_update_kernel(%arg0: i32, %arg1: memref<32x128xf32, #tpu.memory_space<vmem>>, %arg2: memref<32x128xf32, #tpu.memory_space<vmem>>, %arg3: memref<1x128xi32, #tpu.memory_space<vmem>>, %arg4: memref<1x128xi32, #tpu.memory_space<vmem>>, %arg5: memref<128x128xf32, #tpu.memory_space<vmem>>, %arg6: memref<128x1xf32, #tpu.memory_space<vmem>>, %arg7: memref<128x128xf32, #tpu.memory_space<vmem>>, %arg8: memref<1x128xf32, #tpu.memory_space<vmem>>, %arg9: memref<128x128xf32, #tpu.memory_space<vmem>>, %arg10: memref<1x128xf32, #tpu.memory_space<vmem>>, %arg11: memref<128x128xf32, #tpu.memory_space<vmem>>, %arg12: memref<1x128xf32, #tpu.memory_space<vmem>>, %arg13: memref<128x128xf32, #tpu.memory_space<vmem>>, %arg14: memref<1x128xf32, #tpu.memory_space<vmem>>, %arg15: memref<32x128xf32, #tpu.memory_space<vmem>>, %arg16: memref<128x128xf32, #tpu.memory_space<vmem>>, %arg17: memref<32x128xf32, #tpu.memory_space<vmem>>, %arg18: memref<128x128xf32, #tpu.memory_space<vmem>>) attributes {dimension_semantics = [#tpu.dimension_semantics<arbitrary>], iteration_bounds = array<i64: 1>, scalar_prefetch = 0 : i64, scratch_operands = 2 : i64, tpu.core_type = #tpu.core_type<tc>, window_params = [{pipeline_mode = #tpu.pipeline_mode<synchronous>, transform_indices = @transform_0, window_bounds = array<i64: 32, 128>}, {pipeline_mode = #tpu.pipeline_mode<synchronous>, transform_indices = @transform_1, window_bounds = array<i64: 32, 128>}, {transform_indices = @transform_2, window_bounds = array<i64: 1, 128>}, {transform_indices = @transform_3, window_bounds = array<i64: 1, 128>}, {transform_indices = @transform_4, window_bounds = array<i64: 128, 128>}, {transform_indices = @transform_5, window_bounds = array<i64: 128, 1>}, {pipeline_mode = #tpu.pipeline_mode<synchronous>, transform_indices = @transform_6, window_bounds = array<i64: 128, 128>}, {pipeline_mode = #tpu.pipeline_mode<synchronous>, transform_indices = @transform_7, window_bounds = array<i64: 1, 128>}, {pipeline_mode = #tpu.pipeline_mode<synchronous>, transform_indices = @transform_8, window_bounds = array<i64: 128, 128>}, {pipeline_mode = #tpu.pipeline_mode<synchronous>, transform_indices = @transform_9, window_bounds = array<i64: 1, 128>}, {pipeline_mode = #tpu.pipeline_mode<synchronous>, transform_indices = @transform_10, window_bounds = array<i64: 128, 128>}, {pipeline_mode = #tpu.pipeline_mode<synchronous>, transform_indices = @transform_11, window_bounds = array<i64: 1, 128>}, {pipeline_mode = #tpu.pipeline_mode<synchronous>, transform_indices = @transform_12, window_bounds = array<i64: 128, 128>}, {pipeline_mode = #tpu.pipeline_mode<synchronous>, transform_indices = @transform_13, window_bounds = array<i64: 1, 128>}, {pipeline_mode = #tpu.pipeline_mode<synchronous>, transform_indices = @transform_14, window_bounds = array<i64: 32, 128>}, {transform_indices = @transform_15, window_bounds = array<i64: 128, 128>}]} {
    %c0_i32 = arith.constant 0 : i32
    %0 = arith.cmpi eq, %arg0, %c0_i32 : i32
    %1 = arith.extui %0 : i1 to i32
    %c0_i32_0 = arith.constant 0 : i32
    %2 = arith.cmpi ne, %1, %c0_i32_0 : i32
    scf.if %2 {
      %cst_36 = arith.constant 0.000000e+00 : f32
      %63 = vector.broadcast %cst_36 : f32 to vector<32x128xf32>
      %c0_37 = arith.constant 0 : index
      %c0_38 = arith.constant 0 : index
      %64 = vector.load %arg17[%c0_37, %c0_38] : memref<32x128xf32, #tpu.memory_space<vmem>>, vector<32x128xf32>
      tpu.vector_store %arg17[%c0_37, %c0_38], %63 {strides = array<i32>} : memref<32x128xf32, #tpu.memory_space<vmem>>, vector<32x128xf32>,
    } else {
    }
    %c0 = arith.constant 0 : index
    %c0_1 = arith.constant 0 : index
    %3 = vector.load %arg6[%c0, %c0_1] : memref<128x1xf32, #tpu.memory_space<vmem>>, vector<128x1xf32>
    %cst = arith.constant 6.28318548 : f32
    %4 = vector.broadcast %cst : f32 to vector<128x1xf32>
    %5 = arith.mulf %3, %4 : vector<128x1xf32>
    %6 = math.cos %5 : vector<128x1xf32>
    %cst_2 = arith.constant 1.000000e+00 : f32
    %7 = vector.broadcast %cst_2 : f32 to vector<128x1xf32>
    %8 = arith.addf %6, %7 : vector<128x1xf32>
    %cst_3 = arith.constant 5.000000e-01 : f32
    %9 = vector.broadcast %cst_3 : f32 to vector<128x1xf32>
    %10 = arith.mulf %9, %8 : vector<128x1xf32>
    %cst_4 = arith.constant 5.000000e-01 : f32
    %11 = vector.broadcast %cst_4 : f32 to vector<128x1xf32>
    %12 = arith.cmpf olt, %3, %11 : vector<128x1xf32>
    %13 = arith.extui %12 : vector<128x1xi1> to vector<128x1xi32>
    %14 = arith.sitofp %13 : vector<128x1xi32> to vector<128x1xf32>
    %15 = arith.mulf %10, %14 : vector<128x1xf32>
    %c0_5 = arith.constant 0 : index
    %c0_6 = arith.constant 0 : index
    %16 = vector.load %arg5[%c0_5, %c0_6] : memref<128x128xf32, #tpu.memory_space<vmem>>, vector<128x128xf32>
    %c0_7 = arith.constant 0 : index
    %c0_8 = arith.constant 0 : index
    %17 = vector.load %arg7[%c0_7, %c0_8] : memref<128x128xf32, #tpu.memory_space<vmem>>, vector<128x128xf32>
    %cst_9 = arith.constant dense<0.000000e+00> : vector<128x128xf32>
    %18 = tpu.matmul %16, %17, %cst_9 {dimension_numbers = #tpu.dot_dimension_numbers<[1], [0], [0], [1], [0, 0, 1, 1], [], []>} : vector<128x128xf32>, vector<128x128xf32>, vector<128x128xf32> -> vector<128x128xf32>
    %c0_10 = arith.constant 0 : index
    %c0_11 = arith.constant 0 : index
    %19 = vector.load %arg8[%c0_10, %c0_11] : memref<1x128xf32, #tpu.memory_space<vmem>>, vector<1x128xf32>
    %20 = vector.broadcast %19 : vector<1x128xf32> to vector<128x128xf32>
    %21 = arith.addf %18, %20 : vector<128x128xf32>
    %cst_12 = arith.constant 0.000000e+00 : f32
    %22 = vector.broadcast %cst_12 : f32 to vector<128x128xf32>
    %23 = arith.maximumf %21, %22 : vector<128x128xf32>
    %24 = math.absf %21 : vector<128x128xf32>
    %cst_13 = arith.constant 0.000000e+00 : f32
    %25 = vector.broadcast %cst_13 : f32 to vector<128x128xf32>
    %26 = arith.subf %25, %24 : vector<128x128xf32>
    %27 = math.exp %26 : vector<128x128xf32>
    %28 = math.log1p %27 : vector<128x128xf32>
    %29 = arith.addf %23, %28 : vector<128x128xf32>
    %cst_14 = arith.constant 0.693147182 : f32
    %30 = vector.broadcast %cst_14 : f32 to vector<128x128xf32>
    %31 = arith.subf %29, %30 : vector<128x128xf32>
    %c0_15 = arith.constant 0 : index
    %c0_16 = arith.constant 0 : index
    %32 = vector.load %arg9[%c0_15, %c0_16] : memref<128x128xf32, #tpu.memory_space<vmem>>, vector<128x128xf32>
    %cst_17 = arith.constant dense<0.000000e+00> : vector<128x128xf32>
    %33 = tpu.matmul %31, %32, %cst_17 {dimension_numbers = #tpu.dot_dimension_numbers<[1], [0], [0], [1], [0, 0, 1, 1], [], []>} : vector<128x128xf32>, vector<128x128xf32>, vector<128x128xf32> -> vector<128x128xf32>
    %c0_18 = arith.constant 0 : index
    %c0_19 = arith.constant 0 : index
    %34 = vector.load %arg10[%c0_18, %c0_19] : memref<1x128xf32, #tpu.memory_space<vmem>>, vector<1x128xf32>
    %35 = vector.broadcast %34 : vector<1x128xf32> to vector<128x128xf32>
    %36 = arith.addf %33, %35 : vector<128x128xf32>
    %37 = vector.broadcast %15 : vector<128x1xf32> to vector<128x128xf32>
    %38 = arith.mulf %36, %37 : vector<128x128xf32>
    %39 = tpu.iota {dimensions = array<i32: 0>} : vector<32x1xi32>
    %c0_20 = arith.constant 0 : index
    %c0_21 = arith.constant 0 : index
    %40 = vector.load %arg3[%c0_20, %c0_21] : memref<1x128xi32, #tpu.memory_space<vmem>>, vector<1x128xi32>
    %41 = vector.broadcast %40 : vector<1x128xi32> to vector<32x128xi32>
    %42 = vector.broadcast %39 : vector<32x1xi32> to vector<32x128xi32>
    %43 = arith.cmpi eq, %41, %42 : vector<32x128xi32>
    %44 = arith.extui %43 : vector<32x128xi1> to vector<32x128xi32>
    %45 = arith.sitofp %44 : vector<32x128xi32> to vector<32x128xf32>
    %c0_22 = arith.constant 0 : index
    %c0_23 = arith.constant 0 : index
    %46 = vector.load %arg2[%c0_22, %c0_23] : memref<32x128xf32, #tpu.memory_space<vmem>>, vector<32x128xf32>
    %cst_24 = arith.constant dense<0.000000e+00> : vector<128x128xf32>
    %47 = tpu.matmul %45, %46, %cst_24 {dimension_numbers = #tpu.dot_dimension_numbers<[0], [0], [1], [1], [0, 1, 1, 1], [], []>} : vector<32x128xf32>, vector<32x128xf32>, vector<128x128xf32> -> vector<128x128xf32>
    %48 = arith.mulf %47, %38 : vector<128x128xf32>
    %c0_25 = arith.constant 0 : index
    %c0_26 = arith.constant 0 : index
    %49 = vector.load %arg16[%c0_25, %c0_26] : memref<128x128xf32, #tpu.memory_space<vmem>>, vector<128x128xf32>
    tpu.vector_store %arg16[%c0_25, %c0_26], %48 {strides = array<i32>} : memref<128x128xf32, #tpu.memory_space<vmem>>, vector<128x128xf32>,
    %c0_27 = arith.constant 0 : index
    %c0_28 = arith.constant 0 : index
    %50 = vector.load %arg4[%c0_27, %c0_28] : memref<1x128xi32, #tpu.memory_space<vmem>>, vector<1x128xi32>
    %51 = vector.broadcast %50 : vector<1x128xi32> to vector<32x128xi32>
    %52 = vector.broadcast %39 : vector<32x1xi32> to vector<32x128xi32>
    %53 = arith.cmpi eq, %51, %52 : vector<32x128xi32>
    %54 = arith.extui %53 : vector<32x128xi1> to vector<32x128xi32>
    %55 = arith.sitofp %54 : vector<32x128xi32> to vector<32x128xf32>
    %c0_29 = arith.constant 0 : index
    %c0_30 = arith.constant 0 : index
    %56 = vector.load %arg17[%c0_29, %c0_30] : memref<32x128xf32, #tpu.memory_space<vmem>>, vector<32x128xf32>
    %cst_31 = arith.constant dense<0.000000e+00> : vector<32x128xf32>
    %57 = tpu.matmul %55, %48, %cst_31 {dimension_numbers = #tpu.dot_dimension_numbers<[1], [0], [0], [1], [0, 0, 1, 1], [], []>} : vector<32x128xf32>, vector<128x128xf32>, vector<32x128xf32> -> vector<32x128xf32>
    %58 = arith.addf %56, %57 : vector<32x128xf32>
    %c0_32 = arith.constant 0 : index
    %c0_33 = arith.constant 0 : index
    %59 = vector.load %arg17[%c0_32, %c0_33] : memref<32x128xf32, #tpu.memory_space<vmem>>, vector<32x128xf32>
    tpu.vector_store %arg17[%c0_32, %c0_33], %58 {strides = array<i32>} : memref<32x128xf32, #tpu.memory_space<vmem>>, vector<32x128xf32>,
    %c0_i32_34 = arith.constant 0 : i32
    %60 = arith.cmpi eq, %arg0, %c0_i32_34 : i32
    %61 = arith.extui %60 : i1 to i32
    %c0_i32_35 = arith.constant 0 : i32
    %62 = arith.cmpi ne, %61, %c0_i32_35 : i32
    scf.if %62 {
      %c0_36 = arith.constant 0 : index
      %c0_37 = arith.constant 0 : index
      %63 = vector.load %arg17[%c0_36, %c0_37] : memref<32x128xf32, #tpu.memory_space<vmem>>, vector<32x128xf32>
      %c0_38 = arith.constant 0 : index
      %c0_39 = arith.constant 0 : index
      %64 = vector.load %arg11[%c0_38, %c0_39] : memref<128x128xf32, #tpu.memory_space<vmem>>, vector<128x128xf32>
      %cst_40 = arith.constant dense<0.000000e+00> : vector<32x128xf32>
      %65 = tpu.matmul %63, %64, %cst_40 {dimension_numbers = #tpu.dot_dimension_numbers<[1], [0], [0], [1], [0, 0, 1, 1], [], []>} : vector<32x128xf32>, vector<128x128xf32>, vector<32x128xf32> -> vector<32x128xf32>
      %c0_41 = arith.constant 0 : index
      %c0_42 = arith.constant 0 : index
      %66 = vector.load %arg12[%c0_41, %c0_42] : memref<1x128xf32, #tpu.memory_space<vmem>>, vector<1x128xf32>
      %67 = vector.broadcast %66 : vector<1x128xf32> to vector<32x128xf32>
      %68 = arith.addf %65, %67 : vector<32x128xf32>
      %cst_43 = arith.constant 0.000000e+00 : f32
      %69 = vector.broadcast %cst_43 : f32 to vector<32x128xf32>
      %70 = arith.maximumf %68, %69 : vector<32x128xf32>
      %71 = math.absf %68 : vector<32x128xf32>
      %cst_44 = arith.constant 0.000000e+00 : f32
      %72 = vector.broadcast %cst_44 : f32 to vector<32x128xf32>
      %73 = arith.subf %72, %71 : vector<32x128xf32>
      %74 = math.exp %73 : vector<32x128xf32>
      %75 = math.log1p %74 : vector<32x128xf32>
      %76 = arith.addf %70, %75 : vector<32x128xf32>
      %cst_45 = arith.constant 0.693147182 : f32
      %77 = vector.broadcast %cst_45 : f32 to vector<32x128xf32>
      %78 = arith.subf %76, %77 : vector<32x128xf32>
      %c0_46 = arith.constant 0 : index
      %c0_47 = arith.constant 0 : index
      %79 = vector.load %arg13[%c0_46, %c0_47] : memref<128x128xf32, #tpu.memory_space<vmem>>, vector<128x128xf32>
      %cst_48 = arith.constant dense<0.000000e+00> : vector<32x128xf32>
      %80 = tpu.matmul %78, %79, %cst_48 {dimension_numbers = #tpu.dot_dimension_numbers<[1], [0], [0], [1], [0, 0, 1, 1], [], []>} : vector<32x128xf32>, vector<128x128xf32>, vector<32x128xf32> -> vector<32x128xf32>
      %c0_49 = arith.constant 0 : index
      %c0_50 = arith.constant 0 : index
      %81 = vector.load %arg14[%c0_49, %c0_50] : memref<1x128xf32, #tpu.memory_space<vmem>>, vector<1x128xf32>
      %82 = vector.broadcast %81 : vector<1x128xf32> to vector<32x128xf32>
      %83 = arith.addf %80, %82 : vector<32x128xf32>
      %c0_51 = arith.constant 0 : index
      %c0_52 = arith.constant 0 : index
      %84 = vector.load %arg1[%c0_51, %c0_52] : memref<32x128xf32, #tpu.memory_space<vmem>>, vector<32x128xf32>
      %85 = arith.addf %84, %83 : vector<32x128xf32>
      %c0_53 = arith.constant 0 : index
      %c0_54 = arith.constant 0 : index
      %86 = vector.load %arg15[%c0_53, %c0_54] : memref<32x128xf32, #tpu.memory_space<vmem>>, vector<32x128xf32>
      tpu.vector_store %arg15[%c0_53, %c0_54], %85 {strides = array<i32>} : memref<32x128xf32, #tpu.memory_space<vmem>>, vector<32x128xf32>,
    } else {
    }
    return
  }
  func.func @transform_0(%arg0: i32) -> (i32, i32) {
    %c0_i32 = arith.constant 0 : i32
    %c0_i32_0 = arith.constant 0 : i32
    %c0_i32_1 = arith.constant 0 : i32
    return %c0_i32, %c0_i32_0 : i32, i32
  }
  func.func @transform_1(%arg0: i32) -> (i32, i32) {
    %c0_i32 = arith.constant 0 : i32
    %c0_i32_0 = arith.constant 0 : i32
    %c0_i32_1 = arith.constant 0 : i32
    return %c0_i32, %c0_i32_0 : i32, i32
  }
  func.func @transform_2(%arg0: i32) -> (i32, i32) {
    %c0_i32 = arith.constant 0 : i32
    %c0_i32_0 = arith.constant 0 : i32
    return %c0_i32, %arg0 : i32, i32
  }
  func.func @transform_3(%arg0: i32) -> (i32, i32) {
    %c0_i32 = arith.constant 0 : i32
    %c0_i32_0 = arith.constant 0 : i32
    return %c0_i32, %arg0 : i32, i32
  }
  func.func @transform_4(%arg0: i32) -> (i32, i32) {
    %c0_i32 = arith.constant 0 : i32
    %c0_i32_0 = arith.constant 0 : i32
    return %arg0, %c0_i32 : i32, i32
  }
  func.func @transform_5(%arg0: i32) -> (i32, i32) {
    %c0_i32 = arith.constant 0 : i32
    %c0_i32_0 = arith.constant 0 : i32
    return %arg0, %c0_i32 : i32, i32
  }
  func.func @transform_6(%arg0: i32) -> (i32, i32) {
    %c0_i32 = arith.constant 0 : i32
    %c0_i32_0 = arith.constant 0 : i32
    %c0_i32_1 = arith.constant 0 : i32
    return %c0_i32, %c0_i32_0 : i32, i32
  }
  func.func @transform_7(%arg0: i32) -> (i32, i32) {
    %c0_i32 = arith.constant 0 : i32
    %c0_i32_0 = arith.constant 0 : i32
    %c0_i32_1 = arith.constant 0 : i32
    return %c0_i32, %c0_i32_0 : i32, i32
  }
  func.func @transform_8(%arg0: i32) -> (i32, i32) {
    %c0_i32 = arith.constant 0 : i32
    %c0_i32_0 = arith.constant 0 : i32
    %c0_i32_1 = arith.constant 0 : i32
    return %c0_i32, %c0_i32_0 : i32, i32
  }
  func.func @transform_9(%arg0: i32) -> (i32, i32) {
    %c0_i32 = arith.constant 0 : i32
    %c0_i32_0 = arith.constant 0 : i32
    %c0_i32_1 = arith.constant 0 : i32
    return %c0_i32, %c0_i32_0 : i32, i32
  }
  func.func @transform_10(%arg0: i32) -> (i32, i32) {
    %c0_i32 = arith.constant 0 : i32
    %c0_i32_0 = arith.constant 0 : i32
    %c0_i32_1 = arith.constant 0 : i32
    return %c0_i32, %c0_i32_0 : i32, i32
  }
  func.func @transform_11(%arg0: i32) -> (i32, i32) {
    %c0_i32 = arith.constant 0 : i32
    %c0_i32_0 = arith.constant 0 : i32
    %c0_i32_1 = arith.constant 0 : i32
    return %c0_i32, %c0_i32_0 : i32, i32
  }
  func.func @transform_12(%arg0: i32) -> (i32, i32) {
    %c0_i32 = arith.constant 0 : i32
    %c0_i32_0 = arith.constant 0 : i32
    %c0_i32_1 = arith.constant 0 : i32
    return %c0_i32, %c0_i32_0 : i32, i32
  }
  func.func @transform_13(%arg0: i32) -> (i32, i32) {
    %c0_i32 = arith.constant 0 : i32
    %c0_i32_0 = arith.constant 0 : i32
    %c0_i32_1 = arith.constant 0 : i32
    return %c0_i32, %c0_i32_0 : i32, i32
  }
  func.func @transform_14(%arg0: i32) -> (i32, i32) {
    %c0_i32 = arith.constant 0 : i32
    %c0_i32_0 = arith.constant 0 : i32
    %c0_i32_1 = arith.constant 0 : i32
    return %c0_i32, %c0_i32_0 : i32, i32
  }
  func.func @transform_15(%arg0: i32) -> (i32, i32) {
    %c0_i32 = arith.constant 0 : i32
    %c0_i32_0 = arith.constant 0 : i32
    return %arg0, %c0_i32 : i32, i32
  }
}

</mosaic_0001>

<bundles_post_ra>
// kernel: tpu_custom_call.1
= control target key start
LH: loop header
LB: loop body
LE: loop exit
PB: predicated region body
PF: predicated region fallthrough
CT: control target
= control target key end

     0   :  { %21 = vsyncpa [#allocation5], 0  ;;  %s6710_s0 = inlined_call_operand.hbm [shape: f32[32,128], index: 0, kind: input, shape index: {}]   ;;  %s6711_s1 = inlined_call_operand.hbm [shape: f32[32,128], index: 1, kind: input, shape index: {}]   ;;  %s6712_s2 = inlined_call_operand.vmem [shape: s32[1,128], index: 2, kind: input, shape index: {}]   ;;  %s6713_s3 = inlined_call_operand.vmem [shape: s32[1,128], index: 3, kind: input, shape index: {}]   ;;  %s6714_s4 = inlined_call_operand.vmem [shape: f32[128,128], index: 4, kind: input, shape index: {}]   ;;  %s6715_s5 = inlined_call_operand.vmem [shape: f32[128,1], index: 5, kind: input, shape index: {}]   ;;  %s6716_s6 = inlined_call_operand.hbm [shape: f32[128,128], index: 6, kind: input, shape index: {}]   ;;  %s6717_s7 = inlined_call_operand.vmem [shape: f32[1,128], index: 7, kind: input, shape index: {}]   ;;  %s6718_s8 = inlined_call_operand.hbm [shape: f32[128,128], index: 8, kind: input, shape index: {}]   ;;  %s6719_s9 = inlined_call_operand.vmem [shape: f32[1,128], index: 9, kind: input, shape index: {}]   ;;  %s6720_s10 = inlined_call_operand.hbm [shape: f32[128,128], index: 10, kind: input, shape index: {}]   ;;  %s6721_s11 = inlined_call_operand.vmem [shape: f32[1,128], index: 11, kind: input, shape index: {}]   ;;  %s6722_s12 = inlined_call_operand.hbm [shape: f32[128,128], index: 12, kind: input, shape index: {}]   ;;  %s6723_s13 = inlined_call_operand.vmem [shape: f32[1,128], index: 13, kind: input, shape index: {}]   ;;  %s6724_s14 = inlined_call_operand.hbm [shape: f32[32,128], index: 14, kind: output, shape index: {0}]   ;;  %s6725_s15 = inlined_call_operand.hbm [shape: f32[128,128], index: 15, kind: output, shape index: {1}]  }
   0x1   :  { %22 = vsyncpa [#allocation8], 0 }
   0x2   :  { %23 = vsyncpa [#allocation11], 0 }
   0x3   :  { %24 = vsyncpa [#allocation14], 0 }
   0x4   :  { %25 = vsyncpa [#allocation6], 0 }
   0x5   :  { %26 = vsyncpa [#allocation17], 0  ;;  %s4478_s18 = smov [#allocation7]   ;;  %s4479_s20 = smov [#allocation10]  }
   0x6   :  { %s44_s19 = sshll.u32 %s4478_s18, 4  ;;  %s78_s21 = sshll.u32 %s4479_s20, 4  ;;  %s45_s19 = int_to_ptr.vmem [resolvable:$true] %s44_s19  ;;  %s4577_s21 = int_to_ptr.vmem [resolvable:$true] %s78_s21 }
   0x7   :  { %s4290_s24 = scalar_lea.hbm %s6711_s1, 512 }
   0x8   :  { %p4291_p0 = scmp.ne.s32.totalorder %s6711_s1, %s4290_s24  ;;  %p4294_p1 = scmp.lt.u32.totalorder %s4290_s24, %s6711_s1 }
   0xa   :  { %p4296_p2 = pnand %p4294_p1, %p4291_p0 }
   0xc   :  { %4299 = shalt.err (!%p4296_p2)
}
   0xd   :  { %s4300_s29 = scalar_lea.vmem %s45_s19, 512  ;;  %p4305_p4 = scmp.lt.s32.totalorder %s45_s19, %s45_s19 }
   0xe   :  { %p4301_p3 = scmp.ne.s32.totalorder %s45_s19, %s4300_s29  ;;  %p4306_p5 = scmp.lt.s32.totalorder %s4300_s29, %s4300_s29 }
  0x10   :  { %p4307_p6 = por %p4306_p5, %p4305_p4 }
  0x12   :  { %p4308_p7 = pnand %p4307_p6, %p4301_p3 }
  0x14   :  { %4311 = shalt.err (!%p4308_p7)
}
  0x15   :  { %s4480_s30 = smov 128   ;;  %s4481_s16 = smov 8  }
  0x16   :  { %50 = dma.hbm_to_vmem [thread:$0]  %s6711_s1, 512, %s45_s19, [#allocation8], %s4480_s30, %s4480_s30, %s4481_s16  }
  0x17   :  { %s4312_s23 = scalar_lea.hbm %s6718_s8, 2048 }
  0x18   :  { %p4313_p8 = scmp.ne.s32.totalorder %s6718_s8, %s4312_s23  ;;  %p4316_p9 = scmp.lt.u32.totalorder %s4312_s23, %s6718_s8 }
  0x1a   :  { %p4318_p10 = pnand %p4316_p9, %p4313_p8 }
  0x1c   :  { %4321 = shalt.err (!%p4318_p10)
}
  0x1d   :  { %s4322_s28 = scalar_lea.vmem %s4577_s21, 2048  ;;  %p4327_p12 = scmp.lt.s32.totalorder %s4577_s21, %s4577_s21 }
  0x1e   :  { %p4323_p11 = scmp.ne.s32.totalorder %s4577_s21, %s4322_s28  ;;  %p4328_p13 = scmp.lt.s32.totalorder %s4322_s28, %s4322_s28 }
  0x20   :  { %p4329_p0 = por %p4328_p13, %p4327_p12 }
  0x22   :  { %p4330_p1 = pnand %p4329_p0, %p4323_p11 }
  0x24   :  { %4333 = shalt.err (!%p4330_p1)
}
  0x25   :  { %84 = dma.hbm_to_vmem [thread:$0]  %s6718_s8, 2048, %s4577_s21, [#allocation11], %s4480_s30, %s4480_s30, %s4481_s16  }
  0x26   :  { %s4482_s29 = smov [#allocation4]   ;;  %s4483_s18 = smov [#allocation9]  }
  0x27   :  { %s32_s17 = sshll.u32 %s4482_s29, 4  ;;  %s64_s20 = sshll.u32 %s4483_s18, 4  ;;  %s33_s17 = int_to_ptr.vmem [resolvable:$true] %s32_s17  ;;  %s4614_s20 = int_to_ptr.vmem [resolvable:$true] %s64_s20 }
  0x28   :  { %s4334_s24 = scalar_lea.hbm %s6710_s0, 512 }
  0x29   :  { %p4335_p2 = scmp.ne.s32.totalorder %s6710_s0, %s4334_s24  ;;  %p4338_p3 = scmp.lt.u32.totalorder %s4334_s24, %s6710_s0 }
  0x2b   :  { %p4340_p4 = pnand %p4338_p3, %p4335_p2 }
  0x2d   :  { %4343 = shalt.err (!%p4340_p4)
}
  0x2e   :  { %s4344_s8 = scalar_lea.vmem %s33_s17, 512  ;;  %p4349_p6 = scmp.lt.s32.totalorder %s33_s17, %s33_s17 }
  0x2f   :  { %p4345_p5 = scmp.ne.s32.totalorder %s33_s17, %s4344_s8  ;;  %p4350_p7 = scmp.lt.s32.totalorder %s4344_s8, %s4344_s8 }
  0x31   :  { %p4351_p8 = por %p4350_p7, %p4349_p6 }
  0x33   :  { %p4352_p9 = pnand %p4351_p8, %p4345_p5 }
  0x35   :  { %4355 = shalt.err (!%p4352_p9)
}
  0x36   :  { %38 = dma.hbm_to_vmem [thread:$0]  %s6710_s0, 512, %s33_s17, [#allocation5], %s4480_s30, %s4480_s30, %s4481_s16  }
  0x37   :  { %s4356_s18 = scalar_lea.hbm %s6716_s6, 2048 }
  0x38   :  { %p4357_p10 = scmp.ne.s32.totalorder %s6716_s6, %s4356_s18  ;;  %p4360_p11 = scmp.lt.u32.totalorder %s4356_s18, %s6716_s6 }
  0x3a   :  { %p4362_p12 = pnand %p4360_p11, %p4357_p10 }
  0x3c   :  { %4365 = shalt.err (!%p4362_p12)
}
  0x3d   :  { %s4366_s26 = scalar_lea.vmem %s4614_s20, 2048  ;;  %p4371_p0 = scmp.lt.s32.totalorder %s4614_s20, %s4614_s20 }
  0x3e   :  { %p4367_p13 = scmp.ne.s32.totalorder %s4614_s20, %s4366_s26  ;;  %p4372_p1 = scmp.lt.s32.totalorder %s4366_s26, %s4366_s26 }
  0x40   :  { %p4373_p2 = por %p4372_p1, %p4371_p0 }
  0x42   :  { %p4374_p3 = pnand %p4373_p2, %p4367_p13 }
  0x44   :  { %4377 = shalt.err (!%p4374_p3)
}
  0x45   :  { %70 = dma.hbm_to_vmem [thread:$0]  %s6716_s6, 2048, %s4614_s20, [#allocation8], %s4480_s30, %s4480_s30, %s4481_s16  }
  0x46   :  { %s4484_s27 = smov [#allocation12]   ;;  %s4485_s8 = smov [#allocation13]  }
  0x47   :  { %s92_s28 = sshll.u32 %s4484_s27, 4  ;;  %s106_s21 = sshll.u32 %s4485_s8, 4  ;;  %s93_s28 = int_to_ptr.vmem [resolvable:$true] %s92_s28  ;;  %s4651_s21 = int_to_ptr.vmem [resolvable:$true] %s106_s21 }
  0x48   :  { %s4378_s29 = scalar_lea.hbm %s6720_s10, 2048 }
  0x49   :  { %p4379_p4 = scmp.ne.s32.totalorder %s6720_s10, %s4378_s29  ;;  %p4382_p5 = scmp.lt.u32.totalorder %s4378_s29, %s6720_s10 }
  0x4b   :  { %p4384_p6 = pnand %p4382_p5, %p4379_p4 }
  0x4d   :  { %4387 = shalt.err (!%p4384_p6)
}
  0x4e   :  { %s4388_s6 = scalar_lea.vmem %s93_s28, 2048  ;;  %p4393_p8 = scmp.lt.s32.totalorder %s93_s28, %s93_s28 }
  0x4f   :  { %p4389_p7 = scmp.ne.s32.totalorder %s93_s28, %s4388_s6  ;;  %p4394_p9 = scmp.lt.s32.totalorder %s4388_s6, %s4388_s6 }
  0x51   :  { %p4395_p10 = por %p4394_p9, %p4393_p8 }
  0x53   :  { %p4396_p11 = pnand %p4395_p10, %p4389_p7 }
  0x55   :  { %4399 = shalt.err (!%p4396_p11)
}
  0x56   :  { %98 = dma.hbm_to_vmem [thread:$0]  %s6720_s10, 2048, %s93_s28, [#allocation11], %s4480_s30, %s4480_s30, %s4481_s16  }
  0x57   :  { %s4400_s17 = scalar_lea.hbm %s6722_s12, 2048 }
  0x58   :  { %p4401_p12 = scmp.ne.s32.totalorder %s6722_s12, %s4400_s17  ;;  %p4404_p13 = scmp.lt.u32.totalorder %s4400_s17, %s6722_s12 }
  0x5a   :  { %p4406_p0 = pnand %p4404_p13, %p4401_p12 }
  0x5c   :  { %4409 = shalt.err (!%p4406_p0)
}
  0x5d   :  { %s4410_s29 = scalar_lea.vmem %s4651_s21, 2048  ;;  %p4415_p2 = scmp.lt.s32.totalorder %s4651_s21, %s4651_s21 }
  0x5e   :  { %p4411_p1 = scmp.ne.s32.totalorder %s4651_s21, %s4410_s29  ;;  %p4416_p3 = scmp.lt.s32.totalorder %s4410_s29, %s4410_s29 }
  0x60   :  { %p4417_p4 = por %p4416_p3, %p4415_p2 }
  0x62   :  { %p4418_p5 = pnand %p4417_p4, %p4411_p1 }
  0x64   :  { %4421 = shalt.err (!%p4418_p5)
}
  0x65   :  { %112 = dma.hbm_to_vmem [thread:$0]  %s6722_s12, 2048, %s4651_s21, [#allocation14], %s4480_s30, %s4480_s30, %s4481_s16  }
  0x66   :  { %4466 = dma.done.wait [#allocation5], 512  }
  0x67   :  { %4467 = vsyncadd [#allocation5], 4294966784 }
  0x68   :  { %4468 = dma.done.wait [#allocation8], 2560  }
  0x69   :  { %4469 = vsyncadd [#allocation8], 4294964736 }
  0x6a   :  { %4470 = dma.done.wait [#allocation11], 4096  }
  0x6b   :  { %4471 = vsyncadd [#allocation11], 4294963200 }
  0x6c   :  { %4472 = dma.done.wait [#allocation14], 2048  }
  0x6d   :  { %4473 = vsyncadd [#allocation14], 4294965248  ;;  %v1933_v0 = vld [vmem:[#allocation9] sm:$0xff]  ;;  %v1934_v1 = vld [vmem:[#allocation9 + $0x8] sm:$0xff]  ;;  %v2621_v5 = vlaneseq  ;;  %v6731_v20 = vmov 0.0  }
  0x6e   :  { %v1935_v2 = vld [vmem:[#allocation9 + $0x10] sm:$0xff]  ;;  %v3890_v3 = vpack.c.bf16 %v1934_v1, %v1933_v0  ;;  %v1936_v4 = vld [vmem:[#allocation9 + $0x18] sm:$0xff]  ;;  %v1937_v7 = vld [vmem:[#allocation9 + $0x20] sm:$0xff] }
  0x6f   :  { %v3894_v6 = vpack.c.bf16 %v1936_v4, %v1935_v2  ;;  %v1938_v8 = vld [vmem:[#allocation9 + $0x28] sm:$0xff]  ;;  %v1917_v10 = vld [vmem:[%s6714_s4] sm:$0xff]  ;;  %v4691_v11 = vshrl.u32 %v2621_v5, 7  ;;  %v1939_v12 = vld [vmem:[#allocation9 + $0x30] sm:$0xff] }
  0x70   :  { %3891 = vmatprep.subr.bf16.mxu0 %v3890_v3  ;;  %v3898_v9 = vpack.c.bf16 %v1938_v8, %v1937_v7  ;;  %v1940_v13 = vld [vmem:[#allocation9 + $0x38] sm:$0xff]  ;;  %3664 = vmatprep.mubr.f32.mxu0 %v1917_v10  ;;  %v1941_v16 = vld [vmem:[#allocation9 + $0x40] sm:$0xff]  ;;  %v1942_v17 = vld [vmem:[#allocation9 + $0x48] sm:$0xff]  ;;  %v6737_v7 = vmov 2102212464  }
  0x71   :  { %3893 = vmatpush3.bf16.msra.mxu0 %v3890_v3  ;;  %6754 = vst [vmem:[#allocation24_spill] sm:$0xff] %v4691_v11  ;;  %v4694_v14 = vadd.s32 8, %v4691_v11  ;;  %v3902_v15 = vpack.c.bf16 %v1940_v13, %v1939_v12  ;;  %v3452_v18 = vld [vmem:[%s6712_s2] ss:$0 sm:$0xff]  ;;  %v4702_v19 = vadd.s32 16, %v4691_v11  ;;  %v3906_v22 = vpack.c.bf16 %v1942_v17, %v1941_v16  ;;  %v1943_v23 = vld [vmem:[#allocation9 + $0x50] sm:$0xff] }
  0x72   :  { %3895 = vmatprep.subr.bf16.mxu0 %v3894_v6  ;;  %vm2631_vm0 = vcmp.eq.s32.totalorder %v3452_v18, %v4691_v11  ;;  %v1944_v24 = vld [vmem:[#allocation9 + $0x58] sm:$0xff]  ;;  %v4708_v26 = vadd.s32 24, %v4691_v11  ;;  %v1945_v28 = vld [vmem:[#allocation9 + $0x60] sm:$0xff]  ;;  %v1946_v29 = vld [vmem:[#allocation9 + $0x68] sm:$0xff]  ;;  %v6729_v12 = vmov 683565275  }
  0x73   :  { %6755 = vst [vmem:[#allocation25_spill] sm:$0xff] %v4694_v14  ;;  %vm2632_vm1 = vcmp.eq.s32.totalorder %v3452_v18, %v4694_v14  ;;  %6756 = vst [vmem:[#allocation26_spill] sm:$0xff] %v4702_v19  ;;  %v3453_v21 = vsel %vm2631_vm0, 1.0, %v6731_v20  ;;  %vm2633_vm2 = vcmp.eq.s32.totalorder %v3452_v18, %v4702_v19  ;;  %v3910_v27 = vpack.c.bf16 %v1944_v24, %v1943_v23  ;;  %v1947_v32 = vld [vmem:[#allocation9 + $0x70] sm:$0xff]  ;;  %v1948_v33 = vld [vmem:[#allocation9 + $0x78] sm:$0xff] }
  0x74   :  { %2647 = vxpose.xlu0.b32.start [1/4] (short) %v3453_v21, 128  ;;  %v3454_v25 = vsel %vm2632_vm1, 1.0, %v6731_v20  ;;  %6757 = vst [vmem:[#allocation27_spill] sm:$0xff] %v4708_v26  ;;  %v3455_v30 = vsel %vm2633_vm2, 1.0, %v6731_v20  ;;  %vm2634_vm3 = vcmp.eq.s32.totalorder %v3452_v18, %v4708_v26  ;;  %v3914_v31 = vpack.c.bf16 %v1946_v29, %v1945_v28  ;;  %v1918_v36 = vld [vmem:[%s6714_s4 + $0x8] sm:$0xff]  ;;  %v1919_v37 = vld [vmem:[%s6714_s4 + $0x10] sm:$0xff]  ;;  %v1920_v38 = vld [vmem:[%s6714_s4 + $0x18] sm:$0xff] }
  0x75   :  { %3897 = vmatpush3.bf16.msra.mxu0 %v3894_v6  ;;  %v3456_v34 = vsel %vm2634_vm3, 1.0, %v6731_v20  ;;  %v3918_v35 = vpack.c.bf16 %v1948_v33, %v1947_v32  ;;  %v1921_v39 = vld [vmem:[%s6714_s4 + $0x20] sm:$0xff]  ;;  %v1922_v40 = vld [vmem:[%s6714_s4 + $0x28] sm:$0xff]  ;;  %v1923_v41 = vld [vmem:[%s6714_s4 + $0x30] sm:$0xff]  ;;  %v6739_v18 = vmov 2131351028  }
  0x76   :  { %3899 = vmatprep.subr.bf16.mxu0 %v3898_v9  ;;  %v1924_v42 = vld [vmem:[%s6714_s4 + $0x38] sm:$0xff]  ;;  %v1925_v43 = vld [vmem:[%s6714_s4 + $0x40] sm:$0xff]  ;;  %v1926_v44 = vld [vmem:[%s6714_s4 + $0x48] sm:$0xff]  ;;  %v6735_v28 = vmov 920167782   ;;  %vm2679_vm0 = vcmask 261120  }
  0x77   :  { %v1927_v45 = vld [vmem:[%s6714_s4 + $0x50] sm:$0xff]  ;;  %v1928_v46 = vld [vmem:[%s6714_s4 + $0x58] sm:$0xff]  ;;  %v1929_v47 = vld [vmem:[%s6714_s4 + $0x60] sm:$0xff] }
  0x78   :  { %2648 = vxpose.xlu0.b32.cont [2/4] (short) %v3454_v25, 128  ;;  %v1930_v48 = vld [vmem:[%s6714_s4 + $0x68] sm:$0xff]  ;;  %v1931_v49 = vld [vmem:[%s6714_s4 + $0x70] sm:$0xff]  ;;  %v1932_v50 = vld [vmem:[%s6714_s4 + $0x78] sm:$0xff] }
  0x79   :  { %3901 = vmatpush3.bf16.msra.mxu0 %v3898_v9  ;;  %v4761_v51 = vld [vmem:[%s6715_s5] sm:$0xff]  ;;  %v4770_v55 = vld [vmem:[%s6715_s5 + $0x8] sm:$0xff]  ;;  %v4779_v60 = vld [vmem:[%s6715_s5 + $0x10] sm:$0xff] }
  0x7a   :  { %3903 = vmatprep.subr.bf16.mxu0 %v3902_v15  ;;  %v4764_v52 = vmul.f32 6.2831855, %v4761_v51  ;;  %v4773_v56 = vmul.f32 6.2831855, %v4770_v55  ;;  %v4782_v62 = vmul.f32 6.2831855, %v4779_v60 }
  0x7b   :  { %v4800_v24 = vld [vmem:[%s6715_s5 + $0x18] sm:$0xff] }
  0x7c   :  { %2649 = vxpose.xlu0.b32.cont [3/4] (short) %v3455_v30, 128  ;;  %v176_v53 = vand.u32 2139095040, %v4764_v52  ;;  %v279_v58 = vand.u32 2139095040, %v4773_v56  ;;  %v382_v1 = vand.u32 2139095040, %v4782_v62  ;;  %v173_v6 = vand.u32 2147483647, %v4764_v52 }
  0x7d   :  { %3905 = vmatpush3.bf16.msra.mxu0 %v3902_v15  ;;  %v6727_v15 = vmov 2475754826  }
  0x7e   :  { %3907 = vmatprep.subr.bf16.mxu0 %v3906_v22  ;;  %v177_v54 = vshrl.u32 %v176_v53, 23  ;;  %v280_v61 = vshrl.u32 %v279_v58, 23  ;;  %v4785_v5 = vshrl.u32 %v382_v1, 23  ;;  %v180_v9 = vand.u32 8388607, %v173_v6 }
  0x80   :  { %2650 = vxpose.xlu0.b32.end [4/4] (short) %v3456_v34, 128  ;;  %v3354_v57 = vadd.s32 4294967169, %v177_v54  ;;  %v3358_v0 = vadd.s32 4294967169, %v280_v61  ;;  %v181_v25 = vor.u32 8388608, %v180_v9  ;;  %v6733_v34 = vmov 1326507024  }
  0x81   :  { %3909 = vmatpush3.bf16.msra.mxu0 %v3906_v22 }
  0x82   :  { %3911 = vmatprep.subr.bf16.mxu0 %v3910_v27  ;;  %v183_v59 = vadd.s32 1, %v3354_v57  ;;  %v286_v4 = vadd.s32 1, %v3358_v0 }
  0x84   :  { %vm184_vm4 = vcmp.gt.s32.totalorder %v183_v59, 0  ;;  %vm287_vm9 = vcmp.gt.s32.totalorder %v286_v4, 0 }
  0x85   :  { %3913 = vmatpush3.bf16.msra.mxu0 %v3910_v27  ;;  %v185_v63 = vsel %vm184_vm4, %v183_v59, 0 }
  0x86   :  { %3915 = vmatprep.subr.bf16.mxu0 %v3914_v31  ;;  %v187_v2 = vand.u32 31, %v185_v63  ;;  %v186_v10 = vshrl.u32 %v185_v63, 5 }
  0x88   :  { %v188_v3 = vsub.s32 32, %v187_v2  ;;  %v199_v8 = vshll.u32 %v6737_v7, %v187_v2  ;;  %v190_v13 = vshll.u32 %v6729_v12, %v187_v2  ;;  %v193_v17 = vshll.u32 %v6727_v15, %v187_v2 }
  0x89   :  { %3917 = vmatpush3.bf16.msra.mxu0 %v3914_v31  ;;  %v196_v22 = vshll.u32 %v6739_v18, %v187_v2  ;;  %v202_v30 = vshll.u32 %v6735_v28, %v187_v2  ;;  %vm205_vm5 = vcmp.lt.s32.totalorder %v186_v10, 1  ;;  %vm207_vm6 = vcmp.lt.s32.totalorder %v186_v10, 3 }
  0x8a   :  { %3919 = vmatprep.subr.bf16.mxu0 %v3918_v35  ;;  %v191_v16 = vshrl.u32 %v6727_v15, %v188_v3  ;;  %v194_v21 = vshrl.u32 %v6739_v18, %v188_v3  ;;  %v197_v23 = vshrl.u32 %v6737_v7, %v188_v3  ;;  %v200_v29 = vshrl.u32 %v6735_v28, %v188_v3 }
  0x8b   :  { %vm206_vm7 = vcmp.lt.s32.totalorder %v186_v10, 2  ;;  %vm208_vm8 = vcmp.lt.s32.totalorder %v186_v10, 4  ;;  %v3362_v10 = vadd.s32 4294967169, %v4785_v5 }
  0x8c   :  { %v192_v27 = vor.u32 %v191_v16, %v190_v13  ;;  %v195_v31 = vor.u32 %v194_v21, %v193_v17  ;;  %v198_v32 = vor.u32 %v197_v23, %v196_v22  ;;  %v201_v33 = vor.u32 %v200_v29, %v199_v8 }
  0x8d   :  { %3921 = vmatpush3.bf16.msra.mxu0 %v3918_v35  ;;  %v203_v35 = vshrl.u32 %v6733_v34, %v188_v3 }
  0x90   :  { %3665 = vmatmul.mubr.f32.vlgmr.msra.gmra.mrb[0].mxu0 %v1918_v36  ;;  %v4806_v36 = vmul.f32 6.2831855, %v4800_v24 }
  0x91   :  { %3667 = vmatprep.mubr.f32.mxu0 %v1919_v37  ;;  %v213_v37 = vsel %vm205_vm5, %v192_v27, %v195_v31 }
  0x94   :  { %3668 = vmatmul.mubr.f32.gmra.mrb[2].mxu0 %v1920_v38  ;;  %v221_v38 = vshll.u32 %v181_v25, 8 }
  0x95   :  { %3670 = vmatprep.mubr.f32.mxu0 %v1921_v39  ;;  %v204_v39 = vor.u32 %v203_v35, %v202_v30 }
  0x98   :  { %3671 = vmatmul.mubr.f32.gmra.mrb[4].mxu0 %v1922_v40  ;;  %v214_v40 = vsel %vm208_vm8, %v201_v33, 920167782 }
  0x99   :  { %3673 = vmatprep.mubr.f32.mxu0 %v1923_v41  ;;  %v276_v41 = vand.u32 2147483647, %v4773_v56 }
  0x9c   :  { %3674 = vmatmul.mubr.f32.gmra.mrb[6].mxu0 %v1924_v42  ;;  %v189_v42 = vshrl.u32 %v6729_v12, %v188_v3  ;;  %v379_v3 = vand.u32 2147483647, %v4782_v62 }
  0x9d   :  { %3676 = vmatprep.mubr.f32.mxu0 %v1925_v43  ;;  %v215_v43 = vsel %vm207_vm6, %v198_v32, %v214_v40  ;;  %v485_v40 = vand.u32 2139095040, %v4806_v36 }
  0xa0   :  { %3677 = vmatmul.mubr.f32.gmra.mrb[8].mxu0 %v1926_v44  ;;  %v217_v44 = vsel %vm205_vm5, %v195_v31, %v198_v32 }
  0xa1   :  { %3679 = vmatprep.mubr.f32.mxu0 %v1927_v45  ;;  %v288_v45 = vsel %vm287_vm9, %v286_v4, 0 }
  0xa2   :  { %v4819_v57 = vshrl.u32 %v288_v45, 5  ;;  %v290_v8 = vand.u32 31, %v288_v45 }
  0xa4   :  { %3680 = vmatmul.mubr.f32.gmra.mrb[10].mxu0 %v1928_v46  ;;  %v210_v46 = vsel %vm208_vm8, %v198_v32, 2102212464  ;;  %vm308_vm10 = vcmp.lt.s32.totalorder %v4819_v57, 1  ;;  %vm309_vm11 = vcmp.lt.s32.totalorder %v4819_v57, 2  ;;  %vm310_vm12 = vcmp.lt.s32.totalorder %v4819_v57, 3 }
  0xa5   :  { %3682 = vmatprep.mubr.f32.mxu0 %v1929_v47  ;;  %v216_v47 = vsel %vm206_vm7, %v213_v37, %v215_v43  ;;  %v211_v53 = vsel %vm207_vm6, %v195_v31, %v210_v46  ;;  %vm311_vm13 = vcmp.lt.s32.totalorder %v4819_v57, 4  ;;  %v291_v16 = vsub.s32 32, %v290_v8  ;;  %v2644_v43 = vld [vmem:[#allocation7 + $0x8] sm:$0xff] }
  0xa6   :  { %v4823_v61 = vmul.u32.u64.low %v221_v38, %v216_v47  ;;  %v4824_v63 = vmul.u32.u64.high %v221_v38, %v216_v47, %v4823_v61  ;;  %v293_v17 = vshll.u32 %v6729_v12, %v290_v8  ;;  %v296_v21 = vshll.u32 %v6727_v15, %v290_v8 }
  0xa7   :  { %v299_v22 = vshll.u32 %v6739_v18, %v290_v8  ;;  %v302_v23 = vshll.u32 %v6737_v7, %v290_v8  ;;  %v305_v25 = vshll.u32 %v6735_v28, %v290_v8  ;;  %v292_v5 = vshrl.u32 %v6729_v12, %v291_v16 }
  0xa8   :  { %3683 = vmatmul.mubr.f32.gmra.mrb[12].mxu0 %v1930_v48  ;;  %v218_v48 = vsel %vm208_vm8, %v204_v39, 1326507024  ;;  %v231_v13 = vadd.s32 1, %v4824_v63  ;;  %v294_v29 = vshrl.u32 %v6727_v15, %v291_v16  ;;  %v297_v30 = vshrl.u32 %v6739_v18, %v291_v16 }
  0xa9   :  { %3685 = vmatprep.mubr.f32.mxu0 %v1931_v49  ;;  %v283_v49 = vand.u32 8388607, %v276_v41  ;;  %v219_v54 = vsel %vm207_vm6, %v201_v33, %v218_v48  ;;  %v300_v32 = vshrl.u32 %v6737_v7, %v291_v16  ;;  %v303_v33 = vshrl.u32 %v6735_v28, %v291_v16 }
  0xaa   :  { %v220_v59 = vsel %vm206_vm7, %v217_v44, %v219_v54  ;;  %v306_v35 = vshrl.u32 %v6733_v34, %v291_v16  ;;  %v295_v37 = vor.u32 %v294_v29, %v293_v17  ;;  %v4855_v39 = vand.u32 8388607, %v379_v3  ;;  %v2645_v16 = vld [vmem:[#allocation7 + $0x10] sm:$0xff]  ;;  %v2646_v17 = vld [vmem:[#allocation7 + $0x18] sm:$0xff] }
  0xab   :  { %v4827_v0 = vmul.u32.u64.low %v221_v38, %v220_v59  ;;  %v4828_v1 = vmul.u32.u64.high %v221_v38, %v220_v59, %v4827_v0  ;;  %v284_v2 = vor.u32 8388608, %v283_v49  ;;  %v301_v45 = vor.u32 %v300_v32, %v299_v22  ;;  %v2357_v49 = vld [vmem:[#allocation10] sm:$0xff]  ;;  %v2360_v29 = vld [vmem:[#allocation10 + $0x18] sm:$0xff] }
  0xac   :  { %3686 = vmatmul.mubr.f32.gmra.mrb[14].mxu0 %v1932_v50  ;;  %v209_v50 = vsel %vm205_vm5, %v189_v42, %v192_v27  ;;  %v2643_v42 = vld [vmem:[#allocation7] sm:$0xff]  ;;  %v304_v46 = vor.u32 %v303_v33, %v302_v23  ;;  %v307_v47 = vor.u32 %v306_v35, %v305_v25  ;;  %vm4975_vm8 = vcmp.le.f32.partialorder %v173_v6, 0.7853982 }
  0xad   :  { %v212_v58 = vsel %vm206_vm7, %v209_v50, %v211_v53  ;;  %v4835_v9 = vshll.u32 %v284_v2, 8  ;;  %vm230_vm14 = vc.u32 %v4828_v1, %v4823_v61  ;;  %v3954_v48 = vpack.c.bf16 %v2644_v43, %v2643_v42  ;;  %v2358_v50 = vld [vmem:[#allocation10 + $0x8] sm:$0xff] }
  0xae   :  { %v228_v4 = vmul.u32 %v221_v38, %v212_v58  ;;  %v232_v27 = vsel %vm230_vm14, %v231_v13, %v4824_v63  ;;  %v298_v38 = vor.u32 %v297_v30, %v296_v21  ;;  %v312_v53 = vsel %vm308_vm10, %v292_v5, %v295_v37  ;;  %v2359_v5 = vld [vmem:[#allocation10 + $0x10] sm:$0xff] }
  0xaf   :  { %v389_v58 = vadd.s32 1, %v3362_v10  ;;  %v3922_v59 = vpack.c.bf16 %v2358_v50, %v2357_v49  ;;  %v313_v0 = vsel %vm311_vm13, %v301_v45, 2102212464  ;;  %v317_v2 = vsel %vm311_vm13, %v304_v46, 920167782  ;;  %3955 = vmatprep.subr.bf16.mxu0 %v3954_v48 }
  0xb0   :  { %v233_v31 = vadd.s32 %v232_v27, %v228_v4  ;;  %v316_v54 = vsel %vm308_vm10, %v295_v37, %v298_v38  ;;  %v314_v4 = vsel %vm310_vm12, %v298_v38, %v313_v0  ;;  %v318_v8 = vsel %vm310_vm12, %v301_v45, %v317_v2  ;;  %3957 = vmatpush3.bf16.msra.mxu0 %v3954_v48 }
  0xb1   :  { %v320_v13 = vsel %vm308_vm10, %v298_v38, %v301_v45  ;;  %v321_v10 = vsel %vm311_vm13, %v307_v47, 1326507024  ;;  %3923 = vmatprep.subr.bf16.mxu1 %v3922_v59  ;;  %v315_v22 = vsel %vm309_vm11, %v312_v53, %v314_v4  ;;  %v319_v23 = vsel %vm309_vm11, %v316_v54, %v318_v8  ;;  %v2363_v8 = vld [vmem:[#allocation10 + $0x30] sm:$0xff] }
  0xb2   :  { %v234_v44 = vadd.s32 536870912, %v233_v31  ;;  %v322_v25 = vsel %vm310_vm12, %v304_v46, %v321_v10  ;;  %3925 = vmatpush3.bf16.msra.mxu1 %v3922_v59  ;;  %v3958_v27 = vpack.c.bf16 %v2646_v17, %v2645_v16  ;;  %v3926_v35 = vpack.c.bf16 %v2360_v29, %v2359_v5  ;;  %v2361_v46 = vld [vmem:[#allocation10 + $0x20] sm:$0xff] }
  0xb3   :  { %v323_v30 = vsel %vm309_vm11, %v320_v13, %v322_v25  ;;  %v4886_v32 = vmul.u32.u64.low %v4835_v9, %v319_v23  ;;  %v4887_v33 = vmul.u32.u64.high %v4835_v9, %v319_v23, %v4886_v32  ;;  %v387_v43 = vor.u32 8388608, %v4855_v39  ;;  %v2364_v13 = vld [vmem:[#allocation10 + $0x38] sm:$0xff] }
  0xb4   :  { %v4862_v63 = vshrl.u32 %v234_v44, 30  ;;  %v4893_v38 = vmul.u32.u64.low %v4835_v9, %v323_v30  ;;  %v4894_v42 = vmul.u32.u64.high %v4835_v9, %v323_v30, %v4893_v38  ;;  %3959 = vmatprep.subr.bf16.mxu0 %v3958_v27  ;;  %vm390_vm15 = vcmp.gt.s32.totalorder %v389_v58, 0  ;;  %3927 = vmatprep.subr.bf16.mxu1 %v3926_v35 }
  0xb5   :  { %3961 = vmatpush3.bf16.msra.mxu0 %v3958_v27  ;;  %v331_v44 = vmul.u32 %v4835_v9, %v315_v22  ;;  %v391_v45 = vsel %vm390_vm15, %v389_v58, 0  ;;  %v334_v47 = vadd.s32 1, %v4887_v33  ;;  %v486_v39 = vshrl.u32 %v485_v40, 23 }
  0xb6   :  { %v236_v21 = vshll.u32 %v4862_v63, 30  ;;  %3929 = vmatpush3.bf16.msra.mxu1 %v3926_v35  ;;  %v393_v48 = vand.u32 31, %v391_v45  ;;  %vm333_vm1 = vc.u32 %v4894_v42, %v4886_v32  ;;  %v4904_v54 = vshrl.u32 %v391_v45, 5 }
  0xb7   :  { %v335_v53 = vsel %vm333_vm1, %v334_v47, %v4887_v33  ;;  %v4906_v58 = vshll.u32 %v387_v43, 8  ;;  %v4914_v25 = vadd.s32 4294967169, %v486_v39  ;;  %v229_v33 = vadd.s32 %v4823_v61, %v4828_v1 }
  0xb8   :  { %v4890_v37 = vsub.s32 %v233_v31, %v236_v21  ;;  %v2362_v31 = vld [vmem:[#allocation10 + $0x28] sm:$0xff]  ;;  %v394_v9 = vsub.s32 32, %v393_v48  ;;  %v336_v0 = vadd.s32 %v335_v53, %v331_v44  ;;  %v396_v2 = vshll.u32 %v6729_v12, %v393_v48 }
  0xb9   :  { %v3930_v49 = vpack.c.bf16 %v2362_v31, %v2361_v46  ;;  %v399_v4 = vshll.u32 %v6727_v15, %v393_v48  ;;  %v402_v16 = vshll.u32 %v6739_v18, %v393_v48  ;;  %v3934_v21 = vpack.c.bf16 %v2364_v13, %v2363_v8  ;;  %v2366_v44 = vld [vmem:[#allocation10 + $0x48] sm:$0xff]  ;;  %v2368_v8 = vld [vmem:[#allocation10 + $0x58] sm:$0xff] }
  0xba   :  { %v239_v57 = vsub.s32 0, %v4890_v37  ;;  %v397_v10 = vshrl.u32 %v6727_v15, %v394_v9  ;;  %v400_v40 = vshrl.u32 %v6739_v18, %v394_v9  ;;  %v403_v17 = vshrl.u32 %v6737_v7, %v394_v9 }
  0xbb   :  { %3931 = vmatprep.subr.bf16.mxu1 %v3930_v49  ;;  %v337_v23 = vadd.s32 536870912, %v336_v0  ;;  %v395_v27 = vshrl.u32 %v6729_v12, %v394_v9  ;;  %v405_v5 = vshll.u32 %v6737_v7, %v393_v48  ;;  %v406_v29 = vshrl.u32 %v6735_v28, %v394_v9 }
  0xbc   :  { %v3355_v50 = vmin.u32 %v239_v57, %v4890_v37  ;;  %3933 = vmatpush3.bf16.msra.mxu1 %v3930_v49  ;;  %v408_v30 = vshll.u32 %v6735_v28, %v393_v48  ;;  %v398_v38 = vor.u32 %v397_v10, %v396_v2  ;;  %v2365_v57 = vld [vmem:[#allocation10 + $0x40] sm:$0xff]  ;;  %v401_v46 = vor.u32 %v400_v40, %v399_v4  ;;  %v2367_v4 = vld [vmem:[#allocation10 + $0x50] sm:$0xff] }
  0xbd   :  { %3935 = vmatprep.subr.bf16.mxu1 %v3934_v21  ;;  %v4922_v35 = vshrl.u32 %v337_v23, 30  ;;  %v404_v31 = vor.u32 %v403_v17, %v402_v16  ;;  %v409_v47 = vshrl.u32 %v6733_v34, %v394_v9  ;;  %v3938_v48 = vpack.c.bf16 %v2366_v44, %v2365_v57  ;;  %v2370_v57 = vld [vmem:[#allocation10 + $0x68] sm:$0xff] }
  0xbe   :  { %v241_v59 = vclz %v3355_v50  ;;  %v407_v39 = vor.u32 %v406_v29, %v405_v5  ;;  %vm411_vm3 = vcmp.lt.s32.totalorder %v4904_v54, 1  ;;  %vm412_vm4 = vcmp.lt.s32.totalorder %v4904_v54, 2 }
  0xbf   :  { %v339_v1 = vshll.u32 %v4922_v35, 30  ;;  %v410_v53 = vor.u32 %v409_v47, %v408_v30  ;;  %vm414_vm5 = vcmp.lt.s32.totalorder %v4904_v54, 4  ;;  %vm413_vm6 = vcmp.lt.s32.totalorder %v4904_v54, 3 }
  0xc0   :  { %v3356_v22 = vadd.s32 4294967294, %v241_v59  ;;  %3937 = vmatpush3.bf16.msra.mxu1 %v3934_v21  ;;  %v416_v10 = vsel %vm414_vm5, %v404_v31, 2102212464  ;;  %v3942_v40 = vpack.c.bf16 %v2368_v8, %v2367_v4  ;;  %v419_v21 = vsel %vm411_vm3, %v398_v38, %v401_v46  ;;  %v2372_v4 = vld [vmem:[#allocation10 + $0x78] sm:$0xff] }
  0xc1   :  { %3939 = vmatprep.subr.bf16.mxu1 %v3938_v48  ;;  %v4931_v13 = vsub.s32 %v336_v0, %v339_v1  ;;  %v420_v0 = vsel %vm414_vm5, %v407_v39, 920167782  ;;  %v423_v23 = vsel %vm411_vm3, %v401_v46, %v404_v31  ;;  %vm175_vm7 = vcmp.lt.s32.totalorder %v4764_v52, 0 }
  0xc2   :  { %vm3357_vm2 = vcmp.lt.s32.totalorder %v3356_v22, 0  ;;  %v421_v30 = vsel %vm413_vm6, %v404_v31, %v420_v0  ;;  %vm5025_vm12 = vcmp.le.f32.partialorder %v276_v41, 0.7853982  ;;  %vm278_vm13 = vcmp.lt.s32.totalorder %v4773_v56, 0 }
  0xc3   :  { %v244_v45 = vsel %vm3357_vm2, 0, %v3356_v22  ;;  %v342_v22 = vsub.s32 0, %v4931_v13  ;;  %v422_v47 = vsel %vm412_vm4, %v419_v21, %v421_v30  ;;  %v259_v30 = vsub.s32 4, %v4862_v63 }
  0xc4   :  { %v245_v49 = vsub.s32 32, %v244_v45  ;;  %v246_v50 = vshll.u32 %v4890_v37, %v244_v45  ;;  %v249_v61 = vsub.s32 4294967266, %v244_v45  ;;  %3941 = vmatpush3.bf16.msra.mxu1 %v3938_v48  ;;  %v415_v37 = vsel %vm411_vm3, %v395_v27, %v398_v38 }
  0xc5   :  { %v424_v27 = vsel %vm414_vm5, %v410_v53, 1326507024  ;;  %3943 = vmatprep.subr.bf16.mxu1 %v3942_v40  ;;  %v3359_v44 = vmin.u32 %v342_v22, %v4931_v13  ;;  %v417_v45 = vsel %vm413_vm6, %v401_v46, %v416_v10  ;;  %v492_v10 = vadd.s32 1, %v4914_v25 }
  0xc6   :  { %v247_v59 = vshrl.u32 %v229_v33, %v245_v49  ;;  %v250_v2 = vadd.s32 127, %v249_v61  ;;  %v425_v33 = vsel %vm413_vm6, %v407_v39, %v424_v27  ;;  %v482_v27 = vand.u32 2147483647, %v4806_v36 }
  0xc7   :  { %v426_v48 = vsel %vm412_vm4, %v423_v23, %v425_v33  ;;  %v344_v1 = vclz %v3359_v44  ;;  %v4965_v39 = vmul.u32.u64.low %v4906_v58, %v422_v47  ;;  %v4966_v53 = vmul.u32.u64.high %v4906_v58, %v422_v47, %v4965_v39 }
  0xc8   :  { %v248_v16 = vor.u32 %v247_v59, %v246_v50  ;;  %v251_v17 = vshll.u32 %v250_v2, 23  ;;  %3945 = vmatpush3.bf16.msra.mxu1 %v3942_v40  ;;  %v4961_v50 = vmul.u32.u64.low %v4906_v58, %v426_v48  ;;  %v4962_v61 = vmul.u32.u64.high %v4906_v58, %v426_v48, %v4961_v50 }
  0xc9   :  { %v418_v59 = vsel %vm412_vm4, %v415_v37, %v417_v45  ;;  %v3360_v8 = vadd.s32 4294967294, %v344_v1  ;;  %v332_v37 = vadd.s32 %v4886_v32, %v4894_v42  ;;  %v437_v25 = vadd.s32 1, %v4966_v53  ;;  %v5011_v50 = vld [vmem:[%s6715_s5 + $0x28] sm:$0xff] }
  0xca   :  { %v252_v5 = vor.u32 4788187, %v251_v17  ;;  %v255_v29 = vcvt.s32.f32 %v248_v16  ;;  %v434_v17 = vmul.u32 %v4906_v58, %v418_v59  ;;  %vm436_vm10 = vc.u32 %v4962_v61, %v4965_v39 }
  0xcb   :  { %vm3361_vm9 = vcmp.lt.s32.totalorder %v3360_v8, 0  ;;  %vm493_vm11 = vcmp.gt.s32.totalorder %v492_v10, 0  ;;  %v438_v58 = vsel %vm436_vm10, %v437_v25, %v4966_v53  ;;  %v5000_v47 = vand.u32 8388607, %v482_v27 }
  0xcc   :  { %v253_v49 = vand.u32 2147483647, %v252_v5  ;;  %v347_v22 = vsel %vm3361_vm9, 0, %v3360_v8  ;;  %v362_v59 = vsub.s32 4, %v4922_v35  ;;  %v4493_v41 = vmov 0  }
  0xcd   :  { %v348_v23 = vsub.s32 32, %v347_v22  ;;  %v349_v32 = vshll.u32 %v4931_v13, %v347_v22  ;;  %v352_v42 = vsub.s32 4294967266, %v347_v22  ;;  %v260_v13 = vsel %vm175_vm7, %v259_v30, %v4862_v63  ;;  %4141 = vset.pattern.permute.xlu1 %v4493_v41  ;;  %4142 = vset.pattern.permute.xlu0 %v4493_v41 }
  0xce   :  { %v256_v46 = vmul.f32 %v255_v29, %v253_v49  ;;  %v439_v29 = vadd.s32 %v438_v58, %v434_v17  ;;  %v262_v48 = vsel %vm4975_vm8, 0, %v260_v13  ;;  %v490_v8 = vor.u32 8388608, %v5000_v47 }
  0xcf   :  { %v350_v5 = vshrl.u32 %v332_v37, %v348_v23  ;;  %v353_v33 = vadd.s32 127, %v352_v42  ;;  %v266_v1 = vand.u32 3, %v262_v48  ;;  %v363_v37 = vsel %vm278_vm13, %v362_v59, %v4922_v35 }
  0xd0   :  { %v257_v54 = vxor.u32 2147483648, %v256_v46  ;;  %v440_v44 = vadd.s32 536870912, %v439_v29  ;;  %vm265_vm2 = vweird.f32 %v4764_v52  ;;  %v365_v42 = vsel %vm5025_vm12, 0, %v363_v37 }
  0xd1   :  { %v354_v45 = vshll.u32 %v353_v33, 23  ;;  %vm271_vm14 = vcmp.eq.s32.totalorder %v266_v1, 2  ;;  %vm268_vm15 = vcmp.eq.s32.totalorder %v266_v1, 0  ;;  %vm267_vm1 = vcmp.lt.s32.totalorder %v266_v1, 2 }
  0xd2   :  { %v258_v21 = vsel %vm175_vm7, %v257_v54, %v256_v46  ;;  %vm1853_vm3 = vcmp.lt.f32.partialorder %v4761_v51, 0.5  ;;  %v5062_v13 = vand.u32 3, %v365_v42  ;;  %vm368_vm10 = vweird.f32 %v4773_v56 }
  0xd3   :  { %v261_v0 = vsel %vm4975_vm8, %v4764_v52, %v258_v21  ;;  %v355_v53 = vor.u32 4788187, %v354_v45 }
  0xd4   :  { %4143 = vcosq.f32 %v261_v0  ;;  %vm371_vm5 = vcmp.eq.s32.totalorder %v5062_v13, 0  ;;  %vm370_vm7 = vcmp.lt.s32.totalorder %v5062_v13, 2  ;;  %vm374_vm8 = vcmp.eq.s32.totalorder %v5062_v13, 2 }
  0xd5   :  { %4145 = vsinq.f32 %v261_v0 }
  0xf4   :  { %v2663_v43 = vpop.trf.xlu0 }
  0xf5   :  { %3752 = vmatprep.mubr.msk.f32.mxu0 %vm2679_vm0, %v2663_v43  ;;  %v2369_v43 = vld [vmem:[#allocation10 + $0x60] sm:$0xff] }
  0xf6   :  { %v3946_v31 = vpack.c.bf16 %v2370_v57, %v2369_v43  ;;  %v351_v57 = vor.u32 %v350_v5, %v349_v32 }
  0xf8   :  { %v2664_v9 = vpop.trf.xlu0  ;;  %3947 = vmatprep.subr.bf16.mxu1 %v3946_v31  ;;  %v358_v63 = vcvt.s32.f32 %v351_v57 }
  0xf9   :  { %3753 = vmatmul.mubr.msk.f32.vlgmr.msra.gmra.mrb[16].mxu0 %vm2679_vm0, %v2664_v9  ;;  %3949 = vmatpush3.bf16.msra.mxu1 %v3946_v31  ;;  %v2371_v9 = vld [vmem:[#allocation10 + $0x70] sm:$0xff]  ;;  %v5004_v31 = vshrl.u32 %v440_v44, 30 }
  0xfa   :  { %v3950_v40 = vpack.c.bf16 %v2372_v4, %v2371_v9  ;;  %v356_v9 = vand.u32 2147483647, %v355_v53  ;;  %v5017_v4 = vadd.s32 %v4965_v39, %v4962_v61  ;;  %v4144_v61 = vpop.eup %4143  ;;  %v3418_v53 = vsel %vm1853_vm3, 1.0, %v6731_v20 }
  0xfb   :  { %v4146_v17 = vpop.eup %4145  ;;  %v272_v21 = vxor.u32 2147483648, %v4144_v61 }
  0xfc   :  { %v2665_v38 = vpop.trf.xlu0  ;;  %3951 = vmatprep.subr.bf16.mxu1 %v3950_v40  ;;  %v359_v39 = vmul.f32 %v358_v63, %v356_v9  ;;  %v269_v0 = vxor.u32 2147483648, %v4146_v17 }
  0xfd   :  { %3755 = vmatprep.mubr.msk.f32.mxu0 %vm2679_vm0, %v2665_v38  ;;  %3953 = vmatpush3.bf16.msra.mxu1 %v3950_v40  ;;  %v494_v38 = vsel %vm493_vm11, %v492_v10, 0  ;;  %v5021_v10 = vmul.f32 6.2831855, %v5011_v50  ;;  %v273_v35 = vsel %vm271_vm14, %v272_v21, %v4146_v17  ;;  %vm381_vm11 = vcmp.lt.s32.totalorder %v4782_v62, 0 }
  0xfe   :  { %v5006_v49 = vand.u32 31, %v494_v38  ;;  %v360_v23 = vxor.u32 2147483648, %v359_v39  ;;  %v270_v5 = vsel %vm268_vm15, %v4144_v61, %v269_v0  ;;  %vm1854_vm14 = vcmp.lt.f32.partialorder %v4770_v55, 0.5 }
  0xff   :  { %vm5138_vm15 = vcmp.le.f32.partialorder %v379_v3, 0.7853982 }
 0x100   :  { %v2666_v2 = vpop.trf.xlu0  ;;  %v5033_v54 = vsub.s32 32, %v5006_v49  ;;  %v499_v32 = vshll.u32 %v6729_v12, %v5006_v49  ;;  %v502_v33 = vshll.u32 %v6727_v15, %v5006_v49  ;;  %v505_v1 = vshll.u32 %v6739_v18, %v5006_v49 }
 0x101   :  { %3756 = vmatmul.mubr.msk.f32.gmra.mrb[18].mxu0 %vm2679_vm0, %v2666_v2  ;;  %v442_v2 = vshll.u32 %v5004_v31, 30  ;;  %v511_v21 = vshll.u32 %v6735_v28, %v5006_v49 }
 0x102   :  { %v500_v30 = vshrl.u32 %v6727_v15, %v5033_v54  ;;  %v503_v57 = vshrl.u32 %v6739_v18, %v5033_v54  ;;  %v506_v51 = vshrl.u32 %v6737_v7, %v5033_v54  ;;  %v509_v59 = vshrl.u32 %v6735_v28, %v5033_v54 }
 0x103   :  { %v5030_v16 = vsub.s32 %v439_v29, %v442_v2  ;;  %v361_v29 = vsel %vm278_vm13, %v360_v23, %v359_v39  ;;  %v498_v40 = vshrl.u32 %v6729_v12, %v5033_v54  ;;  %v465_v39 = vsub.s32 4, %v5004_v31 }
 0x104   :  { %v2667_v6 = vpop.trf.xlu0  ;;  %v364_v52 = vsel %vm5025_vm12, %v4773_v56, %v361_v29  ;;  %v501_v61 = vor.u32 %v500_v30, %v499_v32  ;;  %v504_v37 = vor.u32 %v503_v57, %v502_v33  ;;  %v507_v32 = vor.u32 %v506_v51, %v505_v1 }
 0x105   :  { %3758 = vmatprep.mubr.msk.f32.mxu0 %vm2679_vm0, %v2667_v6  ;;  %v445_v22 = vsub.s32 0, %v5030_v16  ;;  %v5039_v6 = vshrl.u32 %v494_v38, 5  ;;  %4147 = vcosq.f32 %v364_v52  ;;  %v512_v42 = vshrl.u32 %v6733_v34, %v5033_v54 }
 0x106   :  { %4149 = vsinq.f32 %v364_v52  ;;  %v3419_v56 = vsel %vm1854_vm14, 1.0, %v6731_v20 }
 0x107   :  { %v3363_v58 = vmin.u32 %v445_v22, %v5030_v16  ;;  %vm514_vm4 = vcmp.lt.s32.totalorder %v5039_v6, 1  ;;  %vm516_vm9 = vcmp.lt.s32.totalorder %v5039_v6, 3  ;;  %vm517_vm12 = vcmp.lt.s32.totalorder %v5039_v6, 4 }
 0x108   :  { %v2668_v43 = vpop.trf.xlu0  ;;  %vm515_vm13 = vcmp.lt.s32.totalorder %v5039_v6, 2  ;;  %v466_v6 = vsel %vm381_vm11, %v465_v39, %v5004_v31  ;;  %v147_v31 = vld [vmem:[%s6715_s5 + $0x30] sm:$0xff] }
 0x109   :  { %3759 = vmatmul.mubr.msk.f32.gmra.mrb[20].mxu0 %vm2679_vm0, %v2668_v43  ;;  %v274_v43 = vsel %vm267_vm1, %v270_v5, %v273_v35  ;;  %v447_v45 = vclz %v3363_v58  ;;  %v513_v58 = vor.u32 %v512_v42, %v511_v21  ;;  %v519_v5 = vsel %vm517_vm12, %v507_v32, 2102212464 }
 0x10a   :  { %v275_v44 = vsel %vm265_vm2, nan, %v274_v43  ;;  %v691_v42 = vand.u32 2139095040, %v5021_v10  ;;  %vm1855_vm2 = vcmp.lt.f32.partialorder %v4779_v60, 0.5 }
 0x10b   :  { %v1821_v48 = vadd.f32 1.0, %v275_v44  ;;  %v3364_v63 = vadd.s32 4294967294, %v447_v45  ;;  %v518_v44 = vsel %vm514_vm4, %v498_v40, %v501_v61  ;;  %v520_v45 = vsel %vm516_vm9, %v504_v37, %v519_v5 }
 0x10c   :  { %v2669_v46 = vpop.trf.xlu0  ;;  %v692_v5 = vshrl.u32 %v691_v42, 23  ;;  %v3420_v60 = vsel %vm1855_vm2, 1.0, %v6731_v20 }
 0x10d   :  { %3761 = vmatprep.mubr.msk.f32.mxu0 %vm2679_vm0, %v2669_v46  ;;  %v508_v46 = vshll.u32 %v6737_v7, %v5006_v49  ;;  %v1837_v2 = vmul.f32 0.5, %v1821_v48  ;;  %vm3365_vm6 = vcmp.lt.s32.totalorder %v3364_v63, 0  ;;  %v526_v48 = vsel %vm514_vm4, %v504_v37, %v507_v32 }
 0x10f   :  { %v1901_v17 = vmul.f32 %v3418_v53, %v1837_v2  ;;  %v510_v41 = vor.u32 %v509_v59, %v508_v46  ;;  %v4148_v29 = vpop.eup %4147 }
 0x110   :  { %v2670_v25 = vpop.trf.xlu0  ;;  %v4150_v43 = vpop.eup %4149  ;;  %v375_v52 = vxor.u32 2147483648, %v4148_v29 }
 0x111   :  { %3762 = vmatmul.mubr.msk.f32.gmra.mrb[22].mxu0 %vm2679_vm0, %v2670_v25  ;;  %v450_v25 = vsel %vm3365_vm6, 0, %v3364_v63  ;;  %2527 = vperm.xlu1 %4141, %v1901_v17   ;;  %v523_v54 = vsel %vm517_vm12, %v510_v41, 920167782  ;;  %v372_v1 = vxor.u32 2147483648, %v4150_v43  ;;  %v527_v63 = vsel %vm517_vm12, %v513_v58, 1326507024 }
 0x112   :  { %v451_v22 = vsub.s32 32, %v450_v25  ;;  %v452_v0 = vshll.u32 %v5030_v16, %v450_v25  ;;  %v455_v23 = vsub.s32 4294967266, %v450_v25  ;;  %v376_v46 = vsel %vm374_vm8, %v375_v52, %v4150_v43 }
 0x113   :  { %v528_v2 = vsel %vm516_vm9, %v510_v41, %v527_v63  ;;  %v373_v40 = vsel %vm371_vm5, %v4148_v29, %v372_v1  ;;  %v521_v25 = vsel %vm515_vm13, %v518_v44, %v520_v45  ;;  %v468_v29 = vsel %vm5138_vm15, 0, %v466_v6 }
 0x114   :  { %v2671_v38 = vpop.trf.xlu0  ;;  %v453_v49 = vshrl.u32 %v5017_v4, %v451_v22  ;;  %v456_v16 = vadd.s32 127, %v455_v23  ;;  %v522_v4 = vsel %vm514_vm4, %v501_v61, %v504_v37  ;;  %v529_v37 = vsel %vm515_vm13, %v526_v48, %v528_v2 }
 0x115   :  { %3764 = vmatprep.mubr.msk.f32.mxu0 %vm2679_vm0, %v2671_v38  ;;  %v524_v38 = vsel %vm516_vm9, %v507_v32, %v523_v54  ;;  %v377_v17 = vsel %vm370_vm7, %v373_v40, %v376_v46  ;;  %v5163_v52 = vmul.f32 6.2831855, %v147_v31  ;;  %v148_v46 = vld [vmem:[%s6715_s5 + $0x38] sm:$0xff]  ;;  %vm471_vm4 = vweird.f32 %v4782_v62 }
 0x116   :  { %v454_v30 = vor.u32 %v453_v49, %v452_v0  ;;  %v457_v33 = vshll.u32 %v456_v16, 23  ;;  %v525_v59 = vsel %vm515_vm13, %v522_v4, %v524_v38  ;;  %vm1856_vm8 = vcmp.lt.f32.partialorder %v4800_v24, 0.5 }
 0x117   :  { %v6741_v1 = vand.u32 2147483647, %v5163_v52  ;;  %v794_v63 = vand.u32 2139095040, %v5163_v52  ;;  %vm484_vm13 = vcmp.lt.s32.totalorder %v4806_v36, 0 }
 0x118   :  { %v2672_v9 = vpop.trf.xlu0  ;;  %v458_v51 = vor.u32 4788187, %v457_v33  ;;  %v461_v53 = vcvt.s32.f32 %v454_v30  ;;  %v3374_v33 = vadd.s32 4294967169, %v692_v5 }
 0x119   :  { %3765 = vmatmul.mubr.msk.f32.gmra.mrb[24].mxu0 %vm2679_vm0, %v2672_v9  ;;  %v530_v9 = vshll.u32 %v490_v8, 8  ;;  %v378_v8 = vsel %vm368_vm10, nan, %v377_v17  ;;  %v5186_v17 = vmul.f32 6.2831855, %v148_v46 }
 0x11a   :  { %v459_v61 = vand.u32 2147483647, %v458_v51  ;;  %v1822_v23 = vadd.f32 1.0, %v378_v8  ;;  %v698_v44 = vadd.s32 1, %v3374_v33  ;;  %v795_v8 = vshrl.u32 %v794_v63, 23 }
 0x11b   :  { %v5127_v21 = vmul.u32.u64.low %v530_v9, %v529_v37  ;;  %v5128_v41 = vmul.u32.u64.high %v530_v9, %v529_v37, %v5127_v21  ;;  %v5132_v0 = vmul.u32.u64.low %v530_v9, %v525_v59  ;;  %v5133_v55 = vmul.u32.u64.high %v530_v9, %v525_v59, %v5132_v0  ;;  %6764 = vst [vmem:[#allocation28_spill] sm:$0xff] %v5186_v17 }
 0x11c   :  { %v2673_v35 = vpop.trf.xlu0  ;;  %v462_v22 = vmul.f32 %v461_v53, %v459_v61  ;;  %v1838_v49 = vmul.f32 0.5, %v1822_v23  ;;  %v537_v16 = vmul.u32 %v530_v9, %v521_v25  ;;  %vm699_vm3 = vcmp.gt.s32.totalorder %v698_v44, 0 }
 0x11d   :  { %3767 = vmatprep.mubr.msk.f32.mxu0 %vm2679_vm0, %v2673_v35  ;;  %v688_v35 = vand.u32 2147483647, %v5021_v10  ;;  %vm539_vm1 = vc.u32 %v5128_v41, %v5132_v0  ;;  %v540_v58 = vadd.s32 1, %v5133_v55  ;;  %v700_v53 = vsel %vm699_vm3, %v698_v44, 0 }
 0x11e   :  { %v463_v32 = vxor.u32 2147483648, %v462_v22  ;;  %v1902_v39 = vmul.f32 %v3419_v56, %v1838_v49  ;;  %v702_v59 = vand.u32 31, %v700_v53  ;;  %v5177_v2 = vadd.s32 %v5132_v0, %v5128_v41 }
 0x11f   :  { %v541_v30 = vsel %vm539_vm1, %v540_v58, %v5133_v55  ;;  %v695_v4 = vand.u32 8388607, %v688_v35  ;;  %v5184_v37 = vand.u32 8388607, %v6741_v1  ;;  %v897_v58 = vand.u32 2139095040, %v5186_v17 }
 0x120   :  { %v2674_v57 = vpop.trf.xlu0  ;;  %v464_v3 = vsel %vm381_vm11, %v463_v32, %v462_v22  ;;  %2532 = vperm.xlu1 %4141, %v1902_v39   ;;  %v542_v38 = vadd.s32 %v541_v30, %v537_v16  ;;  %v703_v40 = vsub.s32 32, %v702_v59  ;;  %v705_v21 = vshll.u32 %v6729_v12, %v702_v59 }
 0x121   :  { %3768 = vmatmul.mubr.msk.f32.gmra.mrb[26].mxu0 %vm2679_vm0, %v2674_v57  ;;  %v467_v54 = vsel %vm5138_vm15, %v4782_v62, %v464_v3  ;;  %v472_v57 = vand.u32 3, %v468_v29  ;;  %v696_v48 = vor.u32 8388608, %v695_v4  ;;  %v711_v55 = vshll.u32 %v6739_v18, %v702_v59 }
 0x122   :  { %4151 = vcosq.f32 %v467_v54  ;;  %v543_v45 = vadd.s32 536870912, %v542_v38  ;;  %v706_v22 = vshrl.u32 %v6727_v15, %v703_v40  ;;  %v709_v0 = vshrl.u32 %v6739_v18, %v703_v40 }
 0x123   :  { %4153 = vsinq.f32 %v467_v54  ;;  %vm473_vm5 = vcmp.lt.s32.totalorder %v472_v57, 2  ;;  %vm474_vm6 = vcmp.eq.s32.totalorder %v472_v57, 0  ;;  %vm477_vm7 = vcmp.eq.s32.totalorder %v472_v57, 2 }
 0x124   :  { %v2675_v47 = vpop.trf.xlu0  ;;  %v5168_v51 = vshrl.u32 %v543_v45, 30  ;;  %v5180_v61 = vshll.u32 %v696_v48, 8  ;;  %v714_v23 = vshll.u32 %v6737_v7, %v702_v59  ;;  %v701_v32 = vshrl.u32 %v700_v53, 5 }
 0x125   :  { %3770 = vmatprep.mubr.msk.f32.mxu0 %vm2679_vm0, %v2675_v47  ;;  %v708_v47 = vshll.u32 %v6727_v15, %v702_v59  ;;  %v712_v42 = vshrl.u32 %v6737_v7, %v703_v40  ;;  %v715_v16 = vshrl.u32 %v6735_v28, %v703_v40  ;;  %v717_v3 = vshll.u32 %v6735_v28, %v702_v59 }
 0x126   :  { %v545_v9 = vshll.u32 %v5168_v51, 30  ;;  %v704_v39 = vshrl.u32 %v6729_v12, %v703_v40  ;;  %v707_v54 = vor.u32 %v706_v22, %v705_v21  ;;  %v718_v44 = vshrl.u32 %v6733_v34, %v703_v40 }
 0x127   :  { %v710_v30 = vor.u32 %v709_v0, %v708_v47  ;;  %v713_v33 = vor.u32 %v712_v42, %v711_v55  ;;  %v716_v4 = vor.u32 %v715_v16, %v714_v23  ;;  %vm720_vm9 = vcmp.lt.s32.totalorder %v701_v32, 1 }
 0x128   :  { %v2676_v43 = vpop.trf.xlu0  ;;  %v5188_v25 = vsub.s32 %v542_v38, %v545_v9  ;;  %vm722_vm10 = vcmp.lt.s32.totalorder %v701_v32, 3  ;;  %vm723_vm11 = vcmp.lt.s32.totalorder %v701_v32, 4  ;;  %v3378_v48 = vadd.s32 4294967169, %v795_v8 }
 0x129   :  { %3771 = vmatmul.mubr.msk.f32.gmra.mrb[28].mxu0 %vm2679_vm0, %v2676_v43  ;;  %v719_v46 = vor.u32 %v718_v44, %v717_v3  ;;  %vm721_vm12 = vcmp.lt.s32.totalorder %v701_v32, 2  ;;  %v724_v59 = vsel %vm720_vm9, %v704_v39, %v707_v54  ;;  %v725_v57 = vsel %vm723_vm11, %v713_v33, 2102212464 }
 0x12a   :  { %v548_v56 = vsub.s32 0, %v5188_v25  ;;  %v728_v9 = vsel %vm720_vm9, %v707_v54, %v710_v30  ;;  %v729_v21 = vsel %vm723_vm11, %v716_v4, 920167782  ;;  %v726_v62 = vsel %vm722_vm10, %v710_v30, %v725_v57 }
 0x12b   :  { %v730_v47 = vsel %vm722_vm10, %v713_v33, %v729_v21  ;;  %v732_v22 = vsel %vm720_vm9, %v710_v30, %v713_v33  ;;  %v733_v0 = vsel %vm723_vm11, %v719_v46, 1326507024  ;;  %v568_v39 = vsub.s32 4, %v5168_v51 }
 0x12c   :  { %v4152_v41 = vpop.eup %4151  ;;  %v3367_v31 = vmin.u32 %v548_v56, %v5188_v25  ;;  %v727_v56 = vsel %vm721_vm12, %v724_v59, %v726_v62  ;;  %v734_v42 = vsel %vm722_vm10, %v716_v4, %v733_v0  ;;  %vm5238_vm15 = vcmp.le.f32.partialorder %v482_v27, 0.7853982 }
 0x12d   :  { %v4154_v13 = vpop.eup %4153  ;;  %v478_v6 = vxor.u32 2147483648, %v4152_v41  ;;  %v5245_v32 = vsel %vm1856_vm8, 1.0, %v6731_v20  ;;  %v743_v4 = vmul.u32 %v5180_v61, %v727_v56  ;;  %v6726_v27 = vand.u32 2147483647, %v5186_v17 }
 0x12e   :  { %v475_v49 = vxor.u32 2147483648, %v4154_v13  ;;  %v550_v43 = vclz %v3367_v31  ;;  %v735_v31 = vsel %vm721_vm12, %v732_v22, %v734_v42  ;;  %vm690_vm3 = vcmp.lt.s32.totalorder %v5021_v10, 0 }
 0x12f   :  { %v479_v5 = vsel %vm477_vm7, %v478_v6, %v4154_v13  ;;  %vm574_vm9 = vweird.f32 %v4806_v36  ;;  %vm1858_vm10 = vcmp.lt.f32.partialorder %v5011_v50, 0.5 }
 0x130   :  { %v476_v29 = vsel %vm474_vm6, %v4152_v41, %v475_v49  ;;  %v3368_v63 = vadd.s32 4294967294, %v550_v43  ;;  %v731_v41 = vsel %vm721_vm12, %v728_v9, %v730_v47 }
 0x131   :  { %v480_v38 = vsel %vm473_vm5, %v476_v29, %v479_v5  ;;  %v5224_v49 = vmul.u32.u64.low %v5180_v61, %v731_v41  ;;  %v5225_v16 = vmul.u32.u64.high %v5180_v61, %v731_v41, %v5224_v49  ;;  %v799_v29 = vor.u32 8388608, %v5184_v37 }
 0x132   :  { %v481_v45 = vsel %vm471_vm4, nan, %v480_v38  ;;  %vm3369_vm14 = vcmp.lt.s32.totalorder %v3368_v63, 0  ;;  %vm5277_vm4 = vcmp.le.f32.partialorder %v688_v35, 0.7853982 }
 0x133   :  { %v1823_v53 = vadd.f32 1.0, %v481_v45  ;;  %v553_v8 = vsel %vm3369_vm14, 0, %v3368_v63  ;;  %v746_v38 = vadd.s32 1, %v5225_v16  ;;  %v5255_v24 = vshll.u32 %v799_v29, 8 }
 0x134   :  { %v554_v23 = vsub.s32 32, %v553_v8  ;;  %v555_v13 = vshll.u32 %v5188_v25, %v553_v8  ;;  %v558_v6 = vsub.s32 4294967266, %v553_v8  ;;  %v2677_v8 = vpop.trf.xlu0 }
 0x135   :  { %v1839_v40 = vmul.f32 0.5, %v1823_v53  ;;  %v5232_v25 = vmul.u32.u64.low %v5180_v61, %v735_v31  ;;  %v5233_v54 = vmul.u32.u64.high %v5180_v61, %v735_v31, %v5232_v25  ;;  %v898_v61 = vshrl.u32 %v897_v58, 23  ;;  %3773 = vmatprep.mubr.msk.f32.mxu0 %vm2679_vm0, %v2677_v8 }
 0x136   :  { %v556_v3 = vshrl.u32 %v5177_v2, %v554_v23  ;;  %v559_v5 = vadd.s32 127, %v558_v6 }
 0x137   :  { %v1903_v55 = vmul.f32 %v3420_v60, %v1839_v40  ;;  %v801_v60 = vadd.s32 1, %v3378_v48  ;;  %v569_v48 = vsel %vm484_vm13, %v568_v39, %v5168_v51  ;;  %vm745_vm2 = vc.u32 %v5233_v54, %v5224_v49 }
 0x138   :  { %v557_v33 = vor.u32 %v556_v3, %v555_v13  ;;  %v560_v2 = vshll.u32 %v559_v5, 23  ;;  %v747_v63 = vsel %vm745_vm2, %v746_v38, %v5225_v16  ;;  %v571_v13 = vsel %vm5238_vm15, 0, %v569_v48 }
 0x139   :  { %2537 = vperm.xlu1 %4141, %v1903_v55   ;;  %vm802_vm1 = vcmp.gt.s32.totalorder %v801_v60, 0  ;;  %v748_v57 = vadd.s32 %v747_v63, %v743_v4  ;;  %v3382_v42 = vadd.s32 4294967169, %v898_v61 }
 0x13a   :  { %v803_v43 = vsel %vm802_vm1, %v801_v60, 0  ;;  %v561_v37 = vor.u32 4788187, %v560_v2  ;;  %v564_v44 = vcvt.s32.f32 %v557_v33 }
 0x13b   :  { %v805_v45 = vand.u32 31, %v803_v43  ;;  %v5260_v46 = vshrl.u32 %v803_v43, 5  ;;  %v749_v41 = vadd.s32 536870912, %v748_v57  ;;  %v575_v43 = vand.u32 3, %v571_v13 }
 0x13c   :  { %v562_v53 = vand.u32 2147483647, %v561_v37 }
 0x13d   :  { %v806_v59 = vsub.s32 32, %v805_v45  ;;  %v808_v9 = vshll.u32 %v6729_v12, %v805_v45  ;;  %v811_v51 = vshll.u32 %v6727_v15, %v805_v45  ;;  %v814_v21 = vshll.u32 %v6739_v18, %v805_v45 }
 0x13e   :  { %v565_v40 = vmul.f32 %v564_v44, %v562_v53  ;;  %v817_v47 = vshll.u32 %v6737_v7, %v805_v45  ;;  %v820_v55 = vshll.u32 %v6735_v28, %v805_v45  ;;  %v750_v16 = vshrl.u32 %v749_v41, 30 }
 0x13f   :  { %v809_v62 = vshrl.u32 %v6727_v15, %v806_v59  ;;  %v812_v58 = vshrl.u32 %v6739_v18, %v806_v59  ;;  %v815_v22 = vshrl.u32 %v6737_v7, %v806_v59  ;;  %v818_v0 = vshrl.u32 %v6735_v28, %v806_v59 }
 0x140   :  { %v566_v23 = vxor.u32 2147483648, %v565_v40  ;;  %v821_v56 = vshrl.u32 %v6733_v34, %v806_v59  ;;  %vm823_vm5 = vcmp.lt.s32.totalorder %v5260_v46, 1  ;;  %v751_v29 = vshll.u32 %v750_v16, 30 }
 0x141   :  { %v810_v3 = vor.u32 %v809_v62, %v808_v9  ;;  %v813_v5 = vor.u32 %v812_v58, %v811_v51  ;;  %v816_v31 = vor.u32 %v815_v22, %v814_v21  ;;  %v819_v39 = vor.u32 %v818_v0, %v817_v47  ;;  %v149_v58 = vld [vmem:[%s6715_s5 + $0x40] sm:$0xff] }
 0x142   :  { %v567_v60 = vsel %vm484_vm13, %v566_v23, %v565_v40  ;;  %v822_v25 = vor.u32 %v821_v56, %v820_v55  ;;  %v774_v33 = vsub.s32 4, %v750_v16  ;;  %vm826_vm6 = vcmp.lt.s32.totalorder %v5260_v46, 4 }
 0x143   :  { %v570_v35 = vsel %vm5238_vm15, %v4806_v36, %v567_v60  ;;  %v807_v2 = vshrl.u32 %v6729_v12, %v806_v59  ;;  %vm824_vm7 = vcmp.lt.s32.totalorder %v5260_v46, 2  ;;  %vm825_vm8 = vcmp.lt.s32.totalorder %v5260_v46, 3 }
 0x144   :  { %4155 = vcosq.f32 %v570_v35  ;;  %v5292_v4 = vsub.s32 %v748_v57, %v751_v29  ;;  %v828_v38 = vsel %vm826_vm6, %v816_v31, 2102212464  ;;  %v831_v30 = vsel %vm823_vm5, %v810_v3, %v813_v5 }
 0x145   :  { %4157 = vsinq.f32 %v570_v35  ;;  %v775_v37 = vsel %vm690_vm3, %v774_v33, %v750_v16  ;;  %v832_v44 = vsel %vm826_vm6, %v819_v39, 920167782  ;;  %v904_v45 = vadd.s32 1, %v3382_v42 }
 0x146   :  { %v754_v48 = vsub.s32 0, %v5292_v4  ;;  %v833_v61 = vsel %vm825_vm8, %v816_v31, %v832_v44  ;;  %v835_v53 = vsel %vm823_vm5, %v813_v5, %v816_v31  ;;  %v836_v63 = vsel %vm826_vm6, %v822_v25, 1326507024  ;;  %v5354_v25 = vld [vmem:[%s6717_s7] ss:$0 sm:$0xff] }
 0x147   :  { %v827_v59 = vsel %vm823_vm5, %v807_v2, %v810_v3  ;;  %v829_v57 = vsel %vm825_vm8, %v813_v5, %v828_v38  ;;  %v834_v9 = vsel %vm824_vm7, %v831_v30, %v833_v61  ;;  %v837_v51 = vsel %vm825_vm8, %v819_v39, %v836_v63 }
 0x148   :  { %v3375_v21 = vmin.u32 %v754_v48, %v5292_v4  ;;  %v777_v40 = vsel %vm5277_vm4, 0, %v775_v37  ;;  %v901_v62 = vand.u32 8388607, %v6726_v27  ;;  %v838_v47 = vsel %vm824_vm7, %v835_v53, %v837_v51 }
 0x149   :  { %v5330_v8 = vmul.u32.u64.low %v5255_v24, %v834_v9  ;;  %v5331_v41 = vmul.u32.u64.high %v5255_v24, %v834_v9, %v5330_v8  ;;  %vm905_vm11 = vcmp.gt.s32.totalorder %v904_v45, 0  ;;  %v830_v50 = vsel %vm824_vm7, %v827_v59, %v829_v57 }
 0x14a   :  { %v756_v22 = vclz %v3375_v21  ;;  %v5337_v0 = vmul.u32.u64.low %v5255_v24, %v838_v47  ;;  %v5338_v55 = vmul.u32.u64.high %v5255_v24, %v838_v47, %v5337_v0  ;;  %vm576_vm12 = vcmp.lt.s32.totalorder %v575_v43, 2 }
 0x14b   :  { %v5341_v23 = vsel %vm1858_vm10, 1.0, %v6731_v20  ;;  %v906_v13 = vsel %vm905_vm11, %v904_v45, 0  ;;  %v5343_v56 = vmul.f32 6.2831855, %v149_v58  ;;  %vm577_vm13 = vcmp.eq.s32.totalorder %v575_v43, 0 }
 0x14c   :  { %vm580_vm14 = vcmp.eq.s32.totalorder %v575_v43, 2  ;;  %v3376_v42 = vadd.s32 4294967294, %v756_v22  ;;  %v902_v16 = vor.u32 8388608, %v901_v62  ;;  %v744_v46 = vadd.s32 %v5224_v49, %v5233_v54 }
 0x14d   :  { %6769 = vst [vmem:[#allocation29_spill] sm:$0xff] %v5343_v56  ;;  %v5347_v5 = vand.u32 3, %v777_v40  ;;  %v846_v31 = vmul.u32 %v5255_v24, %v830_v50  ;;  %v849_v60 = vadd.s32 1, %v5331_v41  ;;  %vm848_vm1 = vc.u32 %v5338_v55, %v5330_v8 }
 0x14e   :  { %v4156_v3 = vpop.eup %4155  ;;  %vm3377_vm15 = vcmp.lt.s32.totalorder %v3376_v42, 0  ;;  %v5358_v29 = vand.u32 31, %v906_v13  ;;  %v5361_v24 = vshrl.u32 %v906_v13, 5  ;;  %v5364_v44 = vshll.u32 %v902_v16, 8 }
 0x14f   :  { %v4158_v39 = vpop.eup %4157  ;;  %v581_v35 = vxor.u32 2147483648, %v4156_v3  ;;  %v759_v54 = vsel %vm3377_vm15, 0, %v3376_v42  ;;  %v850_v33 = vsel %vm848_vm1, %v849_v60, %v5331_v41  ;;  %vm783_vm7 = vcmp.eq.s32.totalorder %v5347_v5, 0 }
 0x150   :  { %v578_v49 = vxor.u32 2147483648, %v4158_v39  ;;  %v760_v30 = vsub.s32 32, %v759_v54  ;;  %v764_v37 = vsub.s32 4294967266, %v759_v54  ;;  %6770 = vst [vmem:[#allocation30_spill] sm:$0xff] %v5364_v44  ;;  %v851_v53 = vadd.s32 %v850_v33, %v846_v31 }
 0x151   :  { %v582_v38 = vsel %vm580_vm14, %v581_v35, %v4158_v39  ;;  %v5376_v51 = vsub.s32 32, %v5358_v29  ;;  %v761_v40 = vshll.u32 %v5292_v4, %v759_v54  ;;  %v5390_v36 = vshll.u32 %v6729_v12, %v5358_v29 }
 0x152   :  { %v579_v61 = vsel %vm577_vm13, %v4156_v3, %v578_v49  ;;  %v765_v9 = vadd.s32 127, %v764_v37  ;;  %v762_v62 = vshrl.u32 %v744_v46, %v760_v30  ;;  %v852_v58 = vadd.s32 536870912, %v851_v53 }
 0x153   :  { %v583_v57 = vsel %vm576_vm12, %v579_v61, %v582_v38  ;;  %v5397_v46 = vshll.u32 %v6727_v15, %v5358_v29  ;;  %v5402_v39 = vadd.s32 %v5330_v8, %v5338_v55  ;;  %v5413_v8 = vshrl.u32 %v6729_v12, %v5376_v51 }
 0x154   :  { %v584_v21 = vsel %vm574_vm9, nan, %v583_v57  ;;  %v766_v13 = vshll.u32 %v765_v9, 23  ;;  %v5386_v42 = vshrl.u32 %v852_v58, 30  ;;  %v763_v60 = vor.u32 %v762_v62, %v761_v40 }
 0x155   :  { %v1824_v50 = vadd.f32 1.0, %v584_v21  ;;  %vm786_vm8 = vcmp.eq.s32.totalorder %v5347_v5, 2  ;;  %vm782_vm9 = vcmp.lt.s32.totalorder %v5347_v5, 2  ;;  %vm780_vm11 = vweird.f32 %v5021_v10 }
 0x156   :  { %v854_v35 = vshll.u32 %v5386_v42, 30  ;;  %v767_v61 = vor.u32 4788187, %v766_v13  ;;  %v770_v40 = vcvt.s32.f32 %v763_v60  ;;  %vm793_vm14 = vcmp.lt.s32.totalorder %v5163_v52, 0 }
 0x157   :  { %v1840_v3 = vmul.f32 0.5, %v1824_v50  ;;  %v912_v50 = vshrl.u32 %v6727_v15, %v5376_v51 }
 0x158   :  { %v5420_v62 = vsub.s32 %v851_v53, %v854_v35 }
 0x159   :  { %v1904_v38 = vmul.f32 %v5245_v32, %v1840_v3  ;;  %v5450_v12 = vor.u32 %v912_v50, %v5390_v36 }
 0x15b   :  { %2542 = vperm.xlu1 %4141, %v1904_v38   ;;  %v857_v38 = vsub.s32 0, %v5420_v62 }
 0x163   :  { %v3666_v2 = vpop.f32.mrb[0].mxu0 }
 0x164   :  { %v5367_v45 = vadd.f32 %v3666_v2, %v5354_v25  ;;  %v2022_v48 = vpop.f32.mrb[1].mxu0 }
 0x165   :  { %v5372_v59 = vadd.f32 %v5354_v25, %v2022_v48 }
 0x166   :  { %v2118_v47 = vand.u32 2147483647, %v5367_v45 }
 0x167   :  { %v2117_v41 = vand.u32 2147483647, %v5372_v59  ;;  %v3669_v22 = vpop.f32.mrb[2].mxu0 }
 0x168   :  { %v5384_v43 = vadd.f32 %v3669_v22, %v5354_v25  ;;  %v2032_v0 = vpop.f32.mrb[3].mxu0  ;;  %v2134_v49 = vsub.f32 0.0, %v2118_v47 }
 0x169   :  { %v2133_v4 = vsub.f32 0.0, %v2117_v41  ;;  %v5393_v16 = vadd.f32 %v5354_v25, %v2032_v0 }
 0x16a   :  { %v2120_v31 = vand.u32 2147483647, %v5384_v43  ;;  %v2151_v58 = vmul.f32 1.442695, %v2134_v49  ;;  %v6791_v56 = vmax.f32 %v5384_v43, 0.0 }
 0x16b   :  { %v2149_v54 = vmul.f32 1.442695, %v2133_v4  ;;  %v2119_v33 = vand.u32 2147483647, %v5393_v16  ;;  %v3672_v2 = vpop.f32.mrb[4].mxu0 }
 0x16c   :  { %v5409_v37 = vadd.f32 %v3672_v2, %v5354_v25  ;;  %v2042_v48 = vpop.f32.mrb[5].mxu0  ;;  %v2136_v55 = vsub.f32 0.0, %v2120_v31  ;;  %v768_v31 = vand.u32 2147483647, %v767_v61 }
 0x16d   :  { %4159 = vpow2.f32 %v2149_v54  ;;  %v5416_v57 = vadd.f32 %v5354_v25, %v2042_v48  ;;  %v2135_v32 = vsub.f32 0.0, %v2119_v33 }
 0x16e   :  { %v2122_v21 = vand.u32 2147483647, %v5409_v37  ;;  %v2155_v60 = vmul.f32 1.442695, %v2136_v55  ;;  %v771_v2 = vmul.f32 %v770_v40, %v768_v31  ;;  %4161 = vpow2.f32 %v2151_v58 }
 0x16f   :  { %v2121_v41 = vand.u32 2147483647, %v5416_v57  ;;  %v3675_v22 = vpop.f32.mrb[6].mxu0  ;;  %v2153_v54 = vmul.f32 1.442695, %v2135_v32 }
 0x170   :  { %v2138_v13 = vsub.f32 0.0, %v2122_v21  ;;  %v5428_v4 = vadd.f32 %v3675_v22, %v5354_v25  ;;  %v2052_v3 = vpop.f32.mrb[7].mxu0  ;;  %v772_v32 = vxor.u32 2147483648, %v771_v2  ;;  %4163 = vpow2.f32 %v2155_v60 }
 0x171   :  { %v2137_v35 = vsub.f32 0.0, %v2121_v41  ;;  %v5432_v49 = vadd.f32 %v5354_v25, %v2052_v3  ;;  %4165 = vpow2.f32 %v2153_v54 }
 0x172   :  { %v2124_v33 = vand.u32 2147483647, %v5428_v4  ;;  %v2159_v48 = vmul.f32 1.442695, %v2138_v13  ;;  %v5447_v13 = vmin.u32 %v857_v38, %v5420_v62  ;;  %v773_v36 = vsel %vm690_vm3, %v772_v32, %v771_v2 }
 0x173   :  { %v2123_v21 = vand.u32 2147483647, %v5432_v49  ;;  %v3678_v22 = vpop.f32.mrb[8].mxu0  ;;  %v2157_v15 = vmul.f32 1.442695, %v2137_v35 }
 0x174   :  { %v2140_v27 = vsub.f32 0.0, %v2124_v33  ;;  %v5440_v41 = vadd.f32 %v3678_v22, %v5354_v25  ;;  %v2062_v3 = vpop.f32.mrb[9].mxu0  ;;  %4167 = vpow2.f32 %v2159_v48 }
 0x175   :  { %v2139_v40 = vsub.f32 0.0, %v2123_v21  ;;  %v5443_v31 = vadd.f32 %v5354_v25, %v2062_v3  ;;  %4169 = vpow2.f32 %v2157_v15  ;;  %v776_v15 = vsel %vm5277_vm4, %v5021_v10, %v773_v36 }
 0x176   :  { %v2126_v58 = vand.u32 2147483647, %v5440_v41  ;;  %v2163_v60 = vmul.f32 1.442695, %v2140_v27 }
 0x177   :  { %v5452_v33 = vpop.eup %4159  ;;  %v2125_v35 = vand.u32 2147483647, %v5443_v31  ;;  %v3681_v21 = vpop.f32.mrb[10].mxu0  ;;  %v2161_v50 = vmul.f32 1.442695, %v2139_v40 }
 0x178   :  { %v2142_v3 = vsub.f32 0.0, %v2126_v58  ;;  %v5457_v54 = vadd.f32 %v3681_v21, %v5354_v25  ;;  %v2072_v20 = vpop.f32.mrb[11].mxu0  ;;  %v2181_v38 = vadd.f32 1.0, %v5452_v33  ;;  %v2184_v18 = vmul.f32 -0.5, %v5452_v33 }
 0x179   :  { %v2141_v63 = vsub.f32 0.0, %v2125_v35  ;;  %v5463_v48 = vadd.f32 %v5354_v25, %v2072_v20  ;;  %v5476_v35 = vpop.eup %4161  ;;  %v2187_v27 = vand.u32 2147483647, %v5452_v33 }
 0x17a   :  { %v2128_v34 = vand.u32 2147483647, %v5457_v54  ;;  %4171 = vlog2.f32 %v2181_v38  ;;  %v2167_v21 = vmul.f32 1.442695, %v2142_v3  ;;  %v2185_v58 = vadd.f32 1.0, %v2184_v18 }
 0x17b   :  { %v2127_v28 = vand.u32 2147483647, %v5463_v48  ;;  %v3684_v7 = vpop.f32.mrb[12].mxu0  ;;  %4173 = vpow2.f32 %v2163_v60  ;;  %v2165_v20 = vmul.f32 1.442695, %v2141_v63  ;;  %v2190_v18 = vadd.f32 1.0, %v5476_v35 }
 0x17c   :  { %v2144_v2 = vsub.f32 0.0, %v2128_v34  ;;  %v5474_v32 = vadd.f32 %v3684_v7, %v5354_v25  ;;  %v2082_v40 = vpop.f32.mrb[13].mxu0  ;;  %4175 = vpow2.f32 %v2161_v50  ;;  %v2678_v34 = vpop.trf.xlu0 }
 0x17d   :  { %v5481_v61 = vadd.f32 %v5354_v25, %v2082_v40  ;;  %v2143_v36 = vsub.f32 0.0, %v2127_v28  ;;  %4177 = vcosq.f32 %v776_v15  ;;  %v5485_v7 = vpop.eup %4163  ;;  %3774 = vmatmul.mubr.msk.f32.gmra.mrb[30].mxu0 %vm2679_vm0, %v2678_v34  ;;  %vm2188_vm0 = vcmp.lt.f32.partialorder %v2187_v27, 0.0004427343 }
 0x17e   :  { %6771 = vst [vmem:[#allocation31_spill] sm:$0xff] %v5474_v32  ;;  %v2130_v63 = vand.u32 2147483647, %v5474_v32  ;;  %4179 = vpow2.f32 %v2167_v21  ;;  %v5490_v40 = vpop.eup %4165  ;;  %v2171_v6 = vmul.f32 1.442695, %v2144_v2  ;;  %v2208_v27 = vadd.f32 1.0, %v5485_v7 }
 0x17f   :  { %v2129_v50 = vand.u32 2147483647, %v5481_v61  ;;  %v3687_v3 = vpop.f32.mrb[14].mxu0  ;;  %4181 = vpow2.f32 %v2165_v20  ;;  %v5495_v22 = vpop.eup %4167  ;;  %v2169_v34 = vmul.f32 1.442695, %v2143_v36  ;;  %v2193_v20 = vmul.f32 -0.5, %v5476_v35 }
 0x180   :  { %v2146_v28 = vsub.f32 0.0, %v2130_v63  ;;  %v5493_v1 = vadd.f32 %v3687_v3, %v5354_v25  ;;  %v2092_v38 = vpop.f32.mrb[15].mxu0  ;;  %4183 = vsinq.f32 %v776_v15  ;;  %v5504_v2 = vpop.eup %4169  ;;  %v2199_v15 = vadd.f32 1.0, %v5490_v40 }
 0x181   :  { %v2145_v21 = vsub.f32 0.0, %v2129_v50  ;;  %v5498_v60 = vadd.f32 %v5354_v25, %v2092_v38  ;;  %v2186_v50 = vmul.f32 %v5452_v33, %v2185_v58  ;;  %4185 = vlog2.f32 %v2190_v18 }
 0x182   :  { %6772 = vst [vmem:[#allocation32_spill] sm:$0xff] %v5493_v1  ;;  %v2132_v53 = vand.u32 2147483647, %v5493_v1  ;;  %4187 = vpow2.f32 %v2171_v6  ;;  %v2175_v38 = vmul.f32 1.442695, %v2146_v28  ;;  %v2194_v3 = vadd.f32 1.0, %v2193_v20 }
 0x183   :  { %6773 = vst [vmem:[#allocation33_spill] sm:$0xff] %v5498_v60  ;;  %v2131_v63 = vand.u32 2147483647, %v5498_v60  ;;  %v2173_v36 = vmul.f32 1.442695, %v2145_v21  ;;  %4189 = vpow2.f32 %v2169_v34  ;;  %v2202_v26 = vmul.f32 -0.5, %v5490_v40 }
 0x184   :  { %v4172_v25 = vpop.eup %4171  ;;  %v2148_v47 = vsub.f32 0.0, %v2132_v53  ;;  %v2196_v28 = vand.u32 2147483647, %v5476_v35  ;;  %4191 = vlog2.f32 %v2199_v15  ;;  %v6774_v18 = vmax.f32 %v5372_v59, 0.0 }
 0x185   :  { %v2147_v0 = vsub.f32 0.0, %v2131_v63  ;;  %v2183_v30 = vmul.f32 0.6931472, %v4172_v25  ;;  %v5511_v9 = vpop.eup %4173  ;;  %4193 = vpow2.f32 %v2175_v38  ;;  %v2203_v38 = vadd.f32 1.0, %v2202_v26 }
 0x186   :  { %v5514_v33 = vpop.eup %4175  ;;  %4195 = vpow2.f32 %v2173_v36  ;;  %v5525_v20 = vmul.f32 1.442695, %v2148_v47  ;;  %v2217_v15 = vadd.f32 1.0, %v5504_v2  ;;  %v2195_v59 = vmul.f32 %v5476_v35, %v2194_v3 }
 0x187   :  { %v2177_v58 = vmul.f32 1.442695, %v2147_v0  ;;  %v2189_v6 = vsel %vm2188_vm0, %v2186_v50, %v2183_v30  ;;  %v5517_v21 = vpop.eup %4177  ;;  %v2205_v30 = vand.u32 2147483647, %v5490_v40  ;;  %v2211_v0 = vmul.f32 -0.5, %v5485_v7 }
 0x188   :  { %v2325_v63 = vadd.f32 %v2189_v6, %v6774_v18  ;;  %v5523_v34 = vpop.eup %4179  ;;  %4197 = vlog2.f32 %v2208_v27  ;;  %vm5533_vm2 = vcmp.lt.f32.partialorder %v2196_v28, 0.0004427343  ;;  %v2220_v47 = vmul.f32 -0.5, %v5504_v2 }
 0x189   :  { %v5529_v50 = vpop.eup %4181  ;;  %4199 = vpow2.f32 %v2177_v58  ;;  %v2214_v18 = vand.u32 2147483647, %v5485_v7  ;;  %v2226_v26 = vadd.f32 1.0, %v5495_v22  ;;  %vm5543_vm3 = vcmp.lt.f32.partialorder %v2205_v30, 0.0004427343 }
 0x18a   :  { %v3435_v25 = vadd.f32 -0.6931472, %v2325_v63  ;;  %v5538_v36 = vpop.eup %4183  ;;  %4201 = vlog2.f32 %v2217_v15  ;;  %v2229_v63 = vmul.f32 -0.5, %v5495_v22  ;;  %v2212_v35 = vadd.f32 1.0, %v2211_v0 }
 0x18b   :  { %v4186_v27 = vpop.eup %4185  ;;  %v2223_v3 = vand.u32 2147483647, %v5504_v2  ;;  %v2235_v28 = vadd.f32 1.0, %v5514_v33  ;;  %v2204_v55 = vmul.f32 %v5490_v40, %v2203_v38  ;;  %4203 = vlog2.f32 %v2226_v26 }
 0x18c   :  { %3720 = vmatprep.mubr.f32.mxu1 %v3435_v25  ;;  %v5549_v53 = vpop.eup %4187  ;;  %v2192_v25 = vmul.f32 0.6931472, %v4186_v27  ;;  %v2232_v15 = vand.u32 2147483647, %v5495_v22  ;;  %v2221_v19 = vadd.f32 1.0, %v2220_v47  ;;  %v2230_v14 = vadd.f32 1.0, %v2229_v63 }
 0x18d   :  { %4205 = vlog2.f32 %v2235_v28  ;;  %v2238_v30 = vmul.f32 -0.5, %v5514_v33  ;;  %v5554_v11 = vpop.eup %4189  ;;  %vm5558_vm4 = vcmp.lt.f32.partialorder %v2214_v18, 0.0004427343  ;;  %v2244_v27 = vadd.f32 1.0, %v5511_v9 }
 0x18e   :  { %v2198_v0 = vsel %vm5533_vm2, %v2195_v59, %v2192_v25  ;;  %v2247_v40 = vmul.f32 -0.5, %v5511_v9  ;;  %v4192_v38 = vpop.eup %4191  ;;  %v6781_v47 = vmax.f32 %v5367_v45, 0.0  ;;  %v2213_v63 = vmul.f32 %v5485_v7, %v2212_v35 }
 0x18f   :  { %vm5567_vm5 = vcmp.lt.f32.partialorder %v2223_v3, 0.0004427343  ;;  %v2241_v59 = vand.u32 2147483647, %v5514_v33  ;;  %v5572_v6 = vpop.eup %4193  ;;  %v2201_v18 = vmul.f32 0.6931472, %v4192_v38  ;;  %4207 = vlog2.f32 %v2244_v27 }
 0x190   :  { %v2326_v26 = vadd.f32 %v2198_v0, %v6781_v47  ;;  %vm5574_vm6 = vcmp.lt.f32.partialorder %v2232_v15, 0.0004427343  ;;  %v2239_v1 = vadd.f32 1.0, %v2238_v30  ;;  %v2253_v45 = vadd.f32 1.0, %v5529_v50  ;;  %v5579_v0 = vpop.eup %4195 }
 0x191   :  { %v2222_v35 = vmul.f32 %v5504_v2, %v2221_v19  ;;  %v2231_v3 = vmul.f32 %v5495_v22, %v2230_v14  ;;  %v2250_v47 = vand.u32 2147483647, %v5511_v9  ;;  %v2207_v30 = vsel %vm5543_vm3, %v2204_v55, %v2201_v18 }
 0x192   :  { %v3436_v7 = vadd.f32 -0.6931472, %v2326_v26  ;;  %v4198_v15 = vpop.eup %4197  ;;  %v2248_v27 = vadd.f32 1.0, %v2247_v40  ;;  %4209 = vlog2.f32 %v2253_v45  ;;  %v2256_v38 = vmul.f32 -0.5, %v5529_v50 }
 0x193   :  { %v5590_v26 = vpop.eup %4199  ;;  %v6786_v14 = vmax.f32 %v5393_v16, 0.0  ;;  %v2210_v22 = vmul.f32 0.6931472, %v4198_v15  ;;  %vm5594_vm10 = vcmp.lt.f32.partialorder %v2241_v59, 0.0004427343  ;;  %v2262_v58 = vadd.f32 1.0, %v5523_v34 }
 0x194   :  { %3721 = vmatmul.mubr.f32.vlgmr.msra.gmra.mrb[0].mxu1 %v3436_v7  ;;  %v4202_v55 = vpop.eup %4201  ;;  %v2240_v40 = vmul.f32 %v5514_v33, %v2239_v1  ;;  %v2259_v18 = vand.u32 2147483647, %v5529_v50  ;;  %v2265_v45 = vmul.f32 -0.5, %v5523_v34  ;;  %v2271_v7 = vadd.f32 1.0, %v5554_v11 }
 0x195   :  { %v2327_v19 = vadd.f32 %v2207_v30, %v6786_v14  ;;  %v2216_v59 = vsel %vm5558_vm4, %v2213_v63, %v2210_v22  ;;  %v2219_v15 = vmul.f32 0.6931472, %v4202_v55  ;;  %vm5606_vm12 = vcmp.lt.f32.partialorder %v2250_v47, 0.0004427343  ;;  %v4204_v14 = vpop.eup %4203 }
 0x196   :  { %v2328_v60 = vadd.f32 %v2216_v59, %v6791_v56  ;;  %v2249_v1 = vmul.f32 %v5511_v9, %v2248_v27  ;;  %v2257_v33 = vadd.f32 1.0, %v2256_v38  ;;  %4211 = vlog2.f32 %v2262_v58 }
 0x197   :  { %v3437_v16 = vadd.f32 -0.6931472, %v2327_v19  ;;  %v4206_v44 = vpop.eup %4205  ;;  %v2225_v19 = vsel %vm5567_vm5, %v2222_v35, %v2219_v15  ;;  %v2228_v17 = vmul.f32 0.6931472, %v4204_v14  ;;  %v2266_v63 = vadd.f32 1.0, %v2265_v45 }
 0x198   :  { %4213 = vlog2.f32 %v2271_v7  ;;  %v3438_v47 = vadd.f32 -0.6931472, %v2328_v60  ;;  %v6792_v22 = vmax.f32 %v5416_v57, 0.0  ;;  %v2237_v32 = vmul.f32 0.6931472, %v4206_v44 }
 0x199   :  { %3723 = vmatprep.mubr.f32.mxu1 %v3437_v16  ;;  %vm5617_vm13 = vcmp.lt.f32.partialorder %v2259_v18, 0.0004427343  ;;  %v2234_v56 = vsel %vm5574_vm6, %v2231_v3, %v2228_v17  ;;  %v2268_v9 = vand.u32 2147483647, %v5523_v34  ;;  %v2274_v28 = vmul.f32 -0.5, %v5554_v11  ;;  %v4208_v27 = vpop.eup %4207 }
 0x19a   :  { %v2329_v55 = vadd.f32 %v2225_v19, %v6792_v22  ;;  %v784_v35 = vxor.u32 2147483648, %v5538_v36  ;;  %3724 = vmatmul.mubr.f32.gmra.mrb[2].mxu1 %v3438_v47  ;;  %v6795_v57 = vmax.f32 %v5409_v37, 0.0  ;;  %v2243_v44 = vsel %vm5594_vm10, %v2240_v40, %v2237_v32 }
 0x19b   :  { %v787_v58 = vxor.u32 2147483648, %v5517_v21  ;;  %v6796_v25 = vmax.f32 %v5432_v49, 0.0  ;;  %v2246_v18 = vmul.f32 0.6931472, %v4208_v27  ;;  %v2258_v45 = vmul.f32 %v5529_v50, %v2257_v33 }
 0x19c   :  { %v3439_v60 = vadd.f32 -0.6931472, %v2329_v55  ;;  %v2330_v38 = vadd.f32 %v2234_v56, %v6795_v57  ;;  %v2267_v7 = vmul.f32 %v5523_v34, %v2266_v63  ;;  %v4210_v16 = vpop.eup %4209  ;;  %v785_v37 = vsel %vm783_vm7, %v5517_v21, %v784_v35 }
 0x19d   :  { %v2331_v3 = vadd.f32 %v2243_v44, %v6796_v25  ;;  %v788_v32 = vsel %vm786_vm8, %v787_v58, %v5538_v36  ;;  %v2280_v2 = vadd.f32 1.0, %v5549_v53  ;;  %v2252_v40 = vsel %vm5606_vm12, %v2249_v1, %v2246_v18 }
 0x19e   :  { %3726 = vmatprep.mubr.f32.mxu1 %v3439_v60  ;;  %v3440_v59 = vadd.f32 -0.6931472, %v2330_v38  ;;  %v2255_v50 = vmul.f32 0.6931472, %v4210_v16  ;;  %v789_v34 = vsel %vm782_vm9, %v785_v37, %v788_v32  ;;  %v6797_v15 = vmax.f32 %v5428_v4, 0.0 }
 0x19f   :  { %v3441_v49 = vadd.f32 -0.6931472, %v2331_v3  ;;  %v2275_v33 = vadd.f32 1.0, %v2274_v28  ;;  %v790_v21 = vsel %vm780_vm11, nan, %v789_v34  ;;  %4215 = vlog2.f32 %v2280_v2 }
 0x1a0   :  { %3727 = vmatmul.mubr.f32.gmra.mrb[4].mxu1 %v3440_v59  ;;  %v2332_v14 = vadd.f32 %v2252_v40, %v6797_v15  ;;  %v2261_v36 = vsel %vm5617_vm13, %v2258_v45, %v2255_v50  ;;  %v2277_v30 = vand.u32 2147483647, %v5554_v11  ;;  %v1826_v1 = vadd.f32 1.0, %v790_v21  ;;  %v4212_v5 = vpop.eup %4211 }
 0x1a1   :  { %3729 = vmatprep.mubr.f32.mxu1 %v3441_v49  ;;  %v2289_v19 = vadd.f32 1.0, %v5579_v0  ;;  %v6798_v4 = vmax.f32 %v5443_v31, 0.0  ;;  %v2283_v10 = vmul.f32 -0.5, %v5549_v53  ;;  %v2292_v47 = vmul.f32 -0.5, %v5579_v0 }
 0x1a2   :  { %v3442_v17 = vadd.f32 -0.6931472, %v2332_v14  ;;  %v4214_v22 = vpop.eup %4213  ;;  %v2264_v55 = vmul.f32 0.6931472, %v4212_v5  ;;  %v1842_v43 = vmul.f32 0.5, %v1826_v1  ;;  %v2276_v27 = vmul.f32 %v5554_v11, %v2275_v33 }
 0x1a3   :  { %v2333_v63 = vadd.f32 %v2261_v36, %v6798_v4  ;;  %v2286_v56 = vand.u32 2147483647, %v5549_v53  ;;  %4217 = vlog2.f32 %v2289_v19  ;;  %vm2269_vm15 = vcmp.lt.f32.partialorder %v2268_v9, 0.0004427343 }
 0x1a4   :  { %3730 = vmatmul.mubr.f32.gmra.mrb[6].mxu1 %v3442_v17  ;;  %v2273_v35 = vmul.f32 0.6931472, %v4214_v22  ;;  %v2270_v60 = vsel %vm2269_vm15, %v2267_v7, %v2264_v55  ;;  %vm2278_vm1 = vcmp.lt.f32.partialorder %v2277_v30, 0.0004427343  ;;  %v1906_v31 = vmul.f32 %v5341_v23, %v1842_v43 }
 0x1a5   :  { %v3443_v28 = vadd.f32 -0.6931472, %v2333_v63  ;;  %v6799_v57 = vand.u32 2147483647, %v5163_v52  ;;  %v6802_v44 = vclz %v5447_v13  ;;  %v6803_v25 = vmax.f32 %v5440_v41, 0.0 }
 0x1a6   :  { %v2279_v3 = vsel %vm2278_vm1, %v2276_v27, %v2273_v35  ;;  %v2284_v18 = vadd.f32 1.0, %v2283_v10  ;;  %v2293_v11 = vadd.f32 1.0, %v2292_v47  ;;  %4219 = vpow2.f32 %v5525_v20  ;;  %2552 = vperm.xlu1 %4141, %v1906_v31  }
 0x1a7   :  { %vm5664_vm0 = vcmp.le.f32.partialorder %v6799_v57, 0.7853982  ;;  %v3380_v58 = vadd.s32 4294967294, %v6802_v44  ;;  %3732 = vmatprep.mubr.f32.mxu1 %v3443_v28  ;;  %v2334_v9 = vadd.f32 %v2270_v60, %v6803_v25  ;;  %v6804_v23 = vmax.f32 %v5463_v48, 0.0 }
 0x1a8   :  { %vm5675_vm2 = vcmp.lt.f32.partialorder %v2286_v56, 0.0004427343  ;;  %v2295_v16 = vand.u32 2147483647, %v5579_v0  ;;  %v2298_v41 = vadd.f32 1.0, %v5572_v6  ;;  %v2285_v48 = vmul.f32 %v5549_v53, %v2284_v18 }
 0x1a9   :  { %v2335_v45 = vadd.f32 %v2279_v3, %v6804_v23  ;;  %vm3381_vm3 = vcmp.lt.s32.totalorder %v3380_v58, 0  ;;  %v3444_v13 = vadd.f32 -0.6931472, %v2334_v9  ;;  %v4216_v49 = vpop.eup %4215  ;;  %v2294_v40 = vmul.f32 %v5579_v0, %v2293_v11 }
 0x1aa   :  { %v862_v59 = vsel %vm3381_vm3, 0, %v3380_v58  ;;  %v6807_v50 = vsub.s32 4, %v5386_v42  ;;  %4221 = vlog2.f32 %v2298_v41  ;;  %v2282_v15 = vmul.f32 0.6931472, %v4216_v49 }
 0x1ab   :  { %v3445_v37 = vadd.f32 -0.6931472, %v2335_v45  ;;  %v863_v32 = vsub.s32 32, %v862_v59  ;;  %v864_v2 = vshll.u32 %v5420_v62, %v862_v59  ;;  %v867_v20 = vsub.s32 4294967266, %v862_v59  ;;  %3733 = vmatmul.mubr.f32.gmra.mrb[8].mxu1 %v3444_v13 }
 0x1ac   :  { %v5689_v34 = vsel %vm793_vm14, %v6807_v50, %v5386_v42  ;;  %v2301_v33 = vmul.f32 -0.5, %v5572_v6  ;;  %vm5693_vm4 = vcmp.lt.f32.partialorder %v2295_v16, 0.0004427343  ;;  %v2304_v53 = vand.u32 2147483647, %v5572_v6  ;;  %v6818_v50 = vld [vmem:[#allocation31_spill] sm:$0xff] }
 0x1ad   :  { %3735 = vmatprep.mubr.f32.mxu1 %v3445_v37  ;;  %v865_v14 = vshrl.u32 %v5402_v39, %v863_v32  ;;  %v868_v62 = vadd.s32 127, %v867_v20  ;;  %v2307_v0 = vadd.f32 1.0, %v5590_v26  ;;  %v2310_v36 = vmul.f32 -0.5, %v5590_v26  ;;  %v4218_v42 = vpop.eup %4217 }
 0x1ae   :  { %v2288_v30 = vsel %vm5675_vm2, %v2285_v48, %v2282_v15  ;;  %v2302_v39 = vadd.f32 1.0, %v2301_v33  ;;  %v6810_v5 = vmax.f32 %v5457_v54, 0.0  ;;  %v2291_v4 = vmul.f32 0.6931472, %v4218_v42 }
 0x1af   :  { %v866_v1 = vor.u32 %v865_v14, %v864_v2  ;;  %v869_v19 = vshll.u32 %v868_v62, 23  ;;  %v880_v63 = vsel %vm5664_vm0, 0, %v5689_v34  ;;  %4223 = vlog2.f32 %v2307_v0 }
 0x1b0   :  { %v2336_v17 = vadd.f32 %v2288_v30, %v6810_v5  ;;  %vm5707_vm5 = vcmp.lt.f32.partialorder %v2304_v53, 0.0004427343  ;;  %v2313_v55 = vand.u32 2147483647, %v5590_v26  ;;  %v2297_v56 = vsel %vm5693_vm4, %v2294_v40, %v2291_v4  ;;  %v5716_v27 = vpop.eup %4219  ;;  %v6821_v5 = vld [vmem:[#allocation33_spill] sm:$0xff] }
 0x1b1   :  { %v870_v10 = vor.u32 4788187, %v869_v19  ;;  %v873_v47 = vcvt.s32.f32 %v866_v1  ;;  %v2311_v54 = vadd.f32 1.0, %v2310_v36  ;;  %v6813_v28 = vmov 2131351028   ;;  %v6820_v1 = vld [vmem:[#allocation30_spill] sm:$0xff] }
 0x1b2   :  { %v3446_v43 = vadd.f32 -0.6931472, %v2336_v17  ;;  %v915_v35 = vshrl.u32 %v6813_v28, %v5376_v51  ;;  %v6814_v60 = vmax.f32 %v5481_v61, 0.0  ;;  %v2303_v44 = vmul.f32 %v5572_v6, %v2302_v39 }
 0x1b3   :  { %v871_v57 = vand.u32 2147483647, %v870_v10  ;;  %v917_v58 = vshll.u32 %v6813_v28, %v5358_v29  ;;  %v6815_v9 = vmov 2102212464   ;;  %v6816_v11 = vmov 920167782  }
 0x1b4   :  { %v2337_v31 = vadd.f32 %v2297_v56, %v6814_v60  ;;  %3736 = vmatmul.mubr.f32.gmra.mrb[10].mxu1 %v3446_v43  ;;  %v916_v25 = vor.u32 %v915_v35, %v5397_v46  ;;  %v918_v3 = vshrl.u32 %v6815_v9, %v5376_v51  ;;  %v920_v18 = vshll.u32 %v6815_v9, %v5358_v29  ;;  %v4222_v16 = vpop.eup %4221 }
 0x1b5   :  { %v921_v23 = vshrl.u32 %v6816_v11, %v5376_v51  ;;  %v874_v45 = vmul.f32 %v873_v47, %v871_v57  ;;  %v923_v6 = vshll.u32 %v6816_v11, %v5358_v29  ;;  %v6817_v7 = vmov 1326507024  }
 0x1b6   :  { %v3447_v61 = vadd.f32 -0.6931472, %v2337_v31  ;;  %v924_v13 = vshrl.u32 %v6817_v7, %v5376_v51  ;;  %v2312_v46 = vmul.f32 %v5590_v26, %v2311_v54  ;;  %v919_v59 = vor.u32 %v918_v3, %v917_v58  ;;  %v6823_v31 = vld [vmem:[#allocation29_spill] sm:$0xff] }
 0x1b7   :  { %v922_v41 = vor.u32 %v921_v23, %v920_v18  ;;  %vm926_vm6 = vcmp.lt.s32.totalorder %v5361_v24, 1  ;;  %v875_v37 = vxor.u32 2147483648, %v874_v45  ;;  %v2300_v32 = vmul.f32 0.6931472, %v4222_v16  ;;  %v5807_v23 = vld [vmem:[%s6715_s5 + $0x48] sm:$0xff] }
 0x1b8   :  { %3738 = vmatprep.mubr.f32.mxu1 %v3447_v61  ;;  %vm927_vm7 = vcmp.lt.s32.totalorder %v5361_v24, 2  ;;  %vm928_vm8 = vcmp.lt.s32.totalorder %v5361_v24, 3  ;;  %v925_v2 = vor.u32 %v924_v13, %v923_v6  ;;  %vm929_vm9 = vcmp.lt.s32.totalorder %v5361_v24, 4 }
 0x1b9   :  { %v930_v29 = vsel %vm926_vm6, %v5413_v8, %v5450_v12  ;;  %v934_v51 = vsel %vm926_vm6, %v5450_v12, %v916_v25  ;;  %v876_v26 = vsel %vm793_vm14, %v875_v37, %v874_v45  ;;  %v2306_v20 = vsel %vm5707_vm5, %v2303_v44, %v2300_v32  ;;  %v4224_v40 = vpop.eup %4223 }
 0x1ba   :  { %v931_v49 = vsel %vm929_vm9, %v919_v59, 2102212464  ;;  %v935_v48 = vsel %vm929_vm9, %v922_v41, 920167782  ;;  %v879_v8 = vsel %vm5664_vm0, %v5163_v52, %v876_v26  ;;  %v6819_v15 = vmax.f32 %v6818_v50, 0.0  ;;  %v6825_v26 = vld [vmem:[#allocation32_spill] sm:$0xff] }
 0x1bb   :  { %v936_v14 = vsel %vm928_vm8, %v919_v59, %v935_v48  ;;  %v938_v62 = vsel %vm926_vm6, %v916_v25, %v919_v59  ;;  %4225 = vcosq.f32 %v879_v8  ;;  %v2309_v33 = vmul.f32 0.6931472, %v4224_v40 }
 0x1bc   :  { %v2338_v12 = vadd.f32 %v2306_v20, %v6819_v15  ;;  %v932_v21 = vsel %vm928_vm8, %v916_v25, %v931_v49  ;;  %v937_v53 = vsel %vm927_vm7, %v934_v51, %v936_v14  ;;  %4227 = vsinq.f32 %v879_v8  ;;  %v4287_v25 = vld [vmem:[%s6715_s5 + $0x30] sm:$0xff] }
 0x1bd   :  { %vm2314_vm10 = vcmp.lt.f32.partialorder %v2313_v55, 0.0004427343  ;;  %v939_v36 = vsel %vm929_vm9, %v925_v2, 1326507024  ;;  %v5772_v19 = vmul.u32.u64.low %v6820_v1, %v937_v53  ;;  %v5773_v39 = vmul.u32.u64.high %v6820_v1, %v937_v53, %v5772_v19 }
 0x1be   :  { %v3448_v0 = vadd.f32 -0.6931472, %v2338_v12  ;;  %v2315_v42 = vsel %vm2314_vm10, %v2312_v46, %v2309_v33  ;;  %v940_v30 = vsel %vm928_vm8, %v922_v41, %v939_v36  ;;  %v6822_v17 = vmax.f32 %v6821_v5, 0.0 }
 0x1bf   :  { %v933_v10 = vsel %vm927_vm7, %v930_v29, %v932_v21  ;;  %v941_v47 = vsel %vm927_vm7, %v938_v62, %v940_v30  ;;  %v2316_v43 = vadd.f32 1.0, %v5716_v27  ;;  %v884_v56 = vand.u32 3, %v880_v63 }
 0x1c0   :  { %3739 = vmatmul.mubr.f32.gmra.mrb[12].mxu1 %v3448_v0  ;;  %v2339_v4 = vadd.f32 %v2315_v42, %v6822_v17  ;;  %v5783_v22 = vmul.u32.u64.low %v6820_v1, %v941_v47  ;;  %v5784_v55 = vmul.u32.u64.high %v6820_v1, %v941_v47, %v5783_v22  ;;  %v949_v35 = vmul.u32 %v6820_v1, %v933_v10 }
 0x1c1   :  { %v952_v60 = vadd.s32 1, %v5773_v39  ;;  %4229 = vlog2.f32 %v2316_v43  ;;  %v6824_v24 = vand.u32 2139095040, %v6823_v31  ;;  %v997_v44 = vand.u32 2147483647, %v6823_v31 }
 0x1c2   :  { %v3449_v54 = vadd.f32 -0.6931472, %v2339_v4  ;;  %vm951_vm11 = vc.u32 %v5784_v55, %v5772_v19  ;;  %vm883_vm12 = vweird.f32 %v5163_v52  ;;  %v2319_v34 = vmul.f32 -0.5, %v5716_v27 }
 0x1c3   :  { %v1001_v57 = vshrl.u32 %v6824_v24, 23  ;;  %v953_v38 = vsel %vm951_vm11, %v952_v60, %v5773_v39  ;;  %vm889_vm13 = vcmp.eq.s32.totalorder %v884_v56, 2  ;;  %vm1859_vm14 = vcmp.lt.f32.partialorder %v4287_v25, 0.5 }
 0x1c4   :  { %3741 = vmatprep.mubr.f32.mxu1 %v3449_v54  ;;  %v954_v3 = vadd.s32 %v953_v38, %v949_v35  ;;  %vm885_vm15 = vcmp.lt.s32.totalorder %v884_v56, 2  ;;  %vm886_vm1 = vcmp.eq.s32.totalorder %v884_v56, 0  ;;  %v2322_v6 = vand.u32 2147483647, %v5716_v27 }
 0x1c5   :  { %v3386_v58 = vadd.s32 4294967169, %v1001_v57  ;;  %v4226_v63 = vpop.eup %4225  ;;  %v1004_v46 = vand.u32 8388607, %v997_v44  ;;  %v2320_v41 = vadd.f32 1.0, %v2319_v34  ;;  %v5813_v32 = vmul.f32 6.2831855, %v5807_v23 }
 0x1c6   :  { %v4228_v61 = vpop.eup %4227  ;;  %v890_v45 = vxor.u32 2147483648, %v4226_v63  ;;  %v955_v16 = vadd.s32 536870912, %v954_v3  ;;  %v2116_v20 = vmax.f32 %v6825_v26, 0.0  ;;  %v6826_v48 = vmov 0.0  }
 0x1c7   :  { %v1007_v18 = vadd.s32 1, %v3386_v58  ;;  %v887_v13 = vxor.u32 2147483648, %v4228_v61  ;;  %v3424_v40 = vsel %vm1859_vm14, 1.0, %v6826_v48  ;;  %vm5821_vm2 = vcmp.lt.f32.partialorder %v2322_v6, 0.0004427343 }
 0x1c8   :  { %v891_v59 = vsel %vm889_vm13, %v890_v45, %v4228_v61  ;;  %v5815_v29 = vshrl.u32 %v955_v16, 30  ;;  %v1005_v14 = vor.u32 8388608, %v1004_v46  ;;  %v2321_v53 = vmul.f32 %v5716_v27, %v2320_v41 }
 0x1c9   :  { %vm1008_vm0 = vcmp.gt.s32.totalorder %v1007_v18, 0  ;;  %v888_v2 = vsel %vm886_vm1, %v4226_v63, %v887_v13  ;;  %v1103_v0 = vand.u32 2139095040, %v5813_v32  ;;  %v6829_v42 = vmov 683565275  }
 0x1ca   :  { %v1009_v37 = vsel %vm1008_vm0, %v1007_v18, 0  ;;  %v892_v49 = vsel %vm885_vm15, %v888_v2, %v891_v59  ;;  %v957_v12 = vshll.u32 %v5815_v29, 30  ;;  %v6830_v1 = vmov 2475754826  }
 0x1cb   :  { %v1011_v51 = vand.u32 31, %v1009_v37  ;;  %v4230_v50 = vpop.eup %4229  ;;  %v893_v15 = vsel %vm883_vm12, nan, %v892_v49  ;;  %v950_v17 = vadd.s32 %v5772_v19, %v5784_v55  ;;  %v1010_v22 = vshrl.u32 %v1009_v37, 5 }
 0x1cc   :  { %v1827_v33 = vadd.f32 1.0, %v893_v15  ;;  %v2318_v21 = vmul.f32 0.6931472, %v4230_v50  ;;  %v5830_v36 = vsub.s32 %v954_v3, %v957_v12  ;;  %v5841_v43 = vshll.u32 %v1005_v14, 8 }
 0x1cd   :  { %v1012_v62 = vsub.s32 32, %v1011_v51  ;;  %v1014_v30 = vshll.u32 %v6829_v42, %v1011_v51  ;;  %v1017_v5 = vshll.u32 %v6830_v1, %v1011_v51  ;;  %v1020_v54 = vshll.u32 %v6813_v28, %v1011_v51 }
 0x1ce   :  { %v1843_v52 = vmul.f32 0.5, %v1827_v33  ;;  %v2324_v4 = vsel %vm5821_vm2, %v2321_v53, %v2318_v21  ;;  %v960_v27 = vsub.s32 0, %v5830_v36  ;;  %v1104_v60 = vshrl.u32 %v1103_v0, 23 }
 0x1cf   :  { %v1015_v39 = vshrl.u32 %v6830_v1, %v1012_v62  ;;  %v1018_v10 = vshrl.u32 %v6813_v28, %v1012_v62  ;;  %v2340_v47 = vadd.f32 %v2324_v4, %v2116_v20  ;;  %v1021_v35 = vshrl.u32 %v6815_v9, %v1012_v62 }
 0x1d0   :  { %v1907_v56 = vmul.f32 %v3424_v40, %v1843_v52  ;;  %v3383_v24 = vmin.u32 %v960_v27, %v5830_v36  ;;  %v1013_v19 = vshrl.u32 %v6829_v42, %v1012_v62  ;;  %v1023_v34 = vshll.u32 %v6815_v9, %v1011_v51  ;;  %v5873_v27 = vld [vmem:[%s6715_s5 + $0x50] sm:$0xff] }
 0x1d1   :  { %v1016_v55 = vor.u32 %v1015_v39, %v1014_v30  ;;  %v1019_v57 = vor.u32 %v1018_v10, %v1017_v5  ;;  %v3450_v58 = vadd.f32 -0.6931472, %v2340_v47  ;;  %v1022_v38 = vor.u32 %v1021_v35, %v1020_v54 }
 0x1d2   :  { %2557 = vperm.xlu1 %4141, %v1907_v56   ;;  %v1024_v63 = vshrl.u32 %v6816_v11, %v1012_v62  ;;  %v962_v25 = vclz %v3383_v24  ;;  %v1026_v3 = vshll.u32 %v6816_v11, %v1011_v51  ;;  %v1027_v18 = vshrl.u32 %v6817_v7, %v1012_v62 }
 0x1d3   :  { %vm1029_vm3 = vcmp.lt.s32.totalorder %v1010_v22, 1  ;;  %3742 = vmatmul.mubr.f32.gmra.mrb[14].mxu1 %v3450_v58  ;;  %vm1030_vm4 = vcmp.lt.s32.totalorder %v1010_v22, 2  ;;  %vm1031_vm5 = vcmp.lt.s32.totalorder %v1010_v22, 3  ;;  %vm1032_vm6 = vcmp.lt.s32.totalorder %v1010_v22, 4  ;;  %v6831_v22 = vld [vmem:[#allocation28_spill] sm:$0xff] }
 0x1d4   :  { %v1025_v61 = vor.u32 %v1024_v63, %v1023_v34  ;;  %v3384_v45 = vadd.s32 4294967294, %v962_v25  ;;  %v1028_v6 = vor.u32 %v1027_v18, %v1026_v3  ;;  %v1033_v13 = vsel %vm1029_vm3, %v1013_v19, %v1016_v55 }
 0x1d5   :  { %v1034_v16 = vsel %vm1032_vm6, %v1022_v38, 2102212464  ;;  %v1037_v59 = vsel %vm1029_vm3, %v1016_v55, %v1019_v57  ;;  %v1041_v37 = vsel %vm1029_vm3, %v1019_v57, %v1022_v38  ;;  %v3390_v26 = vadd.s32 4294967169, %v1104_v60 }
 0x1d6   :  { %v1035_v46 = vsel %vm1031_vm5, %v1019_v57, %v1034_v16  ;;  %v1038_v41 = vsel %vm1032_vm6, %v1025_v61, 920167782  ;;  %vm3385_vm7 = vcmp.lt.s32.totalorder %v3384_v45, 0  ;;  %v1042_v51 = vsel %vm1032_vm6, %v1028_v6, 1326507024 }
 0x1d7   :  { %v1039_v2 = vsel %vm1031_vm5, %v1022_v38, %v1038_v41  ;;  %v965_v20 = vsel %vm3385_vm7, 0, %v3384_v45  ;;  %v1036_v49 = vsel %vm1030_vm4, %v1033_v13, %v1035_v46  ;;  %v1043_v8 = vsel %vm1031_vm5, %v1025_v61, %v1042_v51 }
 0x1d8   :  { %v1040_v40 = vsel %vm1030_vm4, %v1037_v59, %v1039_v2  ;;  %v966_v50 = vsub.s32 32, %v965_v20  ;;  %v967_v15 = vshll.u32 %v5830_v36, %v965_v20  ;;  %v970_v12 = vsub.s32 4294967266, %v965_v20 }
 0x1d9   :  { %v1044_v14 = vsel %vm1030_vm4, %v1041_v37, %v1043_v8  ;;  %v5863_v21 = vmul.u32.u64.low %v5841_v43, %v1040_v40  ;;  %v5864_v53 = vmul.u32.u64.high %v5841_v43, %v1040_v40, %v5863_v21  ;;  %v1110_v39 = vadd.s32 1, %v3390_v26 }
 0x1da   :  { %v5859_v62 = vmul.u32.u64.low %v5841_v43, %v1044_v14  ;;  %v5860_v33 = vmul.u32.u64.high %v5841_v43, %v1044_v14, %v5859_v62  ;;  %v968_v0 = vshrl.u32 %v950_v17, %v966_v50  ;;  %v971_v30 = vadd.s32 127, %v970_v12 }
 0x1db   :  { %v980_v5 = vsub.s32 4, %v5815_v29  ;;  %v1100_v52 = vand.u32 2147483647, %v5813_v32  ;;  %v1052_v10 = vmul.u32 %v5841_v43, %v1036_v49  ;;  %vm1111_vm8 = vcmp.gt.s32.totalorder %v1110_v39, 0 }
 0x1dc   :  { %v969_v36 = vor.u32 %v968_v0, %v967_v15  ;;  %v972_v4 = vshll.u32 %v971_v30, 23  ;;  %vm1054_vm9 = vc.u32 %v5860_v33, %v5863_v21  ;;  %v1055_v17 = vadd.s32 1, %v5864_v53 }
 0x1dd   :  { %v1112_v47 = vsel %vm1111_vm8, %v1110_v39, 0  ;;  %vm896_vm10 = vcmp.lt.s32.totalorder %v6831_v22, 0  ;;  %v1107_v24 = vand.u32 8388607, %v1100_v52  ;;  %v5886_v19 = vmul.f32 6.2831855, %v5873_v27 }
 0x1de   :  { %v973_v56 = vor.u32 4788187, %v972_v4  ;;  %v976_v54 = vcvt.s32.f32 %v969_v36  ;;  %v1114_v35 = vand.u32 31, %v1112_v47  ;;  %v981_v43 = vsel %vm896_vm10, %v980_v5, %v5815_v29 }
 0x1df   :  { %v1056_v60 = vsel %vm1054_vm9, %v1055_v17, %v5864_v53  ;;  %v1113_v58 = vshrl.u32 %v1112_v47, 5  ;;  %v6832_v59 = vand.u32 2147483647, %v6831_v22  ;;  %v1108_v51 = vor.u32 8388608, %v1107_v24  ;;  %v4288_v24 = vld [vmem:[%s6715_s5 + $0x38] sm:$0xff] }
 0x1e0   :  { %v974_v55 = vand.u32 2147483647, %v973_v56  ;;  %v1057_v57 = vadd.s32 %v1056_v60, %v1052_v10  ;;  %v1115_v38 = vsub.s32 32, %v1114_v35  ;;  %v1117_v34 = vshll.u32 %v6829_v42, %v1114_v35 }
 0x1e1   :  { %v1120_v63 = vshll.u32 %v6830_v1, %v1114_v35  ;;  %v1123_v25 = vshll.u32 %v6813_v28, %v1114_v35  ;;  %v1126_v29 = vshll.u32 %v6815_v9, %v1114_v35  ;;  %v1129_v45 = vshll.u32 %v6816_v11, %v1114_v35 }
 0x1e2   :  { %v977_v3 = vmul.f32 %v976_v54, %v974_v55  ;;  %v1058_v18 = vadd.s32 536870912, %v1057_v57  ;;  %v1118_v61 = vshrl.u32 %v6830_v1, %v1115_v38  ;;  %v1121_v6 = vshrl.u32 %v6813_v28, %v1115_v38 }
 0x1e3   :  { %v1124_v13 = vshrl.u32 %v6815_v9, %v1115_v38  ;;  %v1127_v16 = vshrl.u32 %v6816_v11, %v1115_v38  ;;  %v1130_v46 = vshrl.u32 %v6817_v7, %v1115_v38  ;;  %vm5900_vm11 = vcmp.le.f32.partialorder %v6832_v59, 0.7853982 }
 0x1e4   :  { %v978_v37 = vxor.u32 2147483648, %v977_v3  ;;  %v5904_v2 = vshrl.u32 %v1058_v18, 30  ;;  %v983_v26 = vsel %vm5900_vm11, 0, %v981_v43  ;;  %v1119_v20 = vor.u32 %v1118_v61, %v1117_v34 }
 0x1e5   :  { %vm1132_vm12 = vcmp.lt.s32.totalorder %v1113_v58, 1  ;;  %v1206_v49 = vand.u32 2139095040, %v5886_v19  ;;  %v1122_v50 = vor.u32 %v1121_v6, %v1120_v63  ;;  %v1128_v15 = vor.u32 %v1127_v16, %v1126_v29 }
 0x1e6   :  { %v979_v40 = vsel %vm896_vm10, %v978_v37, %v977_v3  ;;  %v1060_v8 = vshll.u32 %v5904_v2, 30  ;;  %v1125_v14 = vor.u32 %v1124_v13, %v1123_v25  ;;  %v1131_v62 = vor.u32 %v1130_v46, %v1129_v45 }
 0x1e7   :  { %v982_v12 = vsel %vm5900_vm11, %v6831_v22, %v979_v40  ;;  %vm1135_vm13 = vcmp.lt.s32.totalorder %v1113_v58, 4  ;;  %v1116_v0 = vshrl.u32 %v6829_v42, %v1115_v38  ;;  %vm1134_vm14 = vcmp.lt.s32.totalorder %v1113_v58, 3 }
 0x1e8   :  { %4231 = vcosq.f32 %v982_v12  ;;  %v5915_v53 = vsub.s32 %v1057_v57, %v1060_v8  ;;  %v1137_v30 = vsel %vm1135_vm13, %v1125_v14, 2102212464  ;;  %v1148_v39 = vshll.u32 %v1108_v51, 8 }
 0x1e9   :  { %4233 = vsinq.f32 %v982_v12  ;;  %v1207_v5 = vshrl.u32 %v1206_v49, 23  ;;  %vm1133_vm15 = vcmp.lt.s32.totalorder %v1113_v58, 2  ;;  %v1140_v4 = vsel %vm1132_vm12, %v1119_v20, %v1122_v50 }
 0x1ea   :  { %v1063_v36 = vsub.s32 0, %v5915_v53  ;;  %v1141_v10 = vsel %vm1135_vm13, %v1128_v15, 920167782  ;;  %v1144_v47 = vsel %vm1132_vm12, %v1122_v50, %v1125_v14  ;;  %v1145_v56 = vsel %vm1135_vm13, %v1131_v62, 1326507024 }
 0x1eb   :  { %v1142_v17 = vsel %vm1134_vm14, %v1125_v14, %v1141_v10  ;;  %v987_v54 = vand.u32 3, %v983_v26  ;;  %v1136_v43 = vsel %vm1132_vm12, %v1116_v0, %v1119_v20  ;;  %v1138_v60 = vsel %vm1134_vm14, %v1122_v50, %v1137_v30 }
 0x1ec   :  { %v3387_v35 = vmin.u32 %v1063_v36, %v5915_v53  ;;  %vm1860_vm1 = vcmp.lt.f32.partialorder %v4288_v24, 0.5  ;;  %v1143_v55 = vsel %vm1133_vm15, %v1140_v4, %v1142_v17  ;;  %v1146_v57 = vsel %vm1134_vm14, %v1128_v15, %v1145_v56 }
 0x1ed   :  { %v3394_v38 = vadd.s32 4294967169, %v1207_v5  ;;  %v1147_v63 = vsel %vm1133_vm15, %v1144_v47, %v1146_v57  ;;  %v5931_v25 = vmul.u32.u64.low %v1148_v39, %v1143_v55  ;;  %v5932_v29 = vmul.u32.u64.high %v1148_v39, %v1143_v55, %v5931_v25 }
 0x1ee   :  { %v1065_v34 = vclz %v3387_v35  ;;  %v1139_v3 = vsel %vm1133_vm15, %v1136_v43, %v1138_v60  ;;  %v5936_v18 = vmul.u32.u64.low %v1148_v39, %v1147_v63  ;;  %v5937_v61 = vmul.u32.u64.high %v1148_v39, %v1147_v63, %v5936_v18 }
 0x1ef   :  { %v1213_v45 = vadd.s32 1, %v3394_v38  ;;  %vm986_vm0 = vweird.f32 %v6831_v22  ;;  %vm988_vm2 = vcmp.lt.s32.totalorder %v987_v54, 2  ;;  %v3425_v6 = vsel %vm1860_vm1, 1.0, %v6826_v48 }
 0x1f0   :  { %v3388_v13 = vadd.s32 4294967294, %v1065_v34  ;;  %vm989_vm3 = vcmp.eq.s32.totalorder %v987_v54, 0  ;;  %vm992_vm4 = vcmp.eq.s32.totalorder %v987_v54, 2  ;;  %vm999_vm5 = vcmp.lt.s32.totalorder %v6823_v31, 0 }
 0x1f1   :  { %v1053_v16 = vadd.s32 %v5863_v21, %v5860_v33  ;;  %vm1214_vm6 = vcmp.gt.s32.totalorder %v1213_v45, 0  ;;  %v1155_v46 = vmul.u32 %v1148_v39, %v1139_v3  ;;  %v1158_v59 = vadd.s32 1, %v5932_v29 }
 0x1f2   :  { %v4232_v58 = vpop.eup %4231  ;;  %vm3389_vm7 = vcmp.lt.s32.totalorder %v3388_v13, 0  ;;  %v1215_v41 = vsel %vm1214_vm6, %v1213_v45, 0  ;;  %vm1157_vm8 = vc.u32 %v5937_v61, %v5931_v25  ;;  %v1203_v20 = vand.u32 2147483647, %v5886_v19 }
 0x1f3   :  { %v4234_v37 = vpop.eup %4233  ;;  %v993_v51 = vxor.u32 2147483648, %v4232_v58  ;;  %v1068_v26 = vsel %vm3389_vm7, 0, %v3388_v13  ;;  %v1083_v50 = vsub.s32 4, %v5904_v2  ;;  %v1159_v15 = vsel %vm1157_vm8, %v1158_v59, %v5932_v29 }
 0x1f4   :  { %v990_v49 = vxor.u32 2147483648, %v4234_v37  ;;  %v1069_v40 = vsub.s32 32, %v1068_v26  ;;  %v1070_v8 = vshll.u32 %v5915_v53, %v1068_v26  ;;  %v1073_v33 = vsub.s32 4294967266, %v1068_v26 }
 0x1f5   :  { %v994_v21 = vsel %vm992_vm4, %v993_v51, %v4234_v37  ;;  %v1217_v12 = vand.u32 31, %v1215_v41  ;;  %vm5955_vm9 = vcmp.le.f32.partialorder %v997_v44, 0.7853982  ;;  %v1160_v39 = vadd.s32 %v1159_v15, %v1155_v46 }
 0x1f6   :  { %v991_v14 = vsel %vm989_vm3, %v4232_v58, %v990_v49  ;;  %v1071_v0 = vshrl.u32 %v1053_v16, %v1069_v40  ;;  %v1074_v30 = vadd.s32 127, %v1073_v33  ;;  %v1210_v5 = vand.u32 8388607, %v1203_v20  ;;  %v5989_v33 = vld [vmem:[%s6715_s5 + $0x58] sm:$0xff] }
 0x1f7   :  { %v995_v53 = vsel %vm988_vm2, %v991_v14, %v994_v21  ;;  %v1218_v36 = vsub.s32 32, %v1217_v12  ;;  %v1220_v4 = vshll.u32 %v6829_v42, %v1217_v12  ;;  %v1161_v44 = vadd.s32 536870912, %v1160_v39 }
 0x1f8   :  { %v996_v10 = vsel %vm986_vm0, nan, %v995_v53  ;;  %v1072_v17 = vor.u32 %v1071_v0, %v1070_v8  ;;  %v1075_v47 = vshll.u32 %v1074_v30, 23  ;;  %v1223_v43 = vshll.u32 %v6830_v1, %v1217_v12 }
 0x1f9   :  { %v1828_v56 = vadd.f32 1.0, %v996_v10  ;;  %v1221_v35 = vshrl.u32 %v6830_v1, %v1218_v36  ;;  %v1224_v54 = vshrl.u32 %v6813_v28, %v1218_v36  ;;  %v1084_v55 = vsel %vm999_vm5, %v1083_v50, %v5904_v2 }
 0x1fa   :  { %v1076_v60 = vor.u32 4788187, %v1075_v47  ;;  %v1079_v24 = vcvt.s32.f32 %v1072_v17  ;;  %v5971_v57 = vshrl.u32 %v1161_v44, 30  ;;  %v1211_v38 = vor.u32 8388608, %v1210_v5 }
 0x1fb   :  { %v1844_v22 = vmul.f32 0.5, %v1828_v56  ;;  %v1216_v34 = vshrl.u32 %v1215_v41, 5  ;;  %v1226_v63 = vshll.u32 %v6813_v28, %v1217_v12  ;;  %v1227_v18 = vshrl.u32 %v6815_v9, %v1218_v36 }
 0x1fc   :  { %v1077_v29 = vand.u32 2147483647, %v1076_v60  ;;  %v1163_v3 = vshll.u32 %v5971_v57, 30  ;;  %v1229_v45 = vshll.u32 %v6815_v9, %v1217_v12  ;;  %v1222_v16 = vor.u32 %v1221_v35, %v1220_v4 }
 0x1fd   :  { %v1908_v13 = vmul.f32 %v3425_v6, %v1844_v22  ;;  %v1225_v58 = vor.u32 %v1224_v54, %v1223_v43  ;;  %v1230_v46 = vshrl.u32 %v6816_v11, %v1218_v36  ;;  %v1232_v37 = vshll.u32 %v6816_v11, %v1217_v12 }
 0x1fe   :  { %v1080_v2 = vmul.f32 %v1079_v24, %v1077_v29  ;;  %v5978_v59 = vsub.s32 %v1160_v39, %v1163_v3  ;;  %v1233_v41 = vshrl.u32 %v6817_v7, %v1218_v36  ;;  %v1086_v51 = vsel %vm5955_vm9, 0, %v1084_v55  ;;  %v4289_v24 = vld [vmem:[%s6715_s5 + $0x40] sm:$0xff] }
 0x1ff   :  { %2562 = vperm.xlu1 %4141, %v1908_v13   ;;  %v1231_v26 = vor.u32 %v1230_v46, %v1229_v45  ;;  %vm1235_vm10 = vcmp.lt.s32.totalorder %v1216_v34, 1  ;;  %v1219_v40 = vshrl.u32 %v6829_v42, %v1218_v36  ;;  %v1228_v8 = vor.u32 %v1227_v18, %v1226_v63  ;;  %v6040_v46 = vld [vmem:[%s6715_s5 + $0x60] sm:$0xff] }
 0x200   :  { %v1081_v49 = vxor.u32 2147483648, %v1080_v2  ;;  %v1166_v6 = vsub.s32 0, %v5978_v59  ;;  %vm1236_vm11 = vcmp.lt.s32.totalorder %v1216_v34, 2  ;;  %vm1237_vm12 = vcmp.lt.s32.totalorder %v1216_v34, 3 }
 0x201   :  { %vm1238_vm13 = vcmp.lt.s32.totalorder %v1216_v34, 4  ;;  %v1251_v21 = vshll.u32 %v1211_v38, 8  ;;  %v1234_v12 = vor.u32 %v1233_v41, %v1232_v37  ;;  %v1243_v14 = vsel %vm1235_vm10, %v1222_v16, %v1225_v58 }
 0x202   :  { %v1082_v50 = vsel %vm999_vm5, %v1081_v49, %v1080_v2  ;;  %v3391_v15 = vmin.u32 %v1166_v6, %v5978_v59  ;;  %v1240_v30 = vsel %vm1238_vm13, %v1228_v8, 2102212464  ;;  %v1244_v39 = vsel %vm1238_vm13, %v1231_v26, 920167782 }
 0x203   :  { %v1085_v0 = vsel %vm5955_vm9, %v6823_v31, %v1082_v50  ;;  %v6001_v53 = vmul.f32 6.2831855, %v5989_v33  ;;  %v1239_v36 = vsel %vm1235_vm10, %v1219_v40, %v1222_v16  ;;  %v1245_v4 = vsel %vm1237_vm12, %v1228_v8, %v1244_v39 }
 0x204   :  { %4235 = vcosq.f32 %v1085_v0  ;;  %v1168_v5 = vclz %v3391_v15  ;;  %v1241_v10 = vsel %vm1237_vm12, %v1225_v58, %v1240_v30  ;;  %v1246_v17 = vsel %vm1236_vm11, %v1243_v14, %v1245_v4 }
 0x205   :  { %4237 = vsinq.f32 %v1085_v0  ;;  %v1247_v62 = vsel %vm1235_vm10, %v1225_v58, %v1228_v8  ;;  %v1248_v44 = vsel %vm1238_vm13, %v1234_v12, 1326507024  ;;  %v1090_v43 = vand.u32 3, %v1086_v51 }
 0x206   :  { %v3392_v47 = vadd.s32 4294967294, %v1168_v5  ;;  %v6009_v56 = vmul.u32.u64.low %v1251_v21, %v1246_v17  ;;  %v6010_v35 = vmul.u32.u64.high %v1251_v21, %v1246_v17, %v6009_v56  ;;  %vm1102_vm14 = vcmp.lt.s32.totalorder %v5813_v32, 0 }
 0x207   :  { %v1156_v54 = vadd.s32 %v5931_v25, %v5937_v61  ;;  %v1249_v60 = vsel %vm1237_vm12, %v1231_v26, %v1248_v44  ;;  %vm1861_vm15 = vcmp.lt.f32.partialorder %v4289_v24, 0.5  ;;  %v1242_v55 = vsel %vm1236_vm11, %v1239_v36, %v1241_v10 }
 0x208   :  { %vm3393_vm1 = vcmp.lt.s32.totalorder %v3392_v47, 0  ;;  %v1250_v22 = vsel %vm1236_vm11, %v1247_v62, %v1249_v60  ;;  %v1309_v38 = vand.u32 2139095040, %v6001_v53  ;;  %vm1089_vm0 = vweird.f32 %v6823_v31 }
 0x209   :  { %v1171_v63 = vsel %vm3393_vm1, 0, %v3392_v47  ;;  %v1186_v29 = vsub.s32 4, %v5971_v57  ;;  %v6025_v25 = vmul.u32.u64.low %v1251_v21, %v1250_v22  ;;  %v6026_v61 = vmul.u32.u64.high %v1251_v21, %v1250_v22, %v6025_v25 }
 0x20a   :  { %v1172_v3 = vsub.s32 32, %v1171_v63  ;;  %v1173_v18 = vshll.u32 %v5978_v59, %v1171_v63  ;;  %v1176_v45 = vsub.s32 4294967266, %v1171_v63  ;;  %v1261_v13 = vadd.s32 1, %v6010_v35 }
 0x20b   :  { %vm6032_vm2 = vcmp.le.f32.partialorder %v1100_v52, 0.7853982  ;;  %vm1862_vm3 = vcmp.lt.f32.partialorder %v5807_v23, 0.5  ;;  %v1258_v16 = vmul.u32 %v1251_v21, %v1242_v55  ;;  %v1310_v58 = vshrl.u32 %v1309_v38, 23 }
 0x20c   :  { %vm1091_vm4 = vcmp.lt.s32.totalorder %v1090_v43, 2  ;;  %vm1095_vm5 = vcmp.eq.s32.totalorder %v1090_v43, 2  ;;  %v1174_v2 = vshrl.u32 %v1156_v54, %v1172_v3  ;;  %v1177_v59 = vadd.s32 127, %v1176_v45 }
 0x20d   :  { %v1187_v52 = vsel %vm1102_vm14, %v1186_v29, %v5971_v57  ;;  %vm1260_vm6 = vc.u32 %v6026_v61, %v6009_v56  ;;  %v1306_v37 = vand.u32 2147483647, %v6001_v53  ;;  %v3398_v41 = vadd.s32 4294967169, %v1310_v58 }
 0x20e   :  { %v4236_v51 = vpop.eup %4235  ;;  %v1175_v26 = vor.u32 %v1174_v2, %v1173_v18  ;;  %v1178_v49 = vshll.u32 %v1177_v59, 23  ;;  %v1262_v6 = vsel %vm1260_vm6, %v1261_v13, %v6010_v35  ;;  %v6050_v40 = vmul.f32 6.2831855, %v6040_v46 }
 0x20f   :  { %v4238_v8 = vpop.eup %4237  ;;  %vm1092_vm7 = vcmp.eq.s32.totalorder %v1090_v43, 0  ;;  %v1096_v21 = vxor.u32 2147483648, %v4236_v51  ;;  %v1263_v50 = vadd.s32 %v1262_v6, %v1258_v16  ;;  %v1316_v15 = vadd.s32 1, %v3398_v41 }
 0x210   :  { %v1093_v57 = vxor.u32 2147483648, %v4238_v8  ;;  %v1179_v12 = vor.u32 4788187, %v1178_v49  ;;  %v1182_v14 = vcvt.s32.f32 %v1175_v26  ;;  %v1189_v0 = vsel %vm6032_vm2, 0, %v1187_v52 }
 0x211   :  { %v1097_v30 = vsel %vm1095_vm5, %v1096_v21, %v4238_v8  ;;  %v1264_v39 = vadd.s32 536870912, %v1263_v50  ;;  %v1313_v5 = vand.u32 8388607, %v1306_v37  ;;  %vm1317_vm8 = vcmp.gt.s32.totalorder %v1316_v15, 0 }
 0x212   :  { %v1094_v36 = vsel %vm1092_vm7, %v4236_v51, %v1093_v57  ;;  %v1180_v4 = vand.u32 2147483647, %v1179_v12  ;;  %v1318_v10 = vsel %vm1317_vm8, %v1316_v15, 0  ;;  %v1412_v17 = vand.u32 2139095040, %v6050_v40 }
 0x213   :  { %v1098_v62 = vsel %vm1091_vm4, %v1094_v36, %v1097_v30  ;;  %v3426_v47 = vsel %vm1861_vm15, 1.0, %v6826_v48  ;;  %v6061_v44 = vshrl.u32 %v1264_v39, 30  ;;  %v1320_v35 = vand.u32 31, %v1318_v10 }
 0x214   :  { %v1099_v54 = vsel %vm1089_vm0, nan, %v1098_v62  ;;  %v1183_v60 = vmul.f32 %v1182_v14, %v1180_v4  ;;  %v6065_v55 = vand.u32 3, %v1189_v0  ;;  %v6070_v22 = vsel %vm1862_vm3, 1.0, %v6826_v48 }
 0x215   :  { %v1829_v38 = vadd.f32 1.0, %v1099_v54  ;;  %v1266_v43 = vshll.u32 %v6061_v44, 30  ;;  %v1314_v63 = vor.u32 8388608, %v1313_v5  ;;  %v1321_v24 = vsub.s32 32, %v1320_v35 }
 0x216   :  { %v1184_v29 = vxor.u32 2147483648, %v1183_v60  ;;  %v6075_v25 = vadd.s32 %v6009_v56, %v6026_v61  ;;  %v1409_v31 = vand.u32 2147483647, %v6050_v40  ;;  %v1413_v3 = vshrl.u32 %v1412_v17, 23 }
 0x217   :  { %v1845_v18 = vmul.f32 0.5, %v1829_v38  ;;  %v6078_v45 = vsub.s32 %v1263_v50, %v1266_v43  ;;  %v1323_v23 = vshll.u32 %v6829_v42, %v1320_v35  ;;  %v1326_v13 = vshll.u32 %v6830_v1, %v1320_v35 }
 0x218   :  { %v1185_v16 = vsel %vm1102_vm14, %v1184_v29, %v1183_v60  ;;  %v1324_v58 = vshrl.u32 %v6830_v1, %v1321_v24  ;;  %v1327_v2 = vshrl.u32 %v6813_v28, %v1321_v24  ;;  %v1329_v56 = vshll.u32 %v6813_v28, %v1320_v35 }
 0x219   :  { %v1909_v61 = vmul.f32 %v3426_v47, %v1845_v18  ;;  %v1188_v59 = vsel %vm6032_vm2, %v5813_v32, %v1185_v16  ;;  %v1269_v52 = vsub.s32 0, %v6078_v45  ;;  %v1319_v41 = vshrl.u32 %v1318_v10, 5 }
 0x21a   :  { %4239 = vcosq.f32 %v1188_v59  ;;  %v1330_v51 = vshrl.u32 %v6815_v9, %v1321_v24  ;;  %v6092_v26 = vshll.u32 %v1314_v63, 8  ;;  %v3402_v49 = vadd.s32 4294967169, %v1413_v3 }
 0x21b   :  { %2567 = vperm.xlu1 %4141, %v1909_v61   ;;  %4241 = vsinq.f32 %v1188_v59  ;;  %v3395_v6 = vmin.u32 %v1269_v52, %v6078_v45  ;;  %v1322_v8 = vshrl.u32 %v6829_v42, %v1321_v24  ;;  %v1325_v21 = vor.u32 %v1324_v58, %v1323_v23 }
 0x21c   :  { %vm1198_vm9 = vcmp.eq.s32.totalorder %v6065_v55, 2  ;;  %v1328_v34 = vor.u32 %v1327_v2, %v1326_v13  ;;  %v1331_v50 = vor.u32 %v1330_v51, %v1329_v56  ;;  %v1332_v15 = vshll.u32 %v6815_v9, %v1320_v35 }
 0x21d   :  { %v1333_v57 = vshrl.u32 %v6816_v11, %v1321_v24  ;;  %vm1195_vm10 = vcmp.eq.s32.totalorder %v6065_v55, 0  ;;  %v1271_v12 = vclz %v3395_v6  ;;  %v1335_v14 = vshll.u32 %v6816_v11, %v1320_v35 }
 0x21e   :  { %v1336_v0 = vshrl.u32 %v6817_v7, %v1321_v24  ;;  %vm1338_vm11 = vcmp.lt.s32.totalorder %v1319_v41, 1  ;;  %vm1194_vm12 = vcmp.lt.s32.totalorder %v6065_v55, 2  ;;  %vm1339_vm13 = vcmp.lt.s32.totalorder %v1319_v41, 2 }
 0x21f   :  { %v1334_v30 = vor.u32 %v1333_v57, %v1332_v15  ;;  %vm1340_vm14 = vcmp.lt.s32.totalorder %v1319_v41, 3  ;;  %vm1341_vm15 = vcmp.lt.s32.totalorder %v1319_v41, 4  ;;  %vm1192_vm1 = vweird.f32 %v5813_v32 }
 0x220   :  { %v3396_v39 = vadd.s32 4294967294, %v1271_v12  ;;  %v1337_v5 = vor.u32 %v1336_v0, %v1335_v14  ;;  %v1342_v36 = vsel %vm1338_vm11, %v1322_v8, %v1325_v21  ;;  %v1343_v4 = vsel %vm1341_vm15, %v1331_v50, 2102212464 }
 0x221   :  { %v1344_v10 = vsel %vm1340_vm14, %v1328_v34, %v1343_v4  ;;  %v1346_v17 = vsel %vm1338_vm11, %v1325_v21, %v1328_v34  ;;  %v1347_v62 = vsel %vm1341_vm15, %v1334_v30, 920167782  ;;  %v1350_v47 = vsel %vm1338_vm11, %v1328_v34, %v1331_v50 }
 0x222   :  { %vm1205_vm0 = vcmp.lt.s32.totalorder %v5886_v19, 0  ;;  %vm3397_vm2 = vcmp.lt.s32.totalorder %v3396_v39, 0  ;;  %v1348_v35 = vsel %vm1340_vm14, %v1331_v50, %v1347_v62  ;;  %v1351_v54 = vsel %vm1341_vm15, %v1337_v5, 1326507024 }
 0x223   :  { %v1419_v60 = vadd.s32 1, %v3402_v49  ;;  %v1274_v38 = vsel %vm3397_vm2, 0, %v3396_v39  ;;  %v1345_v43 = vsel %vm1339_vm13, %v1342_v36, %v1344_v10  ;;  %v1349_v63 = vsel %vm1339_vm13, %v1346_v17, %v1348_v35 }
 0x224   :  { %v1352_v24 = vsel %vm1340_vm14, %v1334_v30, %v1351_v54  ;;  %v1275_v29 = vsub.s32 32, %v1274_v38  ;;  %v1276_v3 = vshll.u32 %v6078_v45, %v1274_v38  ;;  %v1279_v18 = vsub.s32 4294967266, %v1274_v38  ;;  %v4240_v13 = vpop.eup %4239 }
 0x225   :  { %v1353_v23 = vsel %vm1339_vm13, %v1350_v47, %v1352_v24  ;;  %v6117_v2 = vmul.u32.u64.low %v6092_v26, %v1349_v63  ;;  %v6118_v56 = vmul.u32.u64.high %v6092_v26, %v1349_v63, %v6117_v2  ;;  %v4242_v61 = vpop.eup %4241  ;;  %v1199_v59 = vxor.u32 2147483648, %v4240_v13 }
 0x226   :  { %v6113_v16 = vmul.u32.u64.low %v6092_v26, %v1353_v23  ;;  %v6114_v58 = vmul.u32.u64.high %v6092_v26, %v1353_v23, %v6113_v16  ;;  %v1277_v52 = vshrl.u32 %v6075_v25, %v1275_v29  ;;  %v1280_v51 = vadd.s32 127, %v1279_v18 }
 0x227   :  { %vm1420_vm3 = vcmp.gt.s32.totalorder %v1419_v60, 0  ;;  %v1196_v45 = vxor.u32 2147483648, %v4242_v61  ;;  %v1289_v41 = vsub.s32 4, %v6061_v44  ;;  %v1416_v49 = vand.u32 8388607, %v1409_v31 }
 0x228   :  { %v1421_v6 = vsel %vm1420_vm3, %v1419_v60, 0  ;;  %v1200_v8 = vsel %vm1198_vm9, %v1199_v59, %v4242_v61  ;;  %v1278_v21 = vor.u32 %v1277_v52, %v1276_v3  ;;  %v1281_v34 = vshll.u32 %v1280_v51, 23 }
 0x229   :  { %v1361_v50 = vmul.u32 %v6092_v26, %v1345_v43  ;;  %v1197_v15 = vsel %vm1195_vm10, %v4240_v13, %v1196_v45  ;;  %vm6132_vm4 = vcmp.le.f32.partialorder %v1203_v20, 0.7853982  ;;  %vm1363_vm5 = vc.u32 %v6114_v58, %v6117_v2 }
 0x22a   :  { %v1364_v57 = vadd.s32 1, %v6118_v56  ;;  %v1201_v12 = vsel %vm1194_vm12, %v1197_v15, %v1200_v8  ;;  %v1282_v14 = vor.u32 4788187, %v1281_v34  ;;  %v1285_v0 = vcvt.s32.f32 %v1278_v21  ;;  %v6175_v34 = vld [vmem:[%s6715_s5 + $0x68] sm:$0xff] }
 0x22b   :  { %v1423_v26 = vand.u32 31, %v1421_v6  ;;  %v1202_v30 = vsel %vm1192_vm1, nan, %v1201_v12  ;;  %v1290_v20 = vsel %vm1205_vm0, %v1289_v41, %v6061_v44  ;;  %v1417_v5 = vor.u32 8388608, %v1416_v49 }
 0x22c   :  { %v1365_v39 = vsel %vm1363_vm5, %v1364_v57, %v6118_v56  ;;  %v1830_v36 = vadd.f32 1.0, %v1202_v30  ;;  %v1283_v4 = vand.u32 2147483647, %v1282_v14  ;;  %v1422_v62 = vshrl.u32 %v1421_v6, 5 }
 0x22d   :  { %v1366_v10 = vadd.s32 %v1365_v39, %v1361_v50  ;;  %v1424_v17 = vsub.s32 32, %v1423_v26  ;;  %v1426_v55 = vshll.u32 %v6829_v42, %v1423_v26  ;;  %v1429_v47 = vshll.u32 %v6830_v1, %v1423_v26 }
 0x22e   :  { %v1432_v35 = vshll.u32 %v6813_v28, %v1423_v26  ;;  %v1846_v32 = vmul.f32 0.5, %v1830_v36  ;;  %v1286_v54 = vmul.f32 %v1285_v0, %v1283_v4  ;;  %v1435_v38 = vshll.u32 %v6815_v9, %v1423_v26 }
 0x22f   :  { %v1367_v60 = vadd.s32 536870912, %v1366_v10  ;;  %v1427_v44 = vshrl.u32 %v6830_v1, %v1424_v17  ;;  %v1430_v43 = vshrl.u32 %v6813_v28, %v1424_v17  ;;  %v1433_v63 = vshrl.u32 %v6815_v9, %v1424_v17 }
 0x230   :  { %v1436_v24 = vshrl.u32 %v6816_v11, %v1424_v17  ;;  %v1910_v29 = vmul.f32 %v6070_v22, %v1846_v32  ;;  %v1287_v3 = vxor.u32 2147483648, %v1286_v54  ;;  %v1438_v23 = vshll.u32 %v6816_v11, %v1423_v26 }
 0x231   :  { %v6156_v18 = vshrl.u32 %v1367_v60, 30  ;;  %v1292_v13 = vsel %vm6132_vm4, 0, %v1290_v20  ;;  %v1428_v16 = vor.u32 %v1427_v44, %v1426_v55  ;;  %v1431_v56 = vor.u32 %v1430_v43, %v1429_v47 }
 0x232   :  { %vm1441_vm6 = vcmp.lt.s32.totalorder %v1422_v62, 1  ;;  %2572 = vperm.xlu1 %4141, %v1910_v29   ;;  %v1288_v61 = vsel %vm1205_vm0, %v1287_v3, %v1286_v54  ;;  %v1437_v52 = vor.u32 %v1436_v24, %v1435_v38  ;;  %v1439_v22 = vshrl.u32 %v6817_v7, %v1424_v17 }
 0x233   :  { %v1369_v59 = vshll.u32 %v6156_v18, 30  ;;  %v1291_v51 = vsel %vm6132_vm4, %v5886_v19, %v1288_v61  ;;  %v1425_v45 = vshrl.u32 %v6829_v42, %v1424_v17  ;;  %v1434_v41 = vor.u32 %v1433_v63, %v1432_v35 }
 0x234   :  { %vm1444_vm7 = vcmp.lt.s32.totalorder %v1422_v62, 4  ;;  %4243 = vcosq.f32 %v1291_v51  ;;  %v1440_v6 = vor.u32 %v1439_v22, %v1438_v23  ;;  %vm1443_vm8 = vcmp.lt.s32.totalorder %v1422_v62, 3 }
 0x235   :  { %v6169_v49 = vsub.s32 %v1366_v10, %v1369_v59  ;;  %4245 = vsinq.f32 %v1291_v51  ;;  %v1446_v8 = vsel %vm1444_vm7, %v1434_v41, 2102212464  ;;  %v1457_v21 = vshll.u32 %v1417_v5, 8 }
 0x236   :  { %vm1442_vm9 = vcmp.lt.s32.totalorder %v1422_v62, 2  ;;  %v1449_v15 = vsel %vm1441_vm6, %v1428_v16, %v1431_v56  ;;  %v1450_v25 = vsel %vm1444_vm7, %v1437_v52, 920167782  ;;  %v1296_v57 = vand.u32 3, %v1292_v13 }
 0x237   :  { %v1372_v50 = vsub.s32 0, %v6169_v49  ;;  %v1451_v12 = vsel %vm1443_vm8, %v1434_v41, %v1450_v25  ;;  %v1453_v14 = vsel %vm1441_vm6, %v1431_v56, %v1434_v41  ;;  %v1454_v0 = vsel %vm1444_vm7, %v1440_v6, 1326507024 }
 0x238   :  { %v1445_v30 = vsel %vm1441_vm6, %v1425_v45, %v1428_v16  ;;  %v1447_v20 = vsel %vm1443_vm8, %v1431_v56, %v1446_v8  ;;  %v6187_v39 = vmul.f32 6.2831855, %v6175_v34  ;;  %vm1295_vm10 = vweird.f32 %v5886_v19 }
 0x239   :  { %v3399_v26 = vmin.u32 %v1372_v50, %v6169_v49  ;;  %vm1863_vm11 = vcmp.lt.f32.partialorder %v5873_v27, 0.5  ;;  %v1452_v5 = vsel %vm1442_vm9, %v1449_v15, %v1451_v12  ;;  %v1455_v36 = vsel %vm1443_vm8, %v1437_v52, %v1454_v0 }
 0x23a   :  { %v1456_v10 = vsel %vm1442_vm9, %v1453_v14, %v1455_v36  ;;  %v6194_v17 = vmul.u32.u64.low %v1457_v21, %v1452_v5  ;;  %v6195_v55 = vmul.u32.u64.high %v1457_v21, %v1452_v5, %v6194_v17  ;;  %v1392_v47 = vsub.s32 4, %v6156_v18  ;;  %v6237_v5 = vld [vmem:[%s6715_s5 + $0x70] sm:$0xff] }
 0x23b   :  { %v1374_v4 = vclz %v3399_v26  ;;  %v1448_v35 = vsel %vm1442_vm9, %v1445_v30, %v1447_v20  ;;  %v6199_v32 = vmul.u32.u64.low %v1457_v21, %v1456_v10  ;;  %v6200_v54 = vmul.u32.u64.high %v1457_v21, %v1456_v10, %v6199_v32 }
 0x23c   :  { %vm1297_vm12 = vcmp.lt.s32.totalorder %v1296_v57, 2  ;;  %vm1308_vm13 = vcmp.lt.s32.totalorder %v6001_v53, 0  ;;  %v1515_v38 = vand.u32 2139095040, %v6187_v39  ;;  %vm1298_vm14 = vcmp.eq.s32.totalorder %v1296_v57, 0 }
 0x23d   :  { %v3400_v60 = vadd.s32 4294967294, %v1374_v4  ;;  %vm1301_vm15 = vcmp.eq.s32.totalorder %v1296_v57, 2  ;;  %v1362_v44 = vadd.s32 %v6117_v2, %v6114_v58  ;;  %v1512_v43 = vand.u32 2147483647, %v6187_v39 }
 0x23e   :  { %v4244_v63 = vpop.eup %4243  ;;  %v1464_v62 = vmul.u32 %v1457_v21, %v1448_v35  ;;  %v1467_v24 = vadd.s32 1, %v6195_v55  ;;  %v1516_v29 = vshrl.u32 %v1515_v38, 23  ;;  %v1393_v16 = vsel %vm1308_vm13, %v1392_v47, %v6156_v18 }
 0x23f   :  { %vm3401_vm1 = vcmp.lt.s32.totalorder %v3400_v60, 0  ;;  %v4246_v3 = vpop.eup %4245  ;;  %v1302_v23 = vxor.u32 2147483648, %v4244_v63  ;;  %vm1466_vm0 = vc.u32 %v6200_v54, %v6194_v17  ;;  %v1519_v51 = vand.u32 8388607, %v1512_v43 }
 0x240   :  { %v1377_v13 = vsel %vm3401_vm1, 0, %v3400_v60  ;;  %v1299_v56 = vxor.u32 2147483648, %v4246_v3  ;;  %v1468_v52 = vsel %vm1466_vm0, %v1467_v24, %v6195_v55  ;;  %v3406_v22 = vadd.s32 4294967169, %v1516_v29 }
 0x241   :  { %v1378_v61 = vsub.s32 32, %v1377_v13  ;;  %v1379_v58 = vshll.u32 %v6169_v49, %v1377_v13  ;;  %v1382_v2 = vsub.s32 4294967266, %v1377_v13  ;;  %v1303_v59 = vsel %vm1301_vm15, %v1302_v23, %v4246_v3 }
 0x242   :  { %v1300_v45 = vsel %vm1298_vm14, %v4244_v63, %v1299_v56  ;;  %v1469_v18 = vadd.s32 %v1468_v52, %v1464_v62  ;;  %v3428_v49 = vsel %vm1863_vm11, 1.0, %v6826_v48  ;;  %vm6224_vm2 = vcmp.le.f32.partialorder %v1306_v37, 0.7853982 }
 0x243   :  { %v1380_v41 = vshrl.u32 %v1362_v44, %v1378_v61  ;;  %v1383_v6 = vadd.s32 127, %v1382_v2  ;;  %v1304_v8 = vsel %vm1297_vm12, %v1300_v45, %v1303_v59  ;;  %v1522_v50 = vadd.s32 1, %v3406_v22 }
 0x244   :  { %v1305_v15 = vsel %vm1295_vm10, nan, %v1304_v8  ;;  %v1470_v14 = vadd.s32 536870912, %v1469_v18  ;;  %v1395_v57 = vsel %vm6224_vm2, 0, %v1393_v16  ;;  %v1520_v26 = vor.u32 8388608, %v1519_v51 }
 0x245   :  { %v1381_v25 = vor.u32 %v1380_v41, %v1379_v58  ;;  %v1384_v12 = vshll.u32 %v1383_v6, 23  ;;  %v1831_v0 = vadd.f32 1.0, %v1305_v15  ;;  %vm1523_vm3 = vcmp.gt.s32.totalorder %v1522_v50, 0 }
 0x246   :  { %v6232_v20 = vshrl.u32 %v1470_v14, 30  ;;  %v1524_v37 = vsel %vm1523_vm3, %v1522_v50, 0  ;;  %v6239_v10 = vand.u32 3, %v1395_v57  ;;  %v1465_v35 = vadd.s32 %v6194_v17, %v6200_v54 }
 0x247   :  { %v1385_v27 = vor.u32 4788187, %v1384_v12  ;;  %v1388_v30 = vcvt.s32.f32 %v1381_v25  ;;  %v1847_v19 = vmul.f32 0.5, %v1831_v0  ;;  %v1526_v36 = vand.u32 31, %v1524_v37 }
 0x248   :  { %v1472_v55 = vshll.u32 %v6232_v20, 30  ;;  %v6244_v60 = vmul.f32 6.2831855, %v6237_v5  ;;  %v6249_v62 = vshll.u32 %v1520_v26, 8  ;;  %v1525_v13 = vshrl.u32 %v1524_v37, 5 }
 0x249   :  { %v1386_v4 = vand.u32 2147483647, %v1385_v27  ;;  %v1911_v47 = vmul.f32 %v3428_v49, %v1847_v19  ;;  %v1527_v32 = vsub.s32 32, %v1526_v36  ;;  %v1529_v63 = vshll.u32 %v6829_v42, %v1526_v36 }
 0x24a   :  { %v6246_v44 = vsub.s32 %v1469_v18, %v1472_v55  ;;  %v1532_v29 = vshll.u32 %v6830_v1, %v1526_v36  ;;  %v1535_v17 = vshll.u32 %v6813_v28, %v1526_v36  ;;  %v1495_v56 = vsub.s32 4, %v6232_v20 }
 0x24b   :  { %v1389_v38 = vmul.f32 %v1388_v30, %v1386_v4  ;;  %2577 = vperm.xlu1 %4141, %v1911_v47   ;;  %v1530_v24 = vshrl.u32 %v6830_v1, %v1527_v32  ;;  %v1533_v3 = vshrl.u32 %v6813_v28, %v1527_v32  ;;  %v1536_v16 = vshrl.u32 %v6815_v9, %v1527_v32 }
 0x24c   :  { %v1475_v23 = vsub.s32 0, %v6246_v44  ;;  %v1538_v61 = vshll.u32 %v6815_v9, %v1526_v36  ;;  %v1539_v58 = vshrl.u32 %v6816_v11, %v1527_v32  ;;  %v1618_v2 = vand.u32 2139095040, %v6244_v60 }
 0x24d   :  { %v1390_v54 = vxor.u32 2147483648, %v1389_v38  ;;  %v1528_v22 = vshrl.u32 %v6829_v42, %v1527_v32  ;;  %v1531_v51 = vor.u32 %v1530_v24, %v1529_v63  ;;  %v1534_v41 = vor.u32 %v1533_v3, %v1532_v29 }
 0x24e   :  { %v3403_v52 = vmin.u32 %v1475_v23, %v6246_v44  ;;  %v1537_v6 = vor.u32 %v1536_v16, %v1535_v17  ;;  %v1540_v18 = vor.u32 %v1539_v58, %v1538_v61  ;;  %v1541_v49 = vshll.u32 %v6816_v11, %v1526_v36 }
 0x24f   :  { %v1391_v59 = vsel %vm1308_vm13, %v1390_v54, %v1389_v38  ;;  %v1542_v50 = vshrl.u32 %v6817_v7, %v1527_v32  ;;  %vm1544_vm4 = vcmp.lt.s32.totalorder %v1525_v13, 1  ;;  %vm1545_vm5 = vcmp.lt.s32.totalorder %v1525_v13, 2 }
 0x250   :  { %v1394_v45 = vsel %vm6224_vm2, %v6001_v53, %v1391_v59  ;;  %v1477_v8 = vclz %v3403_v52  ;;  %vm1546_vm6 = vcmp.lt.s32.totalorder %v1525_v13, 3  ;;  %vm1547_vm7 = vcmp.lt.s32.totalorder %v1525_v13, 4 }
 0x251   :  { %4247 = vcosq.f32 %v1394_v45  ;;  %v1543_v25 = vor.u32 %v1542_v50, %v1541_v49  ;;  %v1548_v12 = vsel %vm1544_vm4, %v1528_v22, %v1531_v51  ;;  %v1549_v14 = vsel %vm1547_vm7, %v1537_v6, 2102212464 }
 0x252   :  { %4249 = vsinq.f32 %v1394_v45  ;;  %v3404_v15 = vadd.s32 4294967294, %v1477_v8  ;;  %v1552_v21 = vsel %vm1544_vm4, %v1531_v51, %v1534_v41  ;;  %v1553_v0 = vsel %vm1547_vm7, %v1540_v18, 920167782 }
 0x253   :  { %v1556_v57 = vsel %vm1544_vm4, %v1534_v41, %v1537_v6  ;;  %v1550_v26 = vsel %vm1546_vm6, %v1534_v41, %v1549_v14  ;;  %v1554_v27 = vsel %vm1546_vm6, %v1537_v6, %v1553_v0  ;;  %v1557_v30 = vsel %vm1547_vm7, %v1543_v25, 1326507024 }
 0x254   :  { %vm3405_vm8 = vcmp.lt.s32.totalorder %v3404_v15, 0  ;;  %v1551_v19 = vsel %vm1545_vm5, %v1548_v12, %v1550_v26  ;;  %v1555_v36 = vsel %vm1545_vm5, %v1552_v21, %v1554_v27  ;;  %v1558_v4 = vsel %vm1546_vm6, %v1540_v18, %v1557_v30 }
 0x255   :  { %v1480_v37 = vsel %vm3405_vm8, 0, %v3404_v15  ;;  %v1559_v38 = vsel %vm1545_vm5, %v1556_v57, %v1558_v4  ;;  %vm1864_vm9 = vcmp.lt.f32.partialorder %v5989_v33, 0.5  ;;  %vm1411_vm10 = vcmp.lt.s32.totalorder %v6050_v40, 0  ;;  %v6327_v4 = vld [vmem:[%s6715_s5 + $0x78] sm:$0xff] }
 0x256   :  { %v1481_v55 = vsub.s32 32, %v1480_v37  ;;  %v1482_v47 = vshll.u32 %v6246_v44, %v1480_v37  ;;  %v1485_v32 = vsub.s32 4294967266, %v1480_v37  ;;  %v1619_v23 = vshrl.u32 %v1618_v2, 23 }
 0x257   :  { %v6279_v63 = vmul.u32.u64.low %v6249_v62, %v1559_v38  ;;  %v6280_v24 = vmul.u32.u64.high %v6249_v62, %v1559_v38, %v6279_v63  ;;  %v6283_v29 = vmul.u32.u64.low %v6249_v62, %v1555_v36  ;;  %v6284_v3 = vmul.u32.u64.high %v6249_v62, %v1555_v36, %v6283_v29 }
 0x258   :  { %v1483_v17 = vshrl.u32 %v1465_v35, %v1481_v55  ;;  %v1486_v54 = vadd.s32 127, %v1485_v32  ;;  %vm1400_vm11 = vcmp.lt.s32.totalorder %v6239_v10, 2  ;;  %vm1401_vm12 = vcmp.eq.s32.totalorder %v6239_v10, 0 }
 0x259   :  { %vm1404_vm13 = vcmp.eq.s32.totalorder %v6239_v10, 2  ;;  %v1615_v44 = vand.u32 2147483647, %v6244_v60  ;;  %v1567_v58 = vmul.u32 %v6249_v62, %v1551_v19  ;;  %v3410_v59 = vadd.s32 4294967169, %v1619_v23 }
 0x25a   :  { %v1484_v16 = vor.u32 %v1483_v17, %v1482_v47  ;;  %v1487_v61 = vshll.u32 %v1486_v54, 23  ;;  %v1496_v35 = vsel %vm1411_vm10, %v1495_v56, %v6232_v20  ;;  %vm1569_vm14 = vc.u32 %v6280_v24, %v6283_v29 }
 0x25b   :  { %v4248_v13 = vpop.eup %4247  ;;  %v1570_v2 = vadd.s32 1, %v6284_v3  ;;  %v1625_v6 = vadd.s32 1, %v3410_v59  ;;  %vm1398_vm15 = vweird.f32 %v6001_v53  ;;  %vm6304_vm1 = vcmp.le.f32.partialorder %v1409_v31, 0.7853982 }
 0x25c   :  { %v4250_v52 = vpop.eup %4249  ;;  %v1405_v22 = vxor.u32 2147483648, %v4248_v13  ;;  %v1488_v45 = vor.u32 4788187, %v1487_v61  ;;  %v1491_v41 = vcvt.s32.f32 %v1484_v16  ;;  %v1498_v50 = vsel %vm6304_vm1, 0, %v1496_v35 }
 0x25d   :  { %v1402_v51 = vxor.u32 2147483648, %v4250_v52  ;;  %v1571_v20 = vsel %vm1569_vm14, %v1570_v2, %v6284_v3  ;;  %vm1626_vm0 = vcmp.gt.s32.totalorder %v1625_v6, 0  ;;  %v1622_v31 = vand.u32 8388607, %v1615_v44 }
 0x25e   :  { %v1406_v62 = vsel %vm1404_vm13, %v1405_v22, %v4250_v52  ;;  %v1489_v8 = vand.u32 2147483647, %v1488_v45  ;;  %v1572_v49 = vadd.s32 %v1571_v20, %v1567_v58  ;;  %v1627_v15 = vsel %vm1626_vm0, %v1625_v6, 0 }
 0x25f   :  { %v1403_v56 = vsel %vm1401_vm12, %v4248_v13, %v1402_v51  ;;  %v1629_v0 = vand.u32 31, %v1627_v15  ;;  %v3429_v57 = vsel %vm1864_vm9, 1.0, %v6826_v48  ;;  %v6320_v27 = vand.u32 3, %v1498_v50 }
 0x260   :  { %v1407_v53 = vsel %vm1400_vm11, %v1403_v56, %v1406_v62  ;;  %v1492_v12 = vmul.f32 %v1491_v41, %v1489_v8  ;;  %v1573_v14 = vadd.s32 536870912, %v1572_v49  ;;  %v1623_v37 = vor.u32 8388608, %v1622_v31 }
 0x261   :  { %v1408_v25 = vsel %vm1398_vm15, nan, %v1407_v53  ;;  %v1628_v19 = vshrl.u32 %v1627_v15, 5  ;;  %v1630_v36 = vsub.s32 32, %v1629_v0  ;;  %v1632_v47 = vshll.u32 %v6829_v42, %v1629_v0 }
 0x262   :  { %v1832_v21 = vadd.f32 1.0, %v1408_v25  ;;  %v1493_v26 = vxor.u32 2147483648, %v1492_v12  ;;  %v6322_v10 = vshrl.u32 %v1573_v14, 30  ;;  %v1635_v32 = vshll.u32 %v6830_v1, %v1629_v0 }
 0x263   :  { %v1633_v3 = vshrl.u32 %v6830_v1, %v1630_v36  ;;  %v1638_v17 = vshll.u32 %v6813_v28, %v1629_v0  ;;  %v1636_v23 = vshrl.u32 %v6813_v28, %v1630_v36  ;;  %v6343_v13 = vmul.f32 6.2831855, %v6327_v4 }
 0x264   :  { %v1848_v30 = vmul.f32 0.5, %v1832_v21  ;;  %v1494_v55 = vsel %vm1411_vm10, %v1493_v26, %v1492_v12  ;;  %v1575_v33 = vshll.u32 %v6322_v10, 30  ;;  %v1631_v16 = vshrl.u32 %v6829_v42, %v1630_v36 }
 0x265   :  { %v1497_v63 = vsel %vm6304_vm1, %v6050_v40, %v1494_v55  ;;  %v1639_v61 = vshrl.u32 %v6815_v9, %v1630_v36  ;;  %vm1647_vm2 = vcmp.lt.s32.totalorder %v1628_v19, 1  ;;  %vm1865_vm3 = vcmp.lt.f32.partialorder %v6040_v46, 0.5 }
 0x266   :  { %v1912_v38 = vmul.f32 %v3429_v57, %v1848_v30  ;;  %4251 = vcosq.f32 %v1497_v63  ;;  %v6339_v54 = vsub.s32 %v1572_v49, %v1575_v33  ;;  %v1634_v59 = vor.u32 %v1633_v3, %v1632_v47 }
 0x267   :  { %4253 = vsinq.f32 %v1497_v63  ;;  %v1637_v52 = vor.u32 %v1636_v23, %v1635_v32  ;;  %v1641_v22 = vshll.u32 %v6815_v9, %v1629_v0  ;;  %vm1504_vm4 = vcmp.eq.s32.totalorder %v6320_v27, 0 }
 0x268   :  { %2582 = vperm.xlu1 %4141, %v1912_v38   ;;  %v1578_v58 = vsub.s32 0, %v6339_v54  ;;  %v1640_v35 = vor.u32 %v1639_v61, %v1638_v17  ;;  %v1642_v2 = vshrl.u32 %v6816_v11, %v1630_v36  ;;  %v1644_v51 = vshll.u32 %v6816_v11, %v1629_v0 }
 0x269   :  { %v1645_v45 = vshrl.u32 %v6817_v7, %v1630_v36  ;;  %vm1503_vm5 = vcmp.lt.s32.totalorder %v6320_v27, 2  ;;  %vm1648_vm6 = vcmp.lt.s32.totalorder %v1628_v19, 2  ;;  %v1663_v6 = vshll.u32 %v1623_v37, 8 }
 0x26a   :  { %v3407_v41 = vmin.u32 %v1578_v58, %v6339_v54  ;;  %v1721_v62 = vand.u32 2139095040, %v6343_v13  ;;  %v1643_v18 = vor.u32 %v1642_v2, %v1641_v22  ;;  %vm1649_vm7 = vcmp.lt.s32.totalorder %v1628_v19, 3 }
 0x26b   :  { %v1646_v20 = vor.u32 %v1645_v45, %v1644_v51  ;;  %vm1650_vm8 = vcmp.lt.s32.totalorder %v1628_v19, 4  ;;  %v1651_v8 = vsel %vm1647_vm2, %v1631_v16, %v1634_v59  ;;  %v1655_v53 = vsel %vm1647_vm2, %v1634_v59, %v1637_v52 }
 0x26c   :  { %v1580_v56 = vclz %v3407_v41  ;;  %v1652_v49 = vsel %vm1650_vm8, %v1640_v35, 2102212464  ;;  %v1656_v31 = vsel %vm1650_vm8, %v1643_v18, 920167782  ;;  %v1659_v15 = vsel %vm1647_vm2, %v1637_v52, %v1640_v35 }
 0x26d   :  { %v1653_v50 = vsel %vm1649_vm7, %v1637_v52, %v1652_v49  ;;  %v1660_v25 = vsel %vm1650_vm8, %v1646_v20, 1326507024  ;;  %vm1507_vm9 = vcmp.eq.s32.totalorder %v6320_v27, 2  ;;  %v1657_v14 = vsel %vm1649_vm7, %v1640_v35, %v1656_v31 }
 0x26e   :  { %v3408_v12 = vadd.s32 4294967294, %v1580_v56  ;;  %v1661_v21 = vsel %vm1649_vm7, %v1643_v18, %v1660_v25  ;;  %v1568_v0 = vadd.s32 %v6283_v29, %v6280_v24  ;;  %v1658_v57 = vsel %vm1648_vm6, %v1655_v53, %v1657_v14 }
 0x26f   :  { %v1662_v26 = vsel %vm1648_vm6, %v1659_v15, %v1661_v21  ;;  %v1722_v30 = vshrl.u32 %v1721_v62, 23  ;;  %v1654_v36 = vsel %vm1648_vm6, %v1651_v8, %v1653_v50  ;;  %vm1501_vm11 = vweird.f32 %v6050_v40 }
 0x270   :  { %v4252_v37 = vpop.eup %4251  ;;  %vm3409_vm10 = vcmp.lt.s32.totalorder %v3408_v12, 0  ;;  %v6366_v55 = vmul.u32.u64.low %v1663_v6, %v1662_v26  ;;  %v6367_v33 = vmul.u32.u64.high %v1663_v6, %v1662_v26, %v6366_v55  ;;  %v3430_v16 = vsel %vm1865_vm3, 1.0, %v6826_v48 }
 0x271   :  { %v4254_v47 = vpop.eup %4253  ;;  %v1508_v32 = vxor.u32 2147483648, %v4252_v37  ;;  %v1583_v38 = vsel %vm3409_vm10, 0, %v3408_v12  ;;  %v6369_v63 = vmul.u32.u64.low %v1663_v6, %v1658_v57  ;;  %v6370_v3 = vmul.u32.u64.high %v1663_v6, %v1658_v57, %v6369_v63 }
 0x272   :  { %v1505_v24 = vxor.u32 2147483648, %v4254_v47  ;;  %v1584_v29 = vsub.s32 32, %v1583_v38  ;;  %v1585_v17 = vshll.u32 %v6339_v54, %v1583_v38  ;;  %v1588_v23 = vsub.s32 4294967266, %v1583_v38 }
 0x273   :  { %v1509_v19 = vsel %vm1507_vm9, %v1508_v32, %v4254_v47  ;;  %v3414_v61 = vadd.s32 4294967169, %v1722_v30  ;;  %v1670_v22 = vmul.u32 %v1663_v6, %v1654_v36  ;;  %vm1672_vm12 = vc.u32 %v6367_v33, %v6369_v63  ;;  %v6409_v30 = vld [vmem:[%s6715_s5 + $0x20] sm:$0xff] }
 0x274   :  { %v1506_v58 = vsel %vm1504_vm4, %v4252_v37, %v1505_v24  ;;  %v1586_v59 = vshrl.u32 %v1568_v0, %v1584_v29  ;;  %v1589_v52 = vadd.s32 127, %v1588_v23  ;;  %v1673_v40 = vadd.s32 1, %v6370_v3 }
 0x275   :  { %v1510_v54 = vsel %vm1503_vm5, %v1506_v58, %v1509_v19  ;;  %v1728_v35 = vadd.s32 1, %v3414_v61  ;;  %v1718_v45 = vand.u32 2147483647, %v6343_v13  ;;  %v1598_v62 = vsub.s32 4, %v6322_v10 }
 0x276   :  { %v1511_v2 = vsel %vm1501_vm11, nan, %v1510_v54  ;;  %v1587_v51 = vor.u32 %v1586_v59, %v1585_v17  ;;  %v1590_v46 = vshll.u32 %v1589_v52, 23  ;;  %v1674_v18 = vsel %vm1672_vm12, %v1673_v40, %v6370_v3 }
 0x277   :  { %v1833_v41 = vadd.f32 1.0, %v1511_v2  ;;  %vm1729_vm13 = vcmp.gt.s32.totalorder %v1728_v35, 0  ;;  %v1675_v20 = vadd.s32 %v1674_v18, %v1670_v22  ;;  %vm6392_vm14 = vcmp.le.f32.partialorder %v1512_v43, 0.7853982 }
 0x278   :  { %v1591_v6 = vor.u32 4788187, %v1590_v46  ;;  %v1594_v27 = vcvt.s32.f32 %v1587_v51  ;;  %v1730_v56 = vsel %vm1729_vm13, %v1728_v35, 0  ;;  %vm1514_vm15 = vcmp.lt.s32.totalorder %v6187_v39, 0 }
 0x279   :  { %v1849_v8 = vmul.f32 0.5, %v1833_v41  ;;  %v1732_v53 = vand.u32 31, %v1730_v56  ;;  %v1676_v31 = vadd.s32 536870912, %v1675_v20  ;;  %v1725_v15 = vand.u32 8388607, %v1718_v45 }
 0x27a   :  { %v1592_v50 = vand.u32 2147483647, %v1591_v6  ;;  %v1599_v12 = vsel %vm1514_vm15, %v1598_v62, %v6322_v10  ;;  %v1731_v14 = vshrl.u32 %v1730_v56, 5  ;;  %v6422_v23 = vmul.f32 6.2831855, %v6409_v30 }
 0x27b   :  { %v1913_v25 = vmul.f32 %v3430_v16, %v1849_v8  ;;  %v1733_v21 = vsub.s32 32, %v1732_v53  ;;  %v6402_v43 = vshrl.u32 %v1676_v31, 30  ;;  %v1735_v57 = vshll.u32 %v6829_v42, %v1732_v53 }
 0x27c   :  { %v1595_v0 = vmul.f32 %v1594_v27, %v1592_v50  ;;  %v1738_v26 = vshll.u32 %v6830_v1, %v1732_v53  ;;  %v1741_v10 = vshll.u32 %v6813_v28, %v1732_v53  ;;  %v1744_v55 = vshll.u32 %v6815_v9, %v1732_v53 }
 0x27d   :  { %2587 = vperm.xlu1 %4141, %v1913_v25   ;;  %v1736_v37 = vshrl.u32 %v6830_v1, %v1733_v21  ;;  %v1739_v36 = vshrl.u32 %v6813_v28, %v1733_v21  ;;  %v1678_v32 = vshll.u32 %v6402_v43, 30  ;;  %v1742_v38 = vshrl.u32 %v6815_v9, %v1733_v21 }
 0x27e   :  { %v1596_v47 = vxor.u32 2147483648, %v1595_v0  ;;  %v1745_v3 = vshrl.u32 %v6816_v11, %v1733_v21  ;;  %v1601_v24 = vsel %vm6392_vm14, 0, %v1599_v12  ;;  %v1726_v29 = vor.u32 8388608, %v1725_v15 }
 0x27f   :  { %v1747_v17 = vshll.u32 %v6816_v11, %v1732_v53  ;;  %v6426_v16 = vsub.s32 %v1675_v20, %v1678_v32  ;;  %v1734_v61 = vshrl.u32 %v6829_v42, %v1733_v21  ;;  %v1737_v58 = vor.u32 %v1736_v37, %v1735_v57 }
 0x280   :  { %v1597_v19 = vsel %vm1514_vm15, %v1596_v47, %v1595_v0  ;;  %v1740_v52 = vor.u32 %v1739_v36, %v1738_v26  ;;  %v1746_v22 = vor.u32 %v1745_v3, %v1744_v55  ;;  %v1748_v54 = vshrl.u32 %v6817_v7, %v1733_v21 }
 0x281   :  { %v1600_v59 = vsel %vm6392_vm14, %v6187_v39, %v1597_v19  ;;  %v1681_v40 = vsub.s32 0, %v6426_v16  ;;  %v1743_v35 = vor.u32 %v1742_v38, %v1741_v10  ;;  %vm1750_vm1 = vcmp.lt.s32.totalorder %v1731_v14, 1 }
 0x282   :  { %4255 = vcosq.f32 %v1600_v59  ;;  %v1749_v2 = vor.u32 %v1748_v54, %v1747_v17  ;;  %vm1752_vm0 = vcmp.lt.s32.totalorder %v1731_v14, 3  ;;  %vm1753_vm2 = vcmp.lt.s32.totalorder %v1731_v14, 4 }
 0x283   :  { %4257 = vsinq.f32 %v1600_v59  ;;  %v3411_v51 = vmin.u32 %v1681_v40, %v6426_v16  ;;  %vm1751_vm3 = vcmp.lt.s32.totalorder %v1731_v14, 2  ;;  %v1766_v46 = vshll.u32 %v1726_v29, 8 }
 0x284   :  { %v1755_v41 = vsel %vm1753_vm2, %v1743_v35, 2102212464  ;;  %v1758_v62 = vsel %vm1750_vm1, %v1737_v58, %v1740_v52  ;;  %v1759_v18 = vsel %vm1753_vm2, %v1746_v22, 920167782  ;;  %v588_v6 = vand.u32 2139095040, %v6422_v23 }
 0x285   :  { %v1605_v27 = vand.u32 3, %v1601_v24  ;;  %v1683_v20 = vclz %v3411_v51  ;;  %v1760_v56 = vsel %vm1752_vm0, %v1743_v35, %v1759_v18  ;;  %v1762_v8 = vsel %vm1750_vm1, %v1740_v52, %v1743_v35 }
 0x286   :  { %v1754_v49 = vsel %vm1750_vm1, %v1734_v61, %v1737_v58  ;;  %v1756_v53 = vsel %vm1752_vm0, %v1740_v52, %v1755_v41  ;;  %v1761_v50 = vsel %vm1751_vm3, %v1758_v62, %v1760_v56  ;;  %v1763_v31 = vsel %vm1753_vm2, %v1749_v2, 1326507024 }
 0x287   :  { %v3412_v15 = vadd.s32 4294967294, %v1683_v20  ;;  %v1764_v25 = vsel %vm1752_vm0, %v1746_v22, %v1763_v31  ;;  %v6443_v12 = vmul.u32.u64.low %v1766_v46, %v1761_v50  ;;  %v6444_v21 = vmul.u32.u64.high %v1766_v46, %v1761_v50, %v6443_v12 }
 0x288   :  { %v1671_v0 = vadd.s32 %v6369_v63, %v6367_v33  ;;  %v1765_v57 = vsel %vm1751_vm3, %v1762_v8, %v1764_v25  ;;  %v589_v26 = vshrl.u32 %v588_v6, 23  ;;  %v1757_v37 = vsel %vm1751_vm3, %v1754_v49, %v1756_v53 }
 0x289   :  { %vm3413_vm4 = vcmp.lt.s32.totalorder %v3412_v15, 0  ;;  %v6451_v36 = vmul.u32.u64.low %v1766_v46, %v1765_v57  ;;  %v6452_v10 = vmul.u32.u64.high %v1766_v46, %v1765_v57, %v6451_v36  ;;  %vm1604_vm5 = vweird.f32 %v6187_v39 }
 0x28a   :  { %vm1610_vm6 = vcmp.eq.s32.totalorder %v1605_v27, 2  ;;  %v1686_v55 = vsel %vm3413_vm4, 0, %v3412_v15  ;;  %v3370_v47 = vadd.s32 4294967169, %v589_v26  ;;  %v1776_v33 = vadd.s32 1, %v6444_v21 }
 0x28b   :  { %v1687_v38 = vsub.s32 32, %v1686_v55  ;;  %v1688_v3 = vshll.u32 %v6426_v16, %v1686_v55  ;;  %v1691_v24 = vsub.s32 4294967266, %v1686_v55  ;;  %vm1607_vm7 = vcmp.eq.s32.totalorder %v1605_v27, 0 }
 0x28c   :  { %v4256_v32 = vpop.eup %4255  ;;  %v1773_v14 = vmul.u32 %v1766_v46, %v1757_v37  ;;  %v595_v17 = vadd.s32 1, %v3370_v47  ;;  %vm1606_vm8 = vcmp.lt.s32.totalorder %v1605_v27, 2  ;;  %vm1775_vm9 = vc.u32 %v6452_v10, %v6443_v12 }
 0x28d   :  { %v4258_v63 = vpop.eup %4257  ;;  %v1611_v29 = vxor.u32 2147483648, %v4256_v32  ;;  %v1689_v61 = vshrl.u32 %v1671_v0, %v1687_v38  ;;  %v1692_v58 = vadd.s32 127, %v1691_v24  ;;  %v585_v52 = vand.u32 2147483647, %v6422_v23 }
 0x28e   :  { %v1608_v19 = vxor.u32 2147483648, %v4258_v63  ;;  %vm596_vm10 = vcmp.gt.s32.totalorder %v595_v17, 0  ;;  %v1777_v40 = vsel %vm1775_vm9, %v1776_v33, %v6444_v21  ;;  %vm1866_vm11 = vcmp.lt.f32.partialorder %v6175_v34, 0.5 }
 0x28f   :  { %v1612_v59 = vsel %vm1610_vm6, %v1611_v29, %v4258_v63  ;;  %v1690_v22 = vor.u32 %v1689_v61, %v1688_v3  ;;  %v1693_v54 = vshll.u32 %v1692_v58, 23  ;;  %v1778_v2 = vadd.s32 %v1777_v40, %v1773_v14 }
 0x290   :  { %v1609_v16 = vsel %vm1607_vm7, %v4256_v32, %v1608_v19  ;;  %v597_v51 = vsel %vm596_vm10, %v595_v17, 0  ;;  %v1701_v18 = vsub.s32 4, %v6402_v43  ;;  %vm6468_vm12 = vcmp.le.f32.partialorder %v1615_v44, 0.7853982 }
 0x291   :  { %v1613_v35 = vsel %vm1606_vm8, %v1609_v16, %v1612_v59  ;;  %v1694_v41 = vor.u32 4788187, %v1693_v54  ;;  %v1697_v62 = vcvt.s32.f32 %v1690_v22  ;;  %v1779_v20 = vadd.s32 536870912, %v1778_v2 }
 0x292   :  { %v1614_v46 = vsel %vm1604_vm5, nan, %v1613_v35  ;;  %v599_v56 = vand.u32 31, %v597_v51  ;;  %v3431_v34 = vsel %vm1866_vm11, 1.0, %v6826_v48  ;;  %vm1617_vm13 = vcmp.lt.s32.totalorder %v6244_v60, 0 }
 0x293   :  { %v1834_v6 = vadd.f32 1.0, %v1614_v46  ;;  %v1695_v8 = vand.u32 2147483647, %v1694_v41  ;;  %v592_v39 = vand.u32 8388607, %v585_v52  ;;  %v6476_v53 = vshrl.u32 %v1779_v20, 30 }
 0x294   :  { %v598_v50 = vshrl.u32 %v597_v51, 5  ;;  %v600_v31 = vsub.s32 32, %v599_v56  ;;  %v1702_v44 = vsel %vm1617_vm13, %v1701_v18, %v6402_v43  ;;  %v602_v25 = vshll.u32 %v6829_v42, %v599_v56 }
 0x295   :  { %v1850_v49 = vmul.f32 0.5, %v1834_v6  ;;  %v1698_v15 = vmul.f32 %v1697_v62, %v1695_v8  ;;  %v605_v21 = vshll.u32 %v6830_v1, %v599_v56  ;;  %v1781_v57 = vshll.u32 %v6476_v53, 30 }
 0x296   :  { %v608_v26 = vshll.u32 %v6813_v28, %v599_v56  ;;  %v611_v37 = vshll.u32 %v6815_v9, %v599_v56  ;;  %v603_v55 = vshrl.u32 %v6830_v1, %v600_v31  ;;  %v606_v47 = vshrl.u32 %v6813_v28, %v600_v31 }
 0x297   :  { %v1914_v0 = vmul.f32 %v3431_v34, %v1850_v49  ;;  %v1699_v36 = vxor.u32 2147483648, %v1698_v15  ;;  %v609_v32 = vshrl.u32 %v6815_v9, %v600_v31  ;;  %v6489_v43 = vsub.s32 %v1778_v2, %v1781_v57 }
 0x298   :  { %v593_v38 = vor.u32 8388608, %v592_v39  ;;  %v612_v3 = vshrl.u32 %v6816_v11, %v600_v31  ;;  %vm617_vm14 = vcmp.lt.s32.totalorder %v598_v50, 1  ;;  %v601_v33 = vshrl.u32 %v6829_v42, %v600_v31 }
 0x299   :  { %2592 = vperm.xlu1 %4141, %v1914_v0   ;;  %v1700_v24 = vsel %vm1617_vm13, %v1699_v36, %v1698_v15  ;;  %v604_v63 = vor.u32 %v603_v55, %v602_v25  ;;  %v614_v29 = vshll.u32 %v6816_v11, %v599_v56  ;;  %v1784_v9 = vsub.s32 0, %v6489_v43 }
 0x29a   :  { %v1703_v28 = vsel %vm6468_vm12, %v6244_v60, %v1700_v24  ;;  %v607_v1 = vor.u32 %v606_v47, %v605_v21  ;;  %v610_v14 = vor.u32 %v609_v32, %v608_v26  ;;  %v613_v17 = vor.u32 %v612_v3, %v611_v37 }
 0x29b   :  { %4259 = vcosq.f32 %v1703_v28  ;;  %v615_v19 = vshrl.u32 %v6817_v7, %v600_v31  ;;  %vm620_vm15 = vcmp.lt.s32.totalorder %v598_v50, 4  ;;  %v1704_v61 = vsel %vm6468_vm12, 0, %v1702_v44 }
 0x29c   :  { %4261 = vsinq.f32 %v1703_v28  ;;  %v3415_v42 = vmin.u32 %v1784_v9, %v6489_v43  ;;  %vm619_vm1 = vcmp.lt.s32.totalorder %v598_v50, 3  ;;  %vm618_vm0 = vcmp.lt.s32.totalorder %v598_v50, 2 }
 0x29d   :  { %v616_v11 = vor.u32 %v615_v19, %v614_v29  ;;  %v622_v58 = vsel %vm620_vm15, %v610_v14, 2102212464  ;;  %v633_v59 = vshll.u32 %v593_v38, 8  ;;  %v621_v22 = vsel %vm617_vm14, %v601_v33, %v604_v63 }
 0x29e   :  { %v1786_v16 = vclz %v3415_v42  ;;  %v625_v54 = vsel %vm617_vm14, %v604_v63, %v607_v1  ;;  %v626_v7 = vsel %vm620_vm15, %v613_v17, 920167782  ;;  %v623_v40 = vsel %vm619_vm1, %v607_v1, %v622_v58 }
 0x29f   :  { %v627_v35 = vsel %vm619_vm1, %v610_v14, %v626_v7  ;;  %v629_v2 = vsel %vm617_vm14, %v607_v1, %v610_v14  ;;  %v630_v51 = vsel %vm620_vm15, %v616_v11, 1326507024  ;;  %v1708_v46 = vand.u32 3, %v1704_v61 }
 0x2a0   :  { %v3416_v41 = vadd.s32 4294967294, %v1786_v16  ;;  %v628_v62 = vsel %vm618_vm0, %v625_v54, %v627_v35  ;;  %v631_v18 = vsel %vm619_vm1, %v613_v17, %v630_v51  ;;  %v1774_v6 = vadd.s32 %v6443_v12, %v6452_v10  ;;  %v6548_v16 = vpop.f32.mrb[16].mxu0 }
 0x2a1   :  { %v632_v27 = vsel %vm618_vm0, %v629_v2, %v631_v18  ;;  %v6517_v20 = vmul.u32.u64.low %v633_v59, %v628_v62  ;;  %v6518_v56 = vmul.u32.u64.high %v633_v59, %v628_v62, %v6517_v20  ;;  %v624_v34 = vsel %vm618_vm0, %v621_v22, %v623_v40 }
 0x2a2   :  { %vm3417_vm2 = vcmp.lt.s32.totalorder %v3416_v41, 0  ;;  %v6522_v8 = vmul.u32.u64.low %v633_v59, %v632_v27  ;;  %v6523_v39 = vmul.u32.u64.high %v633_v59, %v632_v27, %v6522_v8  ;;  %vm1713_vm3 = vcmp.eq.s32.totalorder %v1708_v46, 2 }
 0x2a3   :  { %v1789_v49 = vsel %vm3417_vm2, 0, %v3416_v41  ;;  %v640_v12 = vmul.u32 %v633_v59, %v624_v34  ;;  %v643_v10 = vadd.s32 1, %v6518_v56  ;;  %vm1710_vm4 = vcmp.eq.s32.totalorder %v1708_v46, 0 }
 0x2a4   :  { %v1790_v31 = vsub.s32 32, %v1789_v49  ;;  %v1791_v15 = vshll.u32 %v6489_v43, %v1789_v49  ;;  %v1794_v44 = vsub.s32 4294967266, %v1789_v49  ;;  %vm1707_vm5 = vweird.f32 %v6244_v60  ;;  %v6532_v60 = vpop.permute.xlu1 %2527 }
 0x2a5   :  { %v4260_v25 = vpop.eup %4259  ;;  %vm1709_vm6 = vcmp.lt.s32.totalorder %v1708_v46, 2  ;;  %vm642_vm7 = vc.u32 %v6523_v39, %v6517_v20  ;;  %vm1867_vm8 = vcmp.lt.f32.partialorder %v6237_v5, 0.5  ;;  %vm1720_vm9 = vcmp.lt.s32.totalorder %v6343_v13, 0 }
 0x2a6   :  { %v4262_v21 = vpop.eup %4261  ;;  %v1714_v0 = vxor.u32 2147483648, %v4260_v25  ;;  %v1792_v57 = vshrl.u32 %v1774_v6, %v1790_v31  ;;  %v1795_v26 = vadd.s32 127, %v1794_v44  ;;  %v644_v47 = vsel %vm642_vm7, %v643_v10, %v6518_v56 }
 0x2a7   :  { %v1711_v50 = vxor.u32 2147483648, %v4262_v21  ;;  %v645_v43 = vadd.s32 %v644_v47, %v640_v12  ;;  %v3432_v9 = vsel %vm1867_vm8, 1.0, %v6826_v48  ;;  %vm6541_vm10 = vcmp.le.f32.partialorder %v1718_v45, 0.7853982 }
 0x2a8   :  { %v1715_v37 = vsel %vm1713_vm3, %v1714_v0, %v4262_v21  ;;  %v1793_v36 = vor.u32 %v1792_v57, %v1791_v15  ;;  %v1796_v55 = vshll.u32 %v1795_v26, 23  ;;  %v1804_v11 = vsub.s32 4, %v6476_v53  ;;  %v6546_v59 = vpop.permute.xlu1 %2532 }
 0x2a9   :  { %v1712_v32 = vsel %vm1710_vm4, %v4260_v25, %v1711_v50  ;;  %v646_v63 = vadd.s32 536870912, %v645_v43  ;;  %v641_v62 = vadd.s32 %v6517_v20, %v6523_v39  ;;  %vm1810_vm15 = vweird.f32 %v6343_v13 }
 0x2aa   :  { %v1716_v38 = vsel %vm1709_vm6, %v1712_v32, %v1715_v37  ;;  %v1797_v3 = vor.u32 4788187, %v1796_v55  ;;  %v1800_v24 = vcvt.s32.f32 %v1793_v36  ;;  %v1805_v45 = vsel %vm1720_vm9, %v1804_v11, %v6476_v53 }
 0x2ab   :  { %v1717_v33 = vsel %vm1707_vm5, nan, %v1716_v38  ;;  %v6535_v1 = vshrl.u32 %v646_v63, 30  ;;  %v1807_v35 = vsel %vm6541_vm10, 0, %v1805_v45  ;;  %vm1868_vm1 = vcmp.lt.f32.partialorder %v6327_v4, 0.5 }
 0x2ac   :  { %v1835_v29 = vadd.f32 1.0, %v1717_v33  ;;  %v1798_v28 = vand.u32 2147483647, %v1797_v3  ;;  %v6556_v51 = vpop.permute.xlu1 %2537  ;;  %v1811_v41 = vand.u32 3, %v1807_v35  ;;  %v3433_v36 = vsel %vm1868_vm1, 1.0, %v6826_v48  ;;  %v2794_v3 = vpop.f32.mrb[17].mxu0 }
 0x2ad   :  { %v648_v19 = vshll.u32 %v6535_v1, 30  ;;  %vm587_vm0 = vcmp.lt.s32.totalorder %v6422_v23, 0  ;;  %vm6566_vm2 = vcmp.le.f32.partialorder %v585_v52, 0.7853982  ;;  %v6576_v33 = vld [vmem:[%s6719_s9] ss:$0 sm:$0xff]  ;;  %vm677_vm6 = vweird.f32 %v6422_v23 }
 0x2ae   :  { %v1851_v14 = vmul.f32 0.5, %v1835_v29  ;;  %v1801_v17 = vmul.f32 %v1800_v24, %v1798_v28  ;;  %vm1816_vm12 = vcmp.eq.s32.totalorder %v1811_v41, 2  ;;  %vm1813_vm13 = vcmp.eq.s32.totalorder %v1811_v41, 0  ;;  %v3722_v24 = vpop.f32.mrb[0].mxu1  ;;  %v3757_v52 = vpop.f32.mrb[18].mxu0 }
 0x2af   :  { %v649_v58 = vsub.s32 %v645_v43, %v648_v19  ;;  %vm1812_vm14 = vcmp.lt.s32.totalorder %v1811_v41, 2  ;;  %v671_v43 = vsub.s32 4, %v6535_v1  ;;  %v2452_v29 = vadd.f32 %v3722_v24, %v6576_v33  ;;  %v2446_v28 = vpop.f32.mrb[1].mxu1 }
 0x2b0   :  { %v1915_v61 = vmul.f32 %v3432_v9, %v1851_v14  ;;  %v1802_v42 = vxor.u32 2147483648, %v1801_v17  ;;  %v2543_v53 = vpop.permute.xlu1 %2542  ;;  %v2804_v14 = vpop.f32.mrb[19].mxu0  ;;  %vm1857_vm7 = vcmp.lt.f32.partialorder %v6409_v30, 0.5 }
 0x2b1   :  { %v651_v7 = vsub.s32 0, %v649_v58  ;;  %v3725_v19 = vpop.f32.mrb[2].mxu1  ;;  %v3760_v5 = vpop.f32.mrb[20].mxu0 }
 0x2b2   :  { %2597 = vperm.xlu1 %4141, %v1915_v61   ;;  %v1803_v22 = vsel %vm1720_vm9, %v1802_v42, %v1801_v17  ;;  %v2447_v17 = vadd.f32 %v6576_v33, %v2446_v28  ;;  %v672_v61 = vsel %vm587_vm0, %v671_v43, %v6535_v1  ;;  %v2606_v42 = vmul.f32 %v6546_v59, %v2452_v29 }
 0x2b3   :  { %v1806_v54 = vsel %vm6541_vm10, %v6343_v13, %v1803_v22  ;;  %v3371_v40 = vmin.u32 %v651_v7, %v649_v58  ;;  %v2462_v11 = vadd.f32 %v3725_v19, %v6576_v33  ;;  %v6590_v22 = vpop.f32.mrb[21].mxu0  ;;  %v674_v59 = vsel %vm6566_vm2, 0, %v672_v61 }
 0x2b4   :  { %4263 = vcosq.f32 %v1806_v54  ;;  %v2553_v57 = vpop.permute.xlu1 %2552  ;;  %v2874_v35 = vmul.f32 %v6548_v16, %v2606_v42 }
 0x2b5   :  { %4265 = vsinq.f32 %v1806_v54  ;;  %v653_v2 = vclz %v3371_v40  ;;  %v2605_v54 = vmul.f32 %v6532_v60, %v2447_v17  ;;  %v6594_v40 = vpop.f32.mrb[22].mxu0  ;;  %v2608_v1 = vmul.f32 %v2543_v53, %v2462_v11 }
 0x2b6   :  { %v6600_v41 = vpop.f32.mrb[23].mxu0  ;;  %2890 = vst [vmem:[#allocation16 + $0x8] sm:$0xff] %v2874_v35 }
 0x2b7   :  { %v3372_v46 = vadd.s32 4294967294, %v653_v2 }
 0x2b8   :  { %v6571_v38 = vpop.permute.xlu1 %2557 }
 0x2b9   :  { %vm3373_vm11 = vcmp.lt.s32.totalorder %v3372_v46, 0 }
 0x2ba   :  { %v656_v18 = vsel %vm3373_vm11, 0, %v3372_v46 }
 0x2bb   :  { %v657_v6 = vsub.s32 32, %v656_v18  ;;  %v658_v27 = vshll.u32 %v649_v58, %v656_v18  ;;  %v661_v56 = vsub.s32 4294967266, %v656_v18  ;;  %v2456_v58 = vpop.f32.mrb[3].mxu1 }
 0x2bc   :  { %v2457_v7 = vadd.f32 %v6576_v33, %v2456_v58  ;;  %v3728_v45 = vpop.f32.mrb[4].mxu1 }
 0x2bd   :  { %v659_v31 = vshrl.u32 %v641_v62, %v657_v6  ;;  %v662_v15 = vadd.s32 127, %v661_v56  ;;  %v2472_v2 = vadd.f32 %v3728_v45, %v6576_v33  ;;  %v2466_v46 = vpop.f32.mrb[5].mxu1  ;;  %v2873_v62 = vmul.f32 %v2794_v3, %v2605_v54 }
 0x2be   :  { %v4264_v34 = vpop.eup %4263  ;;  %v2607_v18 = vmul.f32 %v6556_v51, %v2457_v7  ;;  %v6604_v60 = vadd.f32 %v6576_v33, %v2466_v46  ;;  %v2876_v6 = vmul.f32 %v3757_v52, %v2608_v1 }
 0x2bf   :  { %v4266_v8 = vpop.eup %4265  ;;  %v1817_v49 = vxor.u32 2147483648, %v4264_v34  ;;  %v660_v12 = vor.u32 %v659_v31, %v658_v27  ;;  %v663_v20 = vshll.u32 %v662_v15, 23  ;;  %v3766_v27 = vpop.f32.mrb[24].mxu0  ;;  %v2610_v56 = vmul.f32 %v2553_v57, %v2472_v2  ;;  %2889 = vst [vmem:[#allocation16] sm:$0xff] %v2873_v62 }
 0x2c0   :  { %v1814_v44 = vxor.u32 2147483648, %v4266_v8  ;;  %v2875_v16 = vmul.f32 %v2804_v14, %v2607_v18  ;;  %v2834_v53 = vpop.f32.mrb[25].mxu0  ;;  %2892 = vst [vmem:[#allocation16 + $0x18] sm:$0xff] %v2876_v6  ;;  %v2563_v31 = vpop.permute.xlu1 %2562  ;;  %v3422_v57 = vsel %vm1857_vm7, 1.0, %v6826_v48 }
 0x2c1   :  { %v1818_v25 = vsel %vm1816_vm12, %v1817_v49, %v4266_v8  ;;  %v664_v21 = vor.u32 4788187, %v663_v20  ;;  %v667_v0 = vcvt.s32.f32 %v660_v12  ;;  %v678_v8 = vand.u32 3, %v674_v59 }
 0x2c2   :  { %v1815_v39 = vsel %vm1813_vm13, %v4264_v34, %v1814_v44  ;;  %v3962_v34 = vpack.c.bf16 %v2874_v35, %v2873_v62  ;;  %v6606_v49 = vmul.f32 %v3760_v5, %v2610_v56  ;;  %2891 = vst [vmem:[#allocation16 + $0x10] sm:$0xff] %v2875_v16 }
 0x2c3   :  { %v1819_v10 = vsel %vm1812_vm14, %v1815_v39, %v1818_v25  ;;  %v665_v37 = vand.u32 2147483647, %v664_v21  ;;  %vm683_vm3 = vcmp.eq.s32.totalorder %v678_v8, 2  ;;  %vm680_vm4 = vcmp.eq.s32.totalorder %v678_v8, 0 }
 0x2c4   :  { %v1820_v26 = vsel %vm1810_vm15, nan, %v1819_v10  ;;  %3963 = vmatprep.subr.bf16.mxu1 %v3962_v34  ;;  %2894 = vst [vmem:[#allocation16 + $0x28] sm:$0xff] %v6606_v49  ;;  %vm679_vm5 = vcmp.lt.s32.totalorder %v678_v8, 2  ;;  %v2568_v39 = vpop.permute.xlu1 %2567 }
 0x2c5   :  { %v1836_v50 = vadd.f32 1.0, %v1820_v26  ;;  %v668_v47 = vmul.f32 %v667_v0, %v665_v37  ;;  %3965 = vmatpush3.bf16.msra.mxu1 %v3962_v34 }
 0x2c7   :  { %v1852_v55 = vmul.f32 0.5, %v1836_v50  ;;  %v669_v4 = vxor.u32 2147483648, %v668_v47 }
 0x2c8   :  { %v2573_v50 = vpop.permute.xlu1 %2572 }
 0x2c9   :  { %v1916_v13 = vmul.f32 %v3433_v36, %v1852_v55  ;;  %v670_v63 = vsel %vm587_vm0, %v669_v4, %v668_v47  ;;  %v3731_v55 = vpop.f32.mrb[6].mxu1  ;;  %v3966_v47 = vpack.c.bf16 %v2876_v6, %v2875_v16 }
 0x2ca   :  { %v673_v9 = vsel %vm6566_vm2, %v6422_v23, %v670_v63  ;;  %v2482_v23 = vadd.f32 %v3731_v55, %v6576_v33  ;;  %v2476_v32 = vpop.f32.mrb[7].mxu1  ;;  %v3034_v55 = vld [vmem:[#allocation12 + $0x40] sm:$0xff] }
 0x2cb   :  { %2602 = vperm.xlu1 %4141, %v1916_v13   ;;  %4267 = vcosq.f32 %v673_v9  ;;  %v3769_v13 = vpop.f32.mrb[26].mxu0  ;;  %v2477_v43 = vadd.f32 %v6576_v33, %v2476_v32  ;;  %3967 = vmatprep.subr.bf16.mxu1 %v3966_v47  ;;  %v3734_v30 = vpop.f32.mrb[8].mxu1  ;;  %v3037_v32 = vld [vmem:[#allocation12 + $0x58] sm:$0xff] }
 0x2cc   :  { %4269 = vsinq.f32 %v673_v9  ;;  %v2578_v36 = vpop.permute.xlu1 %2577  ;;  %v2844_v4 = vpop.f32.mrb[27].mxu0  ;;  %v2612_v3 = vmul.f32 %v2563_v31, %v2482_v23  ;;  %3969 = vmatpush3.bf16.msra.mxu1 %v3966_v47  ;;  %v2492_v48 = vadd.f32 %v3734_v30, %v6576_v33  ;;  %v6640_v31 = vld [vmem:[%s6713_s3] ss:$0 sm:$0xff]  ;;  %v3035_v47 = vld [vmem:[#allocation12 + $0x48] sm:$0xff]  ;;  %v3036_v23 = vld [vmem:[#allocation12 + $0x50] sm:$0xff] }
 0x2cd   :  { %v2486_v24 = vpop.f32.mrb[9].mxu1  ;;  %v2611_v63 = vmul.f32 %v6571_v38, %v2477_v43  ;;  %v6617_v28 = vpop.f32.mrb[28].mxu0  ;;  %v4014_v43 = vpack.c.bf16 %v3037_v32, %v3036_v23 }
 0x2ce   :  { %v2487_v52 = vadd.f32 %v6576_v33, %v2486_v24  ;;  %v3737_v29 = vpop.f32.mrb[10].mxu1  ;;  %v2880_v9 = vmul.f32 %v6594_v40, %v2612_v3  ;;  %v2614_v14 = vmul.f32 %v2573_v50, %v2492_v48  ;;  %v2854_v7 = vpop.f32.mrb[29].mxu0  ;;  %v3032_v50 = vld [vmem:[#allocation12 + $0x30] sm:$0xff]  ;;  %v3038_v3 = vld [vmem:[#allocation12 + $0x60] sm:$0xff]  ;;  %v3039_v48 = vld [vmem:[#allocation12 + $0x68] sm:$0xff] }
 0x2cf   :  { %v2502_v17 = vadd.f32 %v3737_v29, %v6576_v33  ;;  %v2496_v19 = vpop.f32.mrb[11].mxu1  ;;  %v2879_v5 = vmul.f32 %v6600_v41, %v2611_v63  ;;  %v6633_v56 = vpop.f32.mrb[30].mxu0  ;;  %v4018_v63 = vpack.c.bf16 %v3039_v48, %v3038_v3  ;;  %v3040_v29 = vld [vmem:[#allocation12 + $0x70] sm:$0xff] }
 0x2d0   :  { %v2613_v42 = vmul.f32 %v2568_v39, %v2487_v52  ;;  %v2497_v11 = vadd.f32 %v6576_v33, %v2496_v19  ;;  %2896 = vst [vmem:[#allocation16 + $0x38] sm:$0xff] %v2880_v9  ;;  %v2882_v58 = vmul.f32 %v3766_v27, %v2614_v14  ;;  %v3740_v54 = vpop.f32.mrb[12].mxu1  ;;  %v3028_v39 = vld [vmem:[#allocation12 + $0x10] sm:$0xff] }
 0x2d1   :  { %2895 = vst [vmem:[#allocation16 + $0x30] sm:$0xff] %v2879_v5  ;;  %v6623_v1 = vpack.c.bf16 %v2880_v9, %v2879_v5  ;;  %v2512_v40 = vadd.f32 %v3740_v54, %v6576_v33  ;;  %v2506_v2 = vpop.f32.mrb[13].mxu1  ;;  %v3041_v9 = vld [vmem:[#allocation12 + $0x78] sm:$0xff] }
 0x2d2   :  { %v2881_v45 = vmul.f32 %v2834_v53, %v2613_v42  ;;  %v2615_v35 = vmul.f32 %v2578_v36, %v2497_v11  ;;  %2898 = vst [vmem:[#allocation16 + $0x48] sm:$0xff] %v2882_v58  ;;  %v3743_v62 = vpop.f32.mrb[14].mxu1  ;;  %v2864_v53 = vpop.f32.mrb[31].mxu0  ;;  %v2507_v34 = vadd.f32 %v6576_v33, %v2506_v2  ;;  %v4022_v14 = vpack.c.bf16 %v3041_v9, %v3040_v29  ;;  %v3198_v2 = vld [vmem:[#allocation13] sm:$0xff] }
 0x2d3   :  { %v6629_v18 = vadd.f32 %v3743_v62, %v6576_v33  ;;  %v2516_v6 = vpop.f32.mrb[15].mxu1  ;;  %v3201_v62 = vld [vmem:[#allocation13 + $0x18] sm:$0xff] }
 0x2d4   :  { %2897 = vst [vmem:[#allocation16 + $0x40] sm:$0xff] %v2881_v45  ;;  %v2883_v59 = vmul.f32 %v2844_v4, %v2615_v35  ;;  %v6626_v41 = vpack.c.bf16 %v2882_v58, %v2881_v45  ;;  %v2517_v16 = vadd.f32 %v6576_v33, %v2516_v6  ;;  %v3029_v33 = vld [vmem:[#allocation12 + $0x18] sm:$0xff]  ;;  %v3202_v6 = vld [vmem:[#allocation13 + $0x20] sm:$0xff] }
 0x2d5   :  { %v4268_v51 = vpop.eup %4267 }
 0x2d6   :  { %v4270_v15 = vpop.eup %4269  ;;  %v684_v44 = vxor.u32 2147483648, %v4268_v51  ;;  %2899 = vst [vmem:[#allocation16 + $0x50] sm:$0xff] %v2883_v59 }
 0x2d7   :  { %v681_v25 = vxor.u32 2147483648, %v4270_v15 }
 0x2d8   :  { %v685_v12 = vsel %vm683_vm3, %v684_v44, %v4270_v15  ;;  %v6853_v44 = vld [vmem:[#allocation24_spill] sm:$0xff] }
 0x2d9   :  { %v682_v20 = vsel %vm680_vm4, %v4268_v51, %v681_v25  ;;  %vm2910_vm8 = vcmp.eq.s32.totalorder %v6640_v31, %v6853_v44  ;;  %v4494_v25 = vmov 1.0   ;;  %v3209_v44 = vld [vmem:[#allocation13 + $0x58] sm:$0xff] }
 0x2da   :  { %v686_v10 = vsel %vm679_vm5, %v682_v20, %v685_v12  ;;  %3808 = vmatprep.mubr.msk.f32.mxu1 %vm2910_vm8, %v4494_v25  ;;  %v3026_v12 = vld [vmem:[#allocation12] sm:$0xff]  ;;  %v3027_v20 = vld [vmem:[#allocation12 + $0x8] sm:$0xff] }
 0x2db   :  { %v687_v21 = vsel %vm677_vm6, nan, %v686_v10  ;;  %v3994_v10 = vpack.c.bf16 %v3027_v20, %v3026_v12  ;;  %v3211_v20 = vld [vmem:[#allocation13 + $0x68] sm:$0xff] }
 0x2dc   :  { %v1825_v0 = vadd.f32 1.0, %v687_v21  ;;  %v3998_v21 = vpack.c.bf16 %v3029_v33, %v3028_v39  ;;  %v3213_v33 = vld [vmem:[#allocation13 + $0x78] sm:$0xff] }
 0x2dd   :  { %3995 = vmatprep.subr.bf16.mxu0 %v3994_v10 }
 0x2de   :  { %v1841_v26 = vmul.f32 0.5, %v1825_v0  ;;  %v3030_v0 = vld [vmem:[#allocation12 + $0x20] sm:$0xff]  ;;  %3997 = vmatpush3.bf16.msra.mxu0 %v3994_v10  ;;  %v3212_v10 = vld [vmem:[#allocation13 + $0x70] sm:$0xff] }
 0x2df   :  { %3999 = vmatprep.subr.bf16.mxu0 %v3998_v21 }
 0x2e0   :  { %v1905_v37 = vmul.f32 %v3422_v57, %v1841_v26  ;;  %v3031_v57 = vld [vmem:[#allocation12 + $0x28] sm:$0xff] }
 0x2e1   :  { %v4002_v26 = vpack.c.bf16 %v3031_v57, %v3030_v0  ;;  %v3482_v0 = vld [vmem:[%s6721_s11] ss:$0 sm:$0xff]  ;;  %s4495_s11 = smov [#allocation16]  }
 0x2e2   :  { %2547 = vperm.xlu0 %4142, %v1905_v37   ;;  %v3033_v37 = vld [vmem:[#allocation12 + $0x38] sm:$0xff]  ;;  %4001 = vmatpush3.bf16.msra.mxu0 %v3998_v21  ;;  %v4054_v21 = vpack.c.bf16 %v3213_v33, %v3212_v10  ;;  %s3335_s27 = sshll.u32 %s4495_s11, 4  ;;  %s3336_s27 = int_to_ptr.vmem [resolvable:$true] %s3335_s27 }
 0x2e3   :  { %4003 = vmatprep.subr.bf16.mxu0 %v4002_v26  ;;  %v4006_v36 = vpack.c.bf16 %v3033_v37, %v3032_v50  ;;  %s4422_s8 = scalar_lea.vmem %s3336_s27, 2048  ;;  %p4427_p7 = scmp.lt.s32.totalorder %s3336_s27, %s3336_s27 }
 0x2e4   :  { %p4423_p6 = scmp.ne.s32.totalorder %s3336_s27, %s4422_s8  ;;  %p4428_p8 = scmp.lt.s32.totalorder %s4422_s8, %s4422_s8 }
 0x2e6   :  { %4005 = vmatpush3.bf16.msra.mxu0 %v4002_v26  ;;  %p4429_p9 = por %p4428_p8, %p4427_p7 }
 0x2e7   :  { %v2583_v61 = vpop.permute.xlu1 %2582  ;;  %4007 = vmatprep.subr.bf16.mxu0 %v4006_v36 }
 0x2e8   :  { %v2616_v38 = vmul.f32 %v2583_v61, %v2502_v17  ;;  %p4430_p10 = pnand %p4429_p9, %p4423_p6 }
 0x2ea   :  { %v2884_v46 = vmul.f32 %v3769_v13, %v2616_v38  ;;  %v4010_v13 = vpack.c.bf16 %v3035_v47, %v3034_v55  ;;  %4009 = vmatpush3.bf16.msra.mxu0 %v4006_v36 }
 0x2ec   :  { %2900 = vst [vmem:[#allocation16 + $0x58] sm:$0xff] %v2884_v46  ;;  %v6631_v27 = vpack.c.bf16 %v2884_v46, %v2883_v59  ;;  %4011 = vmatprep.subr.bf16.mxu0 %v4010_v13  ;;  %v3199_v46 = vld [vmem:[#allocation13 + $0x8] sm:$0xff] }
 0x2ed   :  { %v4026_v59 = vpack.c.bf16 %v3199_v46, %v3198_v2 }
 0x2ee   :  { %4013 = vmatpush3.bf16.msra.mxu0 %v4010_v13 }
 0x2ef   :  { %4015 = vmatprep.subr.bf16.mxu0 %v4014_v43 }
 0x2f2   :  { %4017 = vmatpush3.bf16.msra.mxu0 %v4014_v43 }
 0x2f3   :  { %4019 = vmatprep.subr.bf16.mxu0 %v4018_v63 }
 0x2f6   :  { %4021 = vmatpush3.bf16.msra.mxu0 %v4018_v63 }
 0x2f7   :  { %4023 = vmatprep.subr.bf16.mxu0 %v4022_v14 }
 0x2fa   :  { %4025 = vmatpush3.bf16.msra.mxu0 %v4022_v14 }
 0x2fc   :  { %v2588_v8 = vpop.permute.xlu1 %2587 }
 0x2fd   :  { %v2617_v51 = vmul.f32 %v2588_v8, %v2507_v34  ;;  %v3206_v8 = vld [vmem:[#allocation13 + $0x40] sm:$0xff] }
 0x2ff   :  { %v2885_v15 = vmul.f32 %v2854_v7, %v2617_v51 }
 0x301   :  { %2901 = vst [vmem:[#allocation16 + $0x60] sm:$0xff] %v2885_v15 }
 0x318   :  { %v2593_v4 = vpop.permute.xlu1 %2592 }
 0x319   :  { %v2618_v30 = vmul.f32 %v2593_v4, %v2512_v40 }
 0x31b   :  { %v2886_v24 = vmul.f32 %v6617_v28, %v2618_v30 }
 0x31d   :  { %2902 = vst [vmem:[#allocation16 + $0x68] sm:$0xff] %v2886_v24  ;;  %v3986_v52 = vpack.c.bf16 %v2886_v24, %v2885_v15  ;;  %v3208_v15 = vld [vmem:[#allocation13 + $0x50] sm:$0xff] }
 0x31e   :  { %v4046_v12 = vpack.c.bf16 %v3209_v44, %v3208_v15 }
 0x331   :  { %v2598_v17 = vpop.permute.xlu1 %2597 }
 0x332   :  { %v2619_v19 = vmul.f32 %v2598_v17, %v2517_v16  ;;  %v3204_v16 = vld [vmem:[#allocation13 + $0x30] sm:$0xff] }
 0x334   :  { %v2887_v61 = vmul.f32 %v2864_v53, %v2619_v19  ;;  %v3205_v53 = vld [vmem:[#allocation13 + $0x38] sm:$0xff] }
 0x335   :  { %v4038_v34 = vpack.c.bf16 %v3205_v53, %v3204_v16 }
 0x336   :  { %2903 = vst [vmem:[#allocation16 + $0x70] sm:$0xff] %v2887_v61 }
 0x34a   :  { %v2603_v5 = vpop.permute.xlu1 %2602 }
 0x34b   :  { %v2620_v28 = vmul.f32 %v2603_v5, %v6629_v18 }
 0x34d   :  { %v2888_v42 = vmul.f32 %v6633_v56, %v2620_v28 }
 0x34f   :  { %2904 = vst [vmem:[#allocation16 + $0x78] sm:$0xff] %v2888_v42  ;;  %v3990_v11 = vpack.c.bf16 %v2888_v42, %v2887_v61 }
 0x361   :  { %v2548_v58 = vpop.permute.xlu0 %2547 }
 0x362   :  { %v2609_v38 = vmul.f32 %v2548_v58, %v6604_v60  ;;  %v6855_v60 = vld [vmem:[#allocation26_spill] sm:$0xff] }
 0x363   :  { %vm2912_vm10 = vcmp.eq.s32.totalorder %v6640_v31, %v6855_v60 }
 0x364   :  { %v2877_v54 = vmul.f32 %v6590_v22, %v2609_v38  ;;  %v6854_v22 = vld [vmem:[#allocation25_spill] sm:$0xff] }
 0x365   :  { %vm2911_vm9 = vcmp.eq.s32.totalorder %v6640_v31, %v6854_v22 }
 0x366   :  { %2893 = vst [vmem:[#allocation16 + $0x20] sm:$0xff] %v2877_v54  ;;  %v3970_v7 = vpack.c.bf16 %v6606_v49, %v2877_v54  ;;  %v6856_v49 = vld [vmem:[#allocation27_spill] sm:$0xff] }
 0x367   :  { %vm2913_vm11 = vcmp.eq.s32.totalorder %v6640_v31, %v6856_v49  ;;  %v3207_v31 = vld [vmem:[#allocation13 + $0x48] sm:$0xff] }
 0x368   :  { %3971 = vmatprep.subr.bf16.mxu1 %v3970_v7  ;;  %v4042_v51 = vpack.c.bf16 %v3207_v31, %v3206_v8 }
 0x369   :  { %3973 = vmatpush3.bf16.msra.mxu1 %v3970_v7 }
 0x36a   :  { %3975 = vmatprep.subr.bf16.mxu1 %v6623_v1 }
 0x36d   :  { %3977 = vmatpush3.bf16.msra.mxu1 %v6623_v1 }
 0x36e   :  { %3979 = vmatprep.subr.bf16.mxu1 %v6626_v41 }
 0x371   :  { %3981 = vmatpush3.bf16.msra.mxu1 %v6626_v41  ;;  %v3200_v41 = vld [vmem:[#allocation13 + $0x10] sm:$0xff] }
 0x372   :  { %3983 = vmatprep.subr.bf16.mxu1 %v6631_v27  ;;  %v4030_v18 = vpack.c.bf16 %v3201_v62, %v3200_v41 }
 0x375   :  { %3985 = vmatpush3.bf16.msra.mxu1 %v6631_v27  ;;  %v3203_v27 = vld [vmem:[#allocation13 + $0x28] sm:$0xff] }
 0x376   :  { %3987 = vmatprep.subr.bf16.mxu1 %v3986_v52  ;;  %v4034_v56 = vpack.c.bf16 %v3203_v27, %v3202_v6 }
 0x379   :  { %3989 = vmatpush3.bf16.msra.mxu1 %v3986_v52 }
 0x37a   :  { %3991 = vmatprep.subr.bf16.mxu1 %v3990_v11 }
 0x37d   :  { %3993 = vmatpush3.bf16.msra.mxu1 %v3990_v11 }
 0x37e   :  { %4027 = vmatprep.subr.bf16.mxu1 %v4026_v59 }
 0x380   :  { %3809 = vmatmul.mubr.msk.f32.vlgmr.msra.gmra.mrb[16].mxu1 %vm2911_vm9, %v4494_v25 }
 0x381   :  { %3811 = vmatprep.mubr.msk.f32.mxu1 %vm2912_vm10, %v4494_v25  ;;  %4029 = vmatpush3.bf16.msra.mxu1 %v4026_v59 }
 0x382   :  { %4031 = vmatprep.subr.bf16.mxu1 %v4030_v18 }
 0x384   :  { %3812 = vmatmul.mubr.msk.f32.gmra.mrb[18].mxu1 %vm2913_vm11, %v4494_v25  ;;  %v3210_v25 = vld [vmem:[#allocation13 + $0x60] sm:$0xff] }
 0x385   :  { %4033 = vmatpush3.bf16.msra.mxu1 %v4030_v18  ;;  %v4050_v39 = vpack.c.bf16 %v3211_v20, %v3210_v25 }
 0x386   :  { %4035 = vmatprep.subr.bf16.mxu1 %v4034_v56 }
 0x389   :  { %4037 = vmatpush3.bf16.msra.mxu1 %v4034_v56 }
 0x38a   :  { %4039 = vmatprep.subr.bf16.mxu1 %v4038_v34 }
 0x38d   :  { %4041 = vmatpush3.bf16.msra.mxu1 %v4038_v34 }
 0x38e   :  { %4043 = vmatprep.subr.bf16.mxu1 %v4042_v51 }
 0x391   :  { %4045 = vmatpush3.bf16.msra.mxu1 %v4042_v51 }
 0x392   :  { %4047 = vmatprep.subr.bf16.mxu1 %v4046_v12 }
 0x395   :  { %4049 = vmatpush3.bf16.msra.mxu1 %v4046_v12 }
 0x396   :  { %4051 = vmatprep.subr.bf16.mxu1 %v4050_v39 }
 0x399   :  { %4053 = vmatpush3.bf16.msra.mxu1 %v4050_v39 }
 0x39a   :  { %4055 = vmatprep.subr.bf16.mxu1 %v4054_v21 }
 0x39d   :  { %4057 = vmatpush3.bf16.msra.mxu1 %v4054_v21 }
 0x453   :  { %v3810_v45 = vpop.f32.mrb[16].mxu1 }
 0x454   :  { %v2992_v35 = vpop.f32.mrb[17].mxu1 }
 0x455   :  { %3846 = vmatprep.mubr.f32.mxu0 %v2992_v35 }
 0x456   :  { %3847 = vmatmul.mubr.f32.vlgmr.msra.gmra.mrb[32].mxu0 %v3810_v45 }
 0x457   :  { %v3813_v1 = vpop.f32.mrb[18].mxu1 }
 0x458   :  { %v3002_v40 = vpop.f32.mrb[19].mxu1 }
 0x459   :  { %3849 = vmatprep.mubr.f32.mxu0 %v3002_v40 }
 0x45a   :  { %3850 = vmatmul.mubr.f32.gmra.mrb[34].mxu0 %v3813_v1 }
 0x529   :  { %v3848_v57 = vpop.f32.mrb[32].mxu0 }
 0x52a   :  { %v3121_v26 = vadd.f32 %v3848_v57, %v3482_v0  ;;  %v3115_v50 = vpop.f32.mrb[33].mxu0 }
 0x52b   :  { %v3116_v37 = vadd.f32 %v3482_v0, %v3115_v50 }
 0x52c   :  { %v3139_v36 = vand.u32 2147483647, %v3121_v26  ;;  %v3135_v1 = vmax.f32 %v3121_v26, 0.0 }
 0x52d   :  { %v3138_v55 = vand.u32 2147483647, %v3116_v37  ;;  %v3851_v47 = vpop.f32.mrb[34].mxu0  ;;  %v3134_v56 = vmax.f32 %v3116_v37, 0.0 }
 0x52e   :  { %v3143_v13 = vsub.f32 0.0, %v3139_v36  ;;  %v6669_v23 = vadd.f32 %v3851_v47, %v3482_v0  ;;  %v3125_v32 = vpop.f32.mrb[35].mxu0 }
 0x52f   :  { %v3142_v4 = vsub.f32 0.0, %v3138_v55  ;;  %v6671_v43 = vadd.f32 %v3482_v0, %v3125_v32 }
 0x530   :  { %v3148_v30 = vmul.f32 1.442695, %v3143_v13  ;;  %v3141_v3 = vand.u32 2147483647, %v6669_v23  ;;  %v3137_v25 = vmax.f32 %v6669_v23, 0.0 }
 0x531   :  { %v3146_v48 = vmul.f32 1.442695, %v3142_v4  ;;  %v3140_v24 = vand.u32 2147483647, %v6671_v43  ;;  %v3136_v39 = vmax.f32 %v6671_v43, 0.0 }
 0x532   :  { %4271 = vpow2.f32 %v3148_v30  ;;  %v3145_v63 = vsub.f32 0.0, %v3141_v3 }
 0x533   :  { %4273 = vpow2.f32 %v3146_v48  ;;  %v3144_v52 = vsub.f32 0.0, %v3140_v24 }
 0x534   :  { %v3152_v29 = vmul.f32 1.442695, %v3145_v63 }
 0x535   :  { %v3150_v9 = vmul.f32 1.442695, %v3144_v52 }
 0x536   :  { %4275 = vpow2.f32 %v3152_v29 }
 0x537   :  { %4277 = vpow2.f32 %v3150_v9 }
 0x53c   :  { %v4272_v14 = vpop.eup %4271 }
 0x53d   :  { %v4274_v17 = vpop.eup %4273  ;;  %v3163_v19 = vadd.f32 1.0, %v4272_v14  ;;  %v3166_v11 = vmul.f32 -0.5, %v4272_v14  ;;  %v3169_v7 = vand.u32 2147483647, %v4272_v14 }
 0x53e   :  { %v3154_v61 = vadd.f32 1.0, %v4274_v17  ;;  %v3157_v38 = vmul.f32 -0.5, %v4274_v17  ;;  %v3160_v45 = vand.u32 2147483647, %v4274_v17 }
 0x53f   :  { %4279 = vlog2.f32 %v3163_v19  ;;  %v3167_v54 = vadd.f32 1.0, %v3166_v11  ;;  %vm3170_vm12 = vcmp.lt.f32.partialorder %v3169_v7, 0.0004427343 }
 0x540   :  { %v4276_v5 = vpop.eup %4275  ;;  %4281 = vlog2.f32 %v3154_v61  ;;  %v3158_v60 = vadd.f32 1.0, %v3157_v38  ;;  %vm3161_vm13 = vcmp.lt.f32.partialorder %v3160_v45, 0.0004427343 }
 0x541   :  { %v4278_v28 = vpop.eup %4277  ;;  %v3181_v42 = vadd.f32 1.0, %v4276_v5  ;;  %v3184_v22 = vmul.f32 -0.5, %v4276_v5  ;;  %v3168_v46 = vmul.f32 %v4272_v14, %v3167_v54  ;;  %v3187_v6 = vand.u32 2147483647, %v4276_v5 }
 0x542   :  { %v3172_v58 = vadd.f32 1.0, %v4278_v28  ;;  %v3175_v49 = vmul.f32 -0.5, %v4278_v28  ;;  %v3159_v62 = vmul.f32 %v4274_v17, %v3158_v60  ;;  %v3178_v16 = vand.u32 2147483647, %v4278_v28 }
 0x543   :  { %4283 = vlog2.f32 %v3181_v42  ;;  %v3185_v59 = vadd.f32 1.0, %v3184_v22  ;;  %vm3188_vm14 = vcmp.lt.f32.partialorder %v3187_v6, 0.0004427343 }
 0x544   :  { %4285 = vlog2.f32 %v3172_v58  ;;  %v3176_v18 = vadd.f32 1.0, %v3175_v49  ;;  %vm3179_vm15 = vcmp.lt.f32.partialorder %v3178_v16, 0.0004427343 }
 0x545   :  { %v3186_v44 = vmul.f32 %v4276_v5, %v3185_v59 }
 0x546   :  { %v3177_v20 = vmul.f32 %v4278_v28, %v3176_v18 }
 0x549   :  { %v4280_v35 = vpop.eup %4279 }
 0x54a   :  { %v4282_v40 = vpop.eup %4281  ;;  %v3165_v2 = vmul.f32 0.6931472, %v4280_v35 }
 0x54b   :  { %v3156_v41 = vmul.f32 0.6931472, %v4282_v40 }
 0x54c   :  { %v3171_v27 = vsel %vm3170_vm12, %v3168_v46, %v3165_v2 }
 0x54d   :  { %v4284_v53 = vpop.eup %4283  ;;  %v3191_v34 = vadd.f32 %v3171_v27, %v3135_v1  ;;  %v3162_v8 = vsel %vm3161_vm13, %v3159_v62, %v3156_v41 }
 0x54e   :  { %v4286_v31 = vpop.eup %4285  ;;  %v3190_v51 = vadd.f32 %v3162_v8, %v3134_v56  ;;  %v3183_v15 = vmul.f32 0.6931472, %v4284_v53 }
 0x54f   :  { %v3174_v12 = vmul.f32 0.6931472, %v4286_v31  ;;  %v3484_v21 = vadd.f32 -0.6931472, %v3191_v34 }
 0x550   :  { %v3483_v10 = vadd.f32 -0.6931472, %v3190_v51  ;;  %v3189_v33 = vsel %vm3188_vm14, %v3186_v44, %v3183_v15 }
 0x551   :  { %v3180_v0 = vsel %vm3179_vm15, %v3177_v20, %v3174_v12  ;;  %v3193_v57 = vadd.f32 %v3189_v33, %v3137_v25 }
 0x552   :  { %3884 = vmatprep.mubr.f32.mxu1 %v3483_v10  ;;  %v3192_v26 = vadd.f32 %v3180_v0, %v3136_v39 }
 0x553   :  { %3885 = vmatmul.mubr.f32.vlgmr.msra.gmra.mrb[20].mxu1 %v3484_v21  ;;  %v3486_v37 = vadd.f32 -0.6931472, %v3193_v57 }
 0x554   :  { %v3485_v50 = vadd.f32 -0.6931472, %v3192_v26 }
 0x556   :  { %3887 = vmatprep.mubr.f32.mxu1 %v3485_v50 }
 0x557   :  { %3888 = vmatmul.mubr.f32.gmra.mrb[22].mxu1 %v3486_v37 }
 0x558   :  { %4433 = shalt.err (!%p4430_p10)
}
 0x559   :  { %s4434_s29 = scalar_lea.hbm %s6725_s15, 2048 }
 0x55a   :  { %p4435_p11 = scmp.ne.s32.totalorder %s6725_s15, %s4434_s29  ;;  %p4438_p12 = scmp.lt.u32.totalorder %s4434_s29, %s6725_s15 }
 0x55c   :  { %p4440_p13 = pnand %p4438_p12, %p4435_p11 }
 0x55e   :  { %4443 = shalt.err (!%p4440_p13)
}
 0x55f   :  { %3341 = dma.vmem_to_hbm [thread:$0]  %s3336_s27, 2048, %s6725_s15, [#allocation17], %s4480_s30, %s4480_s30, %s4481_s16   ;;  %v3307_v47 = vld [vmem:[#allocation4 + $0x8] sm:$0xff]  ;;  %v3306_v32 = vld [vmem:[#allocation4] sm:$0xff]  ;;  %v3309_v48 = vld [vmem:[#allocation4 + $0x18] sm:$0xff] }
 0x560   :  { %v3487_v36 = vld [vmem:[%s6723_s13] ss:$0 sm:$0xff]  ;;  %v3308_v52 = vld [vmem:[#allocation4 + $0x10] sm:$0xff]  ;;  %s4496_s23 = smov [#allocation15]  }
 0x561   :  { %s3323_s15 = sshll.u32 %s4496_s23, 4  ;;  %s3324_s15 = int_to_ptr.vmem [resolvable:$true] %s3323_s15 }
 0x562   :  { %s4444_s13 = scalar_lea.vmem %s3324_s15, 512  ;;  %p4449_p1 = scmp.lt.s32.totalorder %s3324_s15, %s3324_s15 }
 0x563   :  { %p4445_p0 = scmp.ne.s32.totalorder %s3324_s15, %s4444_s13  ;;  %p4450_p2 = scmp.lt.s32.totalorder %s4444_s13, %s4444_s13 }
 0x565   :  { %p4451_p3 = por %p4450_p2, %p4449_p1 }
 0x567   :  { %p4452_p4 = pnand %p4451_p3, %p4445_p0 }
 0x626   :  { %v3886_v55 = vpop.f32.mrb[20].mxu1 }
 0x627   :  { %v3293_v13 = vadd.f32 %v3886_v55, %v3487_v36  ;;  %v3287_v23 = vpop.f32.mrb[21].mxu1 }
 0x628   :  { %v3288_v4 = vadd.f32 %v3487_v36, %v3287_v23 }
 0x629   :  { %v3311_v43 = vadd.f32 %v3307_v47, %v3293_v13 }
 0x62a   :  { %v3310_v30 = vadd.f32 %v3306_v32, %v3288_v4  ;;  %v3889_v3 = vpop.f32.mrb[22].mxu1 }
 0x62b   :  { %3315 = vst [vmem:[#allocation15 + $0x8] sm:$0xff] %v3311_v43  ;;  %v3303_v24 = vadd.f32 %v3889_v3, %v3487_v36  ;;  %v3297_v63 = vpop.f32.mrb[23].mxu1 }
 0x62c   :  { %3314 = vst [vmem:[#allocation15] sm:$0xff] %v3310_v30  ;;  %v3298_v29 = vadd.f32 %v3487_v36, %v3297_v63 }
 0x62d   :  { %v3313_v9 = vadd.f32 %v3309_v48, %v3303_v24 }
 0x62e   :  { %v3312_v14 = vadd.f32 %v3308_v52, %v3298_v29 }
 0x62f   :  { %3317 = vst [vmem:[#allocation15 + $0x18] sm:$0xff] %v3313_v9 }
 0x630   :  { %3316 = vst [vmem:[#allocation15 + $0x10] sm:$0xff] %v3312_v14 }
 0x631   :  { %4455 = shalt.err (!%p4452_p4)
}
 0x632   :  { %s4456_s20 = scalar_lea.hbm %s6724_s14, 512 }
 0x633   :  { %p4457_p5 = scmp.ne.s32.totalorder %s6724_s14, %s4456_s20  ;;  %p4460_p6 = scmp.lt.u32.totalorder %s4456_s20, %s6724_s14 }
 0x635   :  { %p4462_p7 = pnand %p4460_p6, %p4457_p5 }
 0x637   :  { %4465 = shalt.err (!%p4462_p7)
}
 0x638   :  { %3329 = dma.vmem_to_hbm [thread:$0]  %s3324_s15, 512, %s6724_s14, [#allocation6], %s4480_s30, %s4480_s30, %s4481_s16  }
 0x639   :  { %4474 = dma.done.wait [#allocation6], 512  }
 0x63a   :  { %4475 = vsyncadd [#allocation6], 4294966784 }
 0x63b   :  { %4476 = dma.done.wait [#allocation17], 2048  }
 0x63c   :  { %4477 = vsyncadd [#allocation17], 4294965248 }
 0x63d   :  { %3348 = vsyncpa [#allocation5], 1 }
 0x63e   :  { %3349 = vsyncpa [#allocation8], 1 }
 0x63f   :  { %3350 = vsyncpa [#allocation11], 1 }
 0x640   :  { %3351 = vsyncpa [#allocation14], 1 }
 0x641   :  { %3352 = vsyncpa [#allocation6], 1 }
 0x642   :  { %3353 = vsyncpa [#allocation17], 1 }

</bundles_post_ra>
